<compile_context>
chip_gen: v7x
topology: tpu7x:2x2x1
jax: 0.10.0
libtpu: 0.0.40
codegen_flags: <defaults>
</compile_context>

<pallas_src>
import math

import jax
import jax.numpy as jnp
from jax.experimental import pallas as pl
from jax.experimental.pallas import tpu as pltpu

MAX_LEN = 1001
D_MODEL = 256  # forward hard-codes expand(B, 1001, 256), so d_model must be 256

# Keep double-buffered x + out tiles (+ pe) comfortably under this budget; it is
# below the physical VMEM of every generation (v7x: 64 MiB, v5e/v6e: 128 MiB).
_VMEM_LIMIT_BYTES = 32 * 1024 * 1024
_TILE_BUDGET_BYTES = 24 * 1024 * 1024


def _build_pe(max_len: int = MAX_LEN, d_model: int = D_MODEL) -> jnp.ndarray:
    """Deterministic sin/cos positional-encoding buffer, same as __init__."""
    position = jnp.arange(0, max_len, dtype=jnp.float32)[:, None]            # (L, 1)
    div_term = jnp.exp(
        jnp.arange(0, d_model, 2, dtype=jnp.float32) * (-math.log(10000.0) / d_model)
    )                                                                          # (D/2,)
    angles = position * div_term                                               # (L, D/2)
    pe = jnp.zeros((max_len, d_model), dtype=jnp.float32)
    pe = pe.at[:, 0::2].set(jnp.sin(angles))
    pe = pe.at[:, 1::2].set(jnp.cos(angles))
    return pe


def _pe_add_kernel(pe_ref, x_ref, o_ref):
    # pe_ref tile: (1, S, D); x_ref / o_ref tile: (TB, S, D).
    # Same-rank broadcast add -> pure per-vreg VALU op, no explicit reshape.
    o_ref[...] = x_ref[...] + pe_ref[...]


def _choose_batch_tile(batch: int, itemsize: int) -> int:
    """Largest batch tile whose double-buffered in+out tiles fit the budget."""
    row_bytes = MAX_LEN * D_MODEL * itemsize          # one (1, S, D) slab
    # 2x double-buffered input + 2x double-buffered output = 4 slabs per row;
    # leave the remaining budget headroom for the resident pe tile.
    tb = (_TILE_BUDGET_BYTES - 2 * row_bytes) // (4 * row_bytes)
    return int(max(1, min(batch, tb)))


def positional_encoding_forward(
    x: jnp.ndarray, pe: jnp.ndarray, *, donate_x: bool = False
) -> jnp.ndarray:
    """out[b] = x[b] + pe   for every batch element b."""
    B, S, D = x.shape
    assert (S, D) == pe.shape, "x must be (B, 1001, 256) to match pe.expand"

    # Cast once on the host (halves pe HBM traffic for bf16 activations) and
    # add a leading unit axis so the kernel add is same-rank.
    pe3 = pe.astype(x.dtype)[None, :, :]              # (1, S, D)

    tb = _choose_batch_tile(B, jnp.dtype(x.dtype).itemsize)
    grid = (pl.cdiv(B, tb),)

    kwargs = {}
    if donate_x:
        # Inputs are (pe3, x); alias x (input index 1) to the single output.
        kwargs["input_output_aliases"] = {1: 0}

    return pl.pallas_call(
        _pe_add_kernel,
        out_shape=jax.ShapeDtypeStruct((B, S, D), x.dtype),
        grid_spec=pltpu.PrefetchScalarGridSpec(
            num_scalar_prefetch=0,
            grid=grid,
            in_specs=[
                # pe: constant block index every step -> stays VMEM-resident.
                pl.BlockSpec((1, S, D), lambda b: (0, 0, 0)),
                # x: TB batch rows per grid step (partial tail handled by Pallas).
                pl.BlockSpec((tb, S, D), lambda b: (b, 0, 0)),
            ],
            out_specs=pl.BlockSpec((tb, S, D), lambda b: (b, 0, 0)),
        ),
        compiler_params=pltpu.CompilerParams(
            dimension_semantics=("parallel",),
            vmem_limit_bytes=_VMEM_LIMIT_BYTES,
        ),
        **kwargs,
    )(pe3, x)


if __name__ == "__main__":
    key = jax.random.PRNGKey(0)
    B = 2  # S=1001 and D=256 are hard-coded by the module's forward
    x = jax.random.normal(key, (B, MAX_LEN, D_MODEL), dtype=jnp.float32)

    pe = _build_pe()

    out = positional_encoding_forward(x, pe)
    out = jax.block_until_ready(out)

    # Reference check (plain JAX broadcast add).
    ref = x + pe[None, :, :]
    assert out.shape == (B, MAX_LEN, D_MODEL)
    assert jnp.allclose(out, ref, atol=1e-6), "mismatch vs reference"

    print("KERNEL_OK")
</pallas_src>

<mosaic_0001>
module attributes {stable_mosaic.version = 11 : i64} {
  func.func @_pe_add_kernel(%arg0: i32, %arg1: memref<1x1001x256xf32, #tpu.memory_space<vmem>>, %arg2: memref<2x1001x256xf32, #tpu.memory_space<vmem>>, %arg3: memref<2x1001x256xf32, #tpu.memory_space<vmem>>) attributes {dimension_semantics = [#tpu.dimension_semantics<parallel>], iteration_bounds = array<i64: 1>, scalar_prefetch = 0 : i64, scratch_operands = 0 : i64, tpu.core_type = #tpu.core_type<tc>, window_params = [{pipeline_mode = #tpu.pipeline_mode<synchronous>, transform_indices = @transform_0, window_bounds = array<i64: 1, 1001, 256>}, {transform_indices = @transform_1, window_bounds = array<i64: 2, 1001, 256>}, {transform_indices = @transform_2, window_bounds = array<i64: 2, 1001, 256>}]} {
    %c0 = arith.constant 0 : index
    %c0_0 = arith.constant 0 : index
    %c0_1 = arith.constant 0 : index
    %0 = vector.load %arg2[%c0, %c0_0, %c0_1] : memref<2x1001x256xf32, #tpu.memory_space<vmem>>, vector<2x1001x256xf32>
    %c0_2 = arith.constant 0 : index
    %c0_3 = arith.constant 0 : index
    %c0_4 = arith.constant 0 : index
    %1 = vector.load %arg1[%c0_2, %c0_3, %c0_4] : memref<1x1001x256xf32, #tpu.memory_space<vmem>>, vector<1x1001x256xf32>
    %2 = vector.broadcast %1 : vector<1x1001x256xf32> to vector<2x1001x256xf32>
    %3 = arith.addf %0, %2 : vector<2x1001x256xf32>
    %c0_5 = arith.constant 0 : index
    %c0_6 = arith.constant 0 : index
    %c0_7 = arith.constant 0 : index
    %4 = vector.load %arg3[%c0_5, %c0_6, %c0_7] : memref<2x1001x256xf32, #tpu.memory_space<vmem>>, vector<2x1001x256xf32>
    tpu.vector_store %arg3[%c0_5, %c0_6, %c0_7], %3 {strides = array<i32>} : memref<2x1001x256xf32, #tpu.memory_space<vmem>>, vector<2x1001x256xf32>,
    return
  }
  func.func @transform_0(%arg0: i32) -> (i32, i32, i32) {
    %c0_i32 = arith.constant 0 : i32
    %c0_i32_0 = arith.constant 0 : i32
    %c0_i32_1 = arith.constant 0 : i32
    %c0_i32_2 = arith.constant 0 : i32
    return %c0_i32, %c0_i32_0, %c0_i32_1 : i32, i32, i32
  }
  func.func @transform_1(%arg0: i32) -> (i32, i32, i32) {
    %c0_i32 = arith.constant 0 : i32
    %c0_i32_0 = arith.constant 0 : i32
    %c0_i32_1 = arith.constant 0 : i32
    return %arg0, %c0_i32, %c0_i32_0 : i32, i32, i32
  }
  func.func @transform_2(%arg0: i32) -> (i32, i32, i32) {
    %c0_i32 = arith.constant 0 : i32
    %c0_i32_0 = arith.constant 0 : i32
    %c0_i32_1 = arith.constant 0 : i32
    return %arg0, %c0_i32, %c0_i32_0 : i32, i32, i32
  }
}

</mosaic_0001>

<bundles_post_ra>
// kernel: tpu_custom_call.1
= control target key start
LH: loop header
LB: loop body
LE: loop exit
PB: predicated region body
PF: predicated region fallthrough
CT: control target
= control target key end

     0   :  { %s6582_s0 = inlined_call_operand.vmem [shape: f32[1,1001,256], index: 0, kind: input, shape index: {}]   ;;  %s6583_s1 = inlined_call_operand.vmem [shape: f32[2,1001,256], index: 1, kind: input, shape index: {}]   ;;  %s6584_s2 = inlined_call_operand.vmem [shape: f32[2,1001,256], index: 2, kind: output, shape index: {}]  }
   0x1   :  { %v11_v0 = vld [vmem:[%s6583_s1] sm:$0xff]  ;;  %v12_v2 = vld [vmem:[%s6583_s1 + $0x8] sm:$0xff]  ;;  %v13_v5 = vld [vmem:[%s6583_s1 + $0x10] sm:$0xff] }
   0x2   :  { %v515_v1 = vld [vmem:[%s6582_s0] sm:$0xff]  ;;  %v516_v4 = vld [vmem:[%s6582_s0 + $0x8] sm:$0xff]  ;;  %v517_v6 = vld [vmem:[%s6582_s0 + $0x10] sm:$0xff] }
   0x3   :  { %v767_v3 = vadd.f32 %v515_v1, %v11_v0  ;;  %v768_v7 = vadd.f32 %v516_v4, %v12_v2  ;;  %v769_v8 = vadd.f32 %v517_v6, %v13_v5  ;;  %v14_v9 = vld [vmem:[%s6583_s1 + $0x18] sm:$0xff]  ;;  %v15_v11 = vld [vmem:[%s6583_s1 + $0x20] sm:$0xff]  ;;  %v16_v14 = vld [vmem:[%s6583_s1 + $0x28] sm:$0xff] }
   0x4   :  { %v518_v10 = vld [vmem:[%s6582_s0 + $0x18] sm:$0xff]  ;;  %v519_v13 = vld [vmem:[%s6582_s0 + $0x20] sm:$0xff]  ;;  %v520_v15 = vld [vmem:[%s6582_s0 + $0x28] sm:$0xff] }
   0x5   :  { %1271 = vst [vmem:[%s6584_s2] sm:$0xff] %v767_v3  ;;  %v770_v12 = vadd.f32 %v518_v10, %v14_v9  ;;  %1272 = vst [vmem:[%s6584_s2 + $0x8] sm:$0xff] %v768_v7  ;;  %v771_v16 = vadd.f32 %v519_v13, %v15_v11  ;;  %v772_v17 = vadd.f32 %v520_v15, %v16_v14  ;;  %v17_v18 = vld [vmem:[%s6583_s1 + $0x30] sm:$0xff]  ;;  %v18_v20 = vld [vmem:[%s6583_s1 + $0x38] sm:$0xff] }
   0x6   :  { %1273 = vst [vmem:[%s6584_s2 + $0x10] sm:$0xff] %v769_v8  ;;  %v521_v19 = vld [vmem:[%s6582_s0 + $0x30] sm:$0xff]  ;;  %v522_v22 = vld [vmem:[%s6582_s0 + $0x38] sm:$0xff]  ;;  %v19_v23 = vld [vmem:[%s6583_s1 + $0x40] sm:$0xff] }
   0x7   :  { %1274 = vst [vmem:[%s6584_s2 + $0x18] sm:$0xff] %v770_v12  ;;  %v773_v21 = vadd.f32 %v521_v19, %v17_v18  ;;  %v523_v24 = vld [vmem:[%s6582_s0 + $0x40] sm:$0xff]  ;;  %1275 = vst [vmem:[%s6584_s2 + $0x20] sm:$0xff] %v771_v16  ;;  %v774_v25 = vadd.f32 %v522_v22, %v18_v20  ;;  %v20_v27 = vld [vmem:[%s6583_s1 + $0x48] sm:$0xff] }
   0x8   :  { %1276 = vst [vmem:[%s6584_s2 + $0x28] sm:$0xff] %v772_v17  ;;  %v775_v26 = vadd.f32 %v523_v24, %v19_v23  ;;  %v524_v28 = vld [vmem:[%s6582_s0 + $0x48] sm:$0xff]  ;;  %v21_v29 = vld [vmem:[%s6583_s1 + $0x50] sm:$0xff]  ;;  %v22_v32 = vld [vmem:[%s6583_s1 + $0x58] sm:$0xff] }
   0x9   :  { %1277 = vst [vmem:[%s6584_s2 + $0x30] sm:$0xff] %v773_v21  ;;  %v776_v30 = vadd.f32 %v524_v28, %v20_v27  ;;  %v525_v31 = vld [vmem:[%s6582_s0 + $0x50] sm:$0xff]  ;;  %v526_v33 = vld [vmem:[%s6582_s0 + $0x58] sm:$0xff]  ;;  %1278 = vst [vmem:[%s6584_s2 + $0x38] sm:$0xff] %v774_v25 }
   0xa   :  { %1279 = vst [vmem:[%s6584_s2 + $0x40] sm:$0xff] %v775_v26  ;;  %v777_v34 = vadd.f32 %v525_v31, %v21_v29  ;;  %v778_v35 = vadd.f32 %v526_v33, %v22_v32  ;;  %v23_v36 = vld [vmem:[%s6583_s1 + $0x60] sm:$0xff]  ;;  %v24_v38 = vld [vmem:[%s6583_s1 + $0x68] sm:$0xff]  ;;  %v25_v41 = vld [vmem:[%s6583_s1 + $0x70] sm:$0xff] }
   0xb   :  { %v527_v37 = vld [vmem:[%s6582_s0 + $0x60] sm:$0xff]  ;;  %1280 = vst [vmem:[%s6584_s2 + $0x48] sm:$0xff] %v776_v30  ;;  %v528_v40 = vld [vmem:[%s6582_s0 + $0x68] sm:$0xff]  ;;  %v529_v42 = vld [vmem:[%s6582_s0 + $0x70] sm:$0xff] }
   0xc   :  { %v779_v39 = vadd.f32 %v527_v37, %v23_v36  ;;  %1281 = vst [vmem:[%s6584_s2 + $0x50] sm:$0xff] %v777_v34  ;;  %1282 = vst [vmem:[%s6584_s2 + $0x58] sm:$0xff] %v778_v35  ;;  %v780_v43 = vadd.f32 %v528_v40, %v24_v38  ;;  %v781_v44 = vadd.f32 %v529_v42, %v25_v41  ;;  %v26_v45 = vld [vmem:[%s6583_s1 + $0x78] sm:$0xff]  ;;  %v27_v47 = vld [vmem:[%s6583_s1 + $0x80] sm:$0xff] }
   0xd   :  { %v530_v46 = vld [vmem:[%s6582_s0 + $0x78] sm:$0xff]  ;;  %v531_v49 = vld [vmem:[%s6582_s0 + $0x80] sm:$0xff]  ;;  %v28_v50 = vld [vmem:[%s6583_s1 + $0x88] sm:$0xff] }
   0xe   :  { %1283 = vst [vmem:[%s6584_s2 + $0x60] sm:$0xff] %v779_v39  ;;  %v782_v48 = vadd.f32 %v530_v46, %v26_v45  ;;  %v532_v51 = vld [vmem:[%s6582_s0 + $0x88] sm:$0xff]  ;;  %1284 = vst [vmem:[%s6584_s2 + $0x68] sm:$0xff] %v780_v43  ;;  %v783_v52 = vadd.f32 %v531_v49, %v27_v47  ;;  %v29_v54 = vld [vmem:[%s6583_s1 + $0x90] sm:$0xff] }
   0xf   :  { %1285 = vst [vmem:[%s6584_s2 + $0x70] sm:$0xff] %v781_v44  ;;  %v784_v53 = vadd.f32 %v532_v51, %v28_v50  ;;  %v533_v55 = vld [vmem:[%s6582_s0 + $0x90] sm:$0xff]  ;;  %v30_v56 = vld [vmem:[%s6583_s1 + $0x98] sm:$0xff]  ;;  %v31_v59 = vld [vmem:[%s6583_s1 + $0xa0] sm:$0xff] }
  0x10   :  { %1286 = vst [vmem:[%s6584_s2 + $0x78] sm:$0xff] %v782_v48  ;;  %v785_v57 = vadd.f32 %v533_v55, %v29_v54  ;;  %v534_v58 = vld [vmem:[%s6582_s0 + $0x98] sm:$0xff]  ;;  %v535_v60 = vld [vmem:[%s6582_s0 + $0xa0] sm:$0xff]  ;;  %1287 = vst [vmem:[%s6584_s2 + $0x80] sm:$0xff] %v783_v52 }
  0x11   :  { %1288 = vst [vmem:[%s6584_s2 + $0x88] sm:$0xff] %v784_v53  ;;  %v786_v61 = vadd.f32 %v534_v58, %v30_v56  ;;  %v787_v62 = vadd.f32 %v535_v60, %v31_v59  ;;  %v32_v63 = vld [vmem:[%s6583_s1 + $0xa8] sm:$0xff]  ;;  %v33_v1 = vld [vmem:[%s6583_s1 + $0xb0] sm:$0xff]  ;;  %v34_v4 = vld [vmem:[%s6583_s1 + $0xb8] sm:$0xff] }
  0x12   :  { %v536_v0 = vld [vmem:[%s6582_s0 + $0xa8] sm:$0xff]  ;;  %1289 = vst [vmem:[%s6584_s2 + $0x90] sm:$0xff] %v785_v57  ;;  %v537_v3 = vld [vmem:[%s6582_s0 + $0xb0] sm:$0xff]  ;;  %v538_v5 = vld [vmem:[%s6582_s0 + $0xb8] sm:$0xff] }
  0x13   :  { %v788_v2 = vadd.f32 %v536_v0, %v32_v63  ;;  %1290 = vst [vmem:[%s6584_s2 + $0x98] sm:$0xff] %v786_v61  ;;  %1291 = vst [vmem:[%s6584_s2 + $0xa0] sm:$0xff] %v787_v62  ;;  %v789_v6 = vadd.f32 %v537_v3, %v33_v1  ;;  %v790_v7 = vadd.f32 %v538_v5, %v34_v4  ;;  %v35_v8 = vld [vmem:[%s6583_s1 + $0xc0] sm:$0xff]  ;;  %v36_v10 = vld [vmem:[%s6583_s1 + $0xc8] sm:$0xff] }
  0x14   :  { %v539_v9 = vld [vmem:[%s6582_s0 + $0xc0] sm:$0xff]  ;;  %v540_v12 = vld [vmem:[%s6582_s0 + $0xc8] sm:$0xff]  ;;  %v37_v13 = vld [vmem:[%s6583_s1 + $0xd0] sm:$0xff] }
  0x15   :  { %1292 = vst [vmem:[%s6584_s2 + $0xa8] sm:$0xff] %v788_v2  ;;  %v791_v11 = vadd.f32 %v539_v9, %v35_v8  ;;  %v541_v14 = vld [vmem:[%s6582_s0 + $0xd0] sm:$0xff]  ;;  %1293 = vst [vmem:[%s6584_s2 + $0xb0] sm:$0xff] %v789_v6  ;;  %v792_v15 = vadd.f32 %v540_v12, %v36_v10  ;;  %v38_v17 = vld [vmem:[%s6583_s1 + $0xd8] sm:$0xff] }
  0x16   :  { %1294 = vst [vmem:[%s6584_s2 + $0xb8] sm:$0xff] %v790_v7  ;;  %v793_v16 = vadd.f32 %v541_v14, %v37_v13  ;;  %v542_v18 = vld [vmem:[%s6582_s0 + $0xd8] sm:$0xff]  ;;  %v39_v19 = vld [vmem:[%s6583_s1 + $0xe0] sm:$0xff]  ;;  %v40_v22 = vld [vmem:[%s6583_s1 + $0xe8] sm:$0xff] }
  0x17   :  { %1295 = vst [vmem:[%s6584_s2 + $0xc0] sm:$0xff] %v791_v11  ;;  %v794_v20 = vadd.f32 %v542_v18, %v38_v17  ;;  %v543_v21 = vld [vmem:[%s6582_s0 + $0xe0] sm:$0xff]  ;;  %v544_v23 = vld [vmem:[%s6582_s0 + $0xe8] sm:$0xff]  ;;  %1296 = vst [vmem:[%s6584_s2 + $0xc8] sm:$0xff] %v792_v15 }
  0x18   :  { %1297 = vst [vmem:[%s6584_s2 + $0xd0] sm:$0xff] %v793_v16  ;;  %v795_v24 = vadd.f32 %v543_v21, %v39_v19  ;;  %v796_v25 = vadd.f32 %v544_v23, %v40_v22  ;;  %v41_v26 = vld [vmem:[%s6583_s1 + $0xf0] sm:$0xff]  ;;  %v42_v28 = vld [vmem:[%s6583_s1 + $0xf8] sm:$0xff]  ;;  %v43_v31 = vld [vmem:[%s6583_s1 + $0x100] sm:$0xff] }
  0x19   :  { %v545_v27 = vld [vmem:[%s6582_s0 + $0xf0] sm:$0xff]  ;;  %1298 = vst [vmem:[%s6584_s2 + $0xd8] sm:$0xff] %v794_v20  ;;  %v546_v30 = vld [vmem:[%s6582_s0 + $0xf8] sm:$0xff]  ;;  %v547_v32 = vld [vmem:[%s6582_s0 + $0x100] sm:$0xff] }
  0x1a   :  { %v797_v29 = vadd.f32 %v545_v27, %v41_v26  ;;  %1299 = vst [vmem:[%s6584_s2 + $0xe0] sm:$0xff] %v795_v24  ;;  %1300 = vst [vmem:[%s6584_s2 + $0xe8] sm:$0xff] %v796_v25  ;;  %v798_v33 = vadd.f32 %v546_v30, %v42_v28  ;;  %v799_v34 = vadd.f32 %v547_v32, %v43_v31  ;;  %v44_v35 = vld [vmem:[%s6583_s1 + $0x108] sm:$0xff]  ;;  %v45_v37 = vld [vmem:[%s6583_s1 + $0x110] sm:$0xff] }
  0x1b   :  { %v548_v36 = vld [vmem:[%s6582_s0 + $0x108] sm:$0xff]  ;;  %v549_v39 = vld [vmem:[%s6582_s0 + $0x110] sm:$0xff]  ;;  %v46_v40 = vld [vmem:[%s6583_s1 + $0x118] sm:$0xff] }
  0x1c   :  { %1301 = vst [vmem:[%s6584_s2 + $0xf0] sm:$0xff] %v797_v29  ;;  %v800_v38 = vadd.f32 %v548_v36, %v44_v35  ;;  %v550_v41 = vld [vmem:[%s6582_s0 + $0x118] sm:$0xff]  ;;  %1302 = vst [vmem:[%s6584_s2 + $0xf8] sm:$0xff] %v798_v33  ;;  %v801_v42 = vadd.f32 %v549_v39, %v45_v37  ;;  %v47_v44 = vld [vmem:[%s6583_s1 + $0x120] sm:$0xff] }
  0x1d   :  { %1303 = vst [vmem:[%s6584_s2 + $0x100] sm:$0xff] %v799_v34  ;;  %v802_v43 = vadd.f32 %v550_v41, %v46_v40  ;;  %v551_v45 = vld [vmem:[%s6582_s0 + $0x120] sm:$0xff]  ;;  %v48_v46 = vld [vmem:[%s6583_s1 + $0x128] sm:$0xff]  ;;  %v49_v49 = vld [vmem:[%s6583_s1 + $0x130] sm:$0xff] }
  0x1e   :  { %1304 = vst [vmem:[%s6584_s2 + $0x108] sm:$0xff] %v800_v38  ;;  %v803_v47 = vadd.f32 %v551_v45, %v47_v44  ;;  %v552_v48 = vld [vmem:[%s6582_s0 + $0x128] sm:$0xff]  ;;  %v553_v50 = vld [vmem:[%s6582_s0 + $0x130] sm:$0xff]  ;;  %1305 = vst [vmem:[%s6584_s2 + $0x110] sm:$0xff] %v801_v42 }
  0x1f   :  { %1306 = vst [vmem:[%s6584_s2 + $0x118] sm:$0xff] %v802_v43  ;;  %v804_v51 = vadd.f32 %v552_v48, %v48_v46  ;;  %v805_v52 = vadd.f32 %v553_v50, %v49_v49  ;;  %v50_v53 = vld [vmem:[%s6583_s1 + $0x138] sm:$0xff]  ;;  %v51_v55 = vld [vmem:[%s6583_s1 + $0x140] sm:$0xff]  ;;  %v52_v58 = vld [vmem:[%s6583_s1 + $0x148] sm:$0xff] }
  0x20   :  { %v554_v54 = vld [vmem:[%s6582_s0 + $0x138] sm:$0xff]  ;;  %1307 = vst [vmem:[%s6584_s2 + $0x120] sm:$0xff] %v803_v47  ;;  %v555_v57 = vld [vmem:[%s6582_s0 + $0x140] sm:$0xff]  ;;  %v556_v59 = vld [vmem:[%s6582_s0 + $0x148] sm:$0xff] }
  0x21   :  { %v806_v56 = vadd.f32 %v554_v54, %v50_v53  ;;  %1308 = vst [vmem:[%s6584_s2 + $0x128] sm:$0xff] %v804_v51  ;;  %1309 = vst [vmem:[%s6584_s2 + $0x130] sm:$0xff] %v805_v52  ;;  %v807_v60 = vadd.f32 %v555_v57, %v51_v55  ;;  %v808_v61 = vadd.f32 %v556_v59, %v52_v58  ;;  %v53_v62 = vld [vmem:[%s6583_s1 + $0x150] sm:$0xff]  ;;  %v54_v0 = vld [vmem:[%s6583_s1 + $0x158] sm:$0xff] }
  0x22   :  { %v557_v63 = vld [vmem:[%s6582_s0 + $0x150] sm:$0xff]  ;;  %v558_v2 = vld [vmem:[%s6582_s0 + $0x158] sm:$0xff]  ;;  %v55_v3 = vld [vmem:[%s6583_s1 + $0x160] sm:$0xff] }
  0x23   :  { %1310 = vst [vmem:[%s6584_s2 + $0x138] sm:$0xff] %v806_v56  ;;  %v809_v1 = vadd.f32 %v557_v63, %v53_v62  ;;  %v559_v4 = vld [vmem:[%s6582_s0 + $0x160] sm:$0xff]  ;;  %1311 = vst [vmem:[%s6584_s2 + $0x140] sm:$0xff] %v807_v60  ;;  %v810_v5 = vadd.f32 %v558_v2, %v54_v0  ;;  %v56_v7 = vld [vmem:[%s6583_s1 + $0x168] sm:$0xff] }
  0x24   :  { %1312 = vst [vmem:[%s6584_s2 + $0x148] sm:$0xff] %v808_v61  ;;  %v811_v6 = vadd.f32 %v559_v4, %v55_v3  ;;  %v560_v8 = vld [vmem:[%s6582_s0 + $0x168] sm:$0xff]  ;;  %v57_v9 = vld [vmem:[%s6583_s1 + $0x170] sm:$0xff]  ;;  %v58_v12 = vld [vmem:[%s6583_s1 + $0x178] sm:$0xff] }
  0x25   :  { %1313 = vst [vmem:[%s6584_s2 + $0x150] sm:$0xff] %v809_v1  ;;  %v812_v10 = vadd.f32 %v560_v8, %v56_v7  ;;  %v561_v11 = vld [vmem:[%s6582_s0 + $0x170] sm:$0xff]  ;;  %v562_v13 = vld [vmem:[%s6582_s0 + $0x178] sm:$0xff]  ;;  %1314 = vst [vmem:[%s6584_s2 + $0x158] sm:$0xff] %v810_v5 }
  0x26   :  { %1315 = vst [vmem:[%s6584_s2 + $0x160] sm:$0xff] %v811_v6  ;;  %v813_v14 = vadd.f32 %v561_v11, %v57_v9  ;;  %v814_v15 = vadd.f32 %v562_v13, %v58_v12  ;;  %v59_v16 = vld [vmem:[%s6583_s1 + $0x180] sm:$0xff]  ;;  %v60_v18 = vld [vmem:[%s6583_s1 + $0x188] sm:$0xff]  ;;  %v61_v21 = vld [vmem:[%s6583_s1 + $0x190] sm:$0xff] }
  0x27   :  { %v563_v17 = vld [vmem:[%s6582_s0 + $0x180] sm:$0xff]  ;;  %1316 = vst [vmem:[%s6584_s2 + $0x168] sm:$0xff] %v812_v10  ;;  %v564_v20 = vld [vmem:[%s6582_s0 + $0x188] sm:$0xff]  ;;  %v565_v22 = vld [vmem:[%s6582_s0 + $0x190] sm:$0xff] }
  0x28   :  { %v815_v19 = vadd.f32 %v563_v17, %v59_v16  ;;  %1317 = vst [vmem:[%s6584_s2 + $0x170] sm:$0xff] %v813_v14  ;;  %1318 = vst [vmem:[%s6584_s2 + $0x178] sm:$0xff] %v814_v15  ;;  %v816_v23 = vadd.f32 %v564_v20, %v60_v18  ;;  %v817_v24 = vadd.f32 %v565_v22, %v61_v21  ;;  %v62_v25 = vld [vmem:[%s6583_s1 + $0x198] sm:$0xff]  ;;  %v63_v27 = vld [vmem:[%s6583_s1 + $0x1a0] sm:$0xff] }
  0x29   :  { %v566_v26 = vld [vmem:[%s6582_s0 + $0x198] sm:$0xff]  ;;  %v567_v29 = vld [vmem:[%s6582_s0 + $0x1a0] sm:$0xff]  ;;  %v64_v30 = vld [vmem:[%s6583_s1 + $0x1a8] sm:$0xff] }
  0x2a   :  { %1319 = vst [vmem:[%s6584_s2 + $0x180] sm:$0xff] %v815_v19  ;;  %v818_v28 = vadd.f32 %v566_v26, %v62_v25  ;;  %v568_v31 = vld [vmem:[%s6582_s0 + $0x1a8] sm:$0xff]  ;;  %1320 = vst [vmem:[%s6584_s2 + $0x188] sm:$0xff] %v816_v23  ;;  %v819_v32 = vadd.f32 %v567_v29, %v63_v27  ;;  %v65_v34 = vld [vmem:[%s6583_s1 + $0x1b0] sm:$0xff] }
  0x2b   :  { %1321 = vst [vmem:[%s6584_s2 + $0x190] sm:$0xff] %v817_v24  ;;  %v820_v33 = vadd.f32 %v568_v31, %v64_v30  ;;  %v569_v35 = vld [vmem:[%s6582_s0 + $0x1b0] sm:$0xff]  ;;  %v66_v36 = vld [vmem:[%s6583_s1 + $0x1b8] sm:$0xff]  ;;  %v67_v39 = vld [vmem:[%s6583_s1 + $0x1c0] sm:$0xff] }
  0x2c   :  { %1322 = vst [vmem:[%s6584_s2 + $0x198] sm:$0xff] %v818_v28  ;;  %v821_v37 = vadd.f32 %v569_v35, %v65_v34  ;;  %v570_v38 = vld [vmem:[%s6582_s0 + $0x1b8] sm:$0xff]  ;;  %v571_v40 = vld [vmem:[%s6582_s0 + $0x1c0] sm:$0xff]  ;;  %1323 = vst [vmem:[%s6584_s2 + $0x1a0] sm:$0xff] %v819_v32 }
  0x2d   :  { %1324 = vst [vmem:[%s6584_s2 + $0x1a8] sm:$0xff] %v820_v33  ;;  %v822_v41 = vadd.f32 %v570_v38, %v66_v36  ;;  %v823_v42 = vadd.f32 %v571_v40, %v67_v39  ;;  %v68_v43 = vld [vmem:[%s6583_s1 + $0x1c8] sm:$0xff]  ;;  %v69_v45 = vld [vmem:[%s6583_s1 + $0x1d0] sm:$0xff]  ;;  %v70_v48 = vld [vmem:[%s6583_s1 + $0x1d8] sm:$0xff] }
  0x2e   :  { %v572_v44 = vld [vmem:[%s6582_s0 + $0x1c8] sm:$0xff]  ;;  %1325 = vst [vmem:[%s6584_s2 + $0x1b0] sm:$0xff] %v821_v37  ;;  %v573_v47 = vld [vmem:[%s6582_s0 + $0x1d0] sm:$0xff]  ;;  %v574_v49 = vld [vmem:[%s6582_s0 + $0x1d8] sm:$0xff] }
  0x2f   :  { %v824_v46 = vadd.f32 %v572_v44, %v68_v43  ;;  %1326 = vst [vmem:[%s6584_s2 + $0x1b8] sm:$0xff] %v822_v41  ;;  %1327 = vst [vmem:[%s6584_s2 + $0x1c0] sm:$0xff] %v823_v42  ;;  %v825_v50 = vadd.f32 %v573_v47, %v69_v45  ;;  %v826_v51 = vadd.f32 %v574_v49, %v70_v48  ;;  %v71_v52 = vld [vmem:[%s6583_s1 + $0x1e0] sm:$0xff]  ;;  %v72_v54 = vld [vmem:[%s6583_s1 + $0x1e8] sm:$0xff] }
  0x30   :  { %v575_v53 = vld [vmem:[%s6582_s0 + $0x1e0] sm:$0xff]  ;;  %v576_v56 = vld [vmem:[%s6582_s0 + $0x1e8] sm:$0xff]  ;;  %v73_v57 = vld [vmem:[%s6583_s1 + $0x1f0] sm:$0xff] }
  0x31   :  { %1328 = vst [vmem:[%s6584_s2 + $0x1c8] sm:$0xff] %v824_v46  ;;  %v827_v55 = vadd.f32 %v575_v53, %v71_v52  ;;  %v577_v58 = vld [vmem:[%s6582_s0 + $0x1f0] sm:$0xff]  ;;  %1329 = vst [vmem:[%s6584_s2 + $0x1d0] sm:$0xff] %v825_v50  ;;  %v828_v59 = vadd.f32 %v576_v56, %v72_v54  ;;  %v74_v61 = vld [vmem:[%s6583_s1 + $0x1f8] sm:$0xff] }
  0x32   :  { %1330 = vst [vmem:[%s6584_s2 + $0x1d8] sm:$0xff] %v826_v51  ;;  %v829_v60 = vadd.f32 %v577_v58, %v73_v57  ;;  %v578_v62 = vld [vmem:[%s6582_s0 + $0x1f8] sm:$0xff]  ;;  %v75_v63 = vld [vmem:[%s6583_s1 + $0x200] sm:$0xff]  ;;  %v76_v2 = vld [vmem:[%s6583_s1 + $0x208] sm:$0xff] }
  0x33   :  { %1331 = vst [vmem:[%s6584_s2 + $0x1e0] sm:$0xff] %v827_v55  ;;  %v830_v0 = vadd.f32 %v578_v62, %v74_v61  ;;  %v579_v1 = vld [vmem:[%s6582_s0 + $0x200] sm:$0xff]  ;;  %v580_v3 = vld [vmem:[%s6582_s0 + $0x208] sm:$0xff]  ;;  %1332 = vst [vmem:[%s6584_s2 + $0x1e8] sm:$0xff] %v828_v59 }
  0x34   :  { %1333 = vst [vmem:[%s6584_s2 + $0x1f0] sm:$0xff] %v829_v60  ;;  %v831_v4 = vadd.f32 %v579_v1, %v75_v63  ;;  %v832_v5 = vadd.f32 %v580_v3, %v76_v2  ;;  %v77_v6 = vld [vmem:[%s6583_s1 + $0x210] sm:$0xff]  ;;  %v78_v8 = vld [vmem:[%s6583_s1 + $0x218] sm:$0xff]  ;;  %v79_v11 = vld [vmem:[%s6583_s1 + $0x220] sm:$0xff] }
  0x35   :  { %v581_v7 = vld [vmem:[%s6582_s0 + $0x210] sm:$0xff]  ;;  %1334 = vst [vmem:[%s6584_s2 + $0x1f8] sm:$0xff] %v830_v0  ;;  %v582_v10 = vld [vmem:[%s6582_s0 + $0x218] sm:$0xff]  ;;  %v583_v12 = vld [vmem:[%s6582_s0 + $0x220] sm:$0xff] }
  0x36   :  { %v833_v9 = vadd.f32 %v581_v7, %v77_v6  ;;  %1335 = vst [vmem:[%s6584_s2 + $0x200] sm:$0xff] %v831_v4  ;;  %1336 = vst [vmem:[%s6584_s2 + $0x208] sm:$0xff] %v832_v5  ;;  %v834_v13 = vadd.f32 %v582_v10, %v78_v8  ;;  %v835_v14 = vadd.f32 %v583_v12, %v79_v11  ;;  %v80_v15 = vld [vmem:[%s6583_s1 + $0x228] sm:$0xff]  ;;  %v81_v17 = vld [vmem:[%s6583_s1 + $0x230] sm:$0xff] }
  0x37   :  { %v584_v16 = vld [vmem:[%s6582_s0 + $0x228] sm:$0xff]  ;;  %v585_v19 = vld [vmem:[%s6582_s0 + $0x230] sm:$0xff]  ;;  %v82_v20 = vld [vmem:[%s6583_s1 + $0x238] sm:$0xff] }
  0x38   :  { %1337 = vst [vmem:[%s6584_s2 + $0x210] sm:$0xff] %v833_v9  ;;  %v836_v18 = vadd.f32 %v584_v16, %v80_v15  ;;  %v586_v21 = vld [vmem:[%s6582_s0 + $0x238] sm:$0xff]  ;;  %1338 = vst [vmem:[%s6584_s2 + $0x218] sm:$0xff] %v834_v13  ;;  %v837_v22 = vadd.f32 %v585_v19, %v81_v17  ;;  %v83_v24 = vld [vmem:[%s6583_s1 + $0x240] sm:$0xff] }
  0x39   :  { %1339 = vst [vmem:[%s6584_s2 + $0x220] sm:$0xff] %v835_v14  ;;  %v838_v23 = vadd.f32 %v586_v21, %v82_v20  ;;  %v587_v25 = vld [vmem:[%s6582_s0 + $0x240] sm:$0xff]  ;;  %v84_v26 = vld [vmem:[%s6583_s1 + $0x248] sm:$0xff]  ;;  %v85_v29 = vld [vmem:[%s6583_s1 + $0x250] sm:$0xff] }
  0x3a   :  { %1340 = vst [vmem:[%s6584_s2 + $0x228] sm:$0xff] %v836_v18  ;;  %v839_v27 = vadd.f32 %v587_v25, %v83_v24  ;;  %v588_v28 = vld [vmem:[%s6582_s0 + $0x248] sm:$0xff]  ;;  %v589_v30 = vld [vmem:[%s6582_s0 + $0x250] sm:$0xff]  ;;  %1341 = vst [vmem:[%s6584_s2 + $0x230] sm:$0xff] %v837_v22 }
  0x3b   :  { %1342 = vst [vmem:[%s6584_s2 + $0x238] sm:$0xff] %v838_v23  ;;  %v840_v31 = vadd.f32 %v588_v28, %v84_v26  ;;  %v841_v32 = vadd.f32 %v589_v30, %v85_v29  ;;  %v86_v33 = vld [vmem:[%s6583_s1 + $0x258] sm:$0xff]  ;;  %v87_v35 = vld [vmem:[%s6583_s1 + $0x260] sm:$0xff]  ;;  %v88_v38 = vld [vmem:[%s6583_s1 + $0x268] sm:$0xff] }
  0x3c   :  { %v590_v34 = vld [vmem:[%s6582_s0 + $0x258] sm:$0xff]  ;;  %1343 = vst [vmem:[%s6584_s2 + $0x240] sm:$0xff] %v839_v27  ;;  %v591_v37 = vld [vmem:[%s6582_s0 + $0x260] sm:$0xff]  ;;  %v592_v39 = vld [vmem:[%s6582_s0 + $0x268] sm:$0xff] }
  0x3d   :  { %v842_v36 = vadd.f32 %v590_v34, %v86_v33  ;;  %1344 = vst [vmem:[%s6584_s2 + $0x248] sm:$0xff] %v840_v31  ;;  %1345 = vst [vmem:[%s6584_s2 + $0x250] sm:$0xff] %v841_v32  ;;  %v843_v40 = vadd.f32 %v591_v37, %v87_v35  ;;  %v844_v41 = vadd.f32 %v592_v39, %v88_v38  ;;  %v89_v42 = vld [vmem:[%s6583_s1 + $0x270] sm:$0xff]  ;;  %v90_v44 = vld [vmem:[%s6583_s1 + $0x278] sm:$0xff] }
  0x3e   :  { %v593_v43 = vld [vmem:[%s6582_s0 + $0x270] sm:$0xff]  ;;  %v594_v46 = vld [vmem:[%s6582_s0 + $0x278] sm:$0xff]  ;;  %v91_v47 = vld [vmem:[%s6583_s1 + $0x280] sm:$0xff] }
  0x3f   :  { %1346 = vst [vmem:[%s6584_s2 + $0x258] sm:$0xff] %v842_v36  ;;  %v845_v45 = vadd.f32 %v593_v43, %v89_v42  ;;  %v595_v48 = vld [vmem:[%s6582_s0 + $0x280] sm:$0xff]  ;;  %1347 = vst [vmem:[%s6584_s2 + $0x260] sm:$0xff] %v843_v40  ;;  %v846_v49 = vadd.f32 %v594_v46, %v90_v44  ;;  %v92_v51 = vld [vmem:[%s6583_s1 + $0x288] sm:$0xff] }
  0x40   :  { %1348 = vst [vmem:[%s6584_s2 + $0x268] sm:$0xff] %v844_v41  ;;  %v847_v50 = vadd.f32 %v595_v48, %v91_v47  ;;  %v596_v52 = vld [vmem:[%s6582_s0 + $0x288] sm:$0xff]  ;;  %v93_v53 = vld [vmem:[%s6583_s1 + $0x290] sm:$0xff]  ;;  %v94_v56 = vld [vmem:[%s6583_s1 + $0x298] sm:$0xff] }
  0x41   :  { %1349 = vst [vmem:[%s6584_s2 + $0x270] sm:$0xff] %v845_v45  ;;  %v848_v54 = vadd.f32 %v596_v52, %v92_v51  ;;  %v597_v55 = vld [vmem:[%s6582_s0 + $0x290] sm:$0xff]  ;;  %v598_v57 = vld [vmem:[%s6582_s0 + $0x298] sm:$0xff]  ;;  %1350 = vst [vmem:[%s6584_s2 + $0x278] sm:$0xff] %v846_v49 }
  0x42   :  { %1351 = vst [vmem:[%s6584_s2 + $0x280] sm:$0xff] %v847_v50  ;;  %v849_v58 = vadd.f32 %v597_v55, %v93_v53  ;;  %v850_v59 = vadd.f32 %v598_v57, %v94_v56  ;;  %v95_v60 = vld [vmem:[%s6583_s1 + $0x2a0] sm:$0xff]  ;;  %v96_v62 = vld [vmem:[%s6583_s1 + $0x2a8] sm:$0xff]  ;;  %v97_v1 = vld [vmem:[%s6583_s1 + $0x2b0] sm:$0xff] }
  0x43   :  { %v599_v61 = vld [vmem:[%s6582_s0 + $0x2a0] sm:$0xff]  ;;  %1352 = vst [vmem:[%s6584_s2 + $0x288] sm:$0xff] %v848_v54  ;;  %v600_v0 = vld [vmem:[%s6582_s0 + $0x2a8] sm:$0xff]  ;;  %v601_v2 = vld [vmem:[%s6582_s0 + $0x2b0] sm:$0xff] }
  0x44   :  { %v851_v63 = vadd.f32 %v599_v61, %v95_v60  ;;  %1353 = vst [vmem:[%s6584_s2 + $0x290] sm:$0xff] %v849_v58  ;;  %1354 = vst [vmem:[%s6584_s2 + $0x298] sm:$0xff] %v850_v59  ;;  %v852_v3 = vadd.f32 %v600_v0, %v96_v62  ;;  %v853_v4 = vadd.f32 %v601_v2, %v97_v1  ;;  %v98_v5 = vld [vmem:[%s6583_s1 + $0x2b8] sm:$0xff]  ;;  %v99_v7 = vld [vmem:[%s6583_s1 + $0x2c0] sm:$0xff] }
  0x45   :  { %v602_v6 = vld [vmem:[%s6582_s0 + $0x2b8] sm:$0xff]  ;;  %v603_v9 = vld [vmem:[%s6582_s0 + $0x2c0] sm:$0xff]  ;;  %v100_v10 = vld [vmem:[%s6583_s1 + $0x2c8] sm:$0xff] }
  0x46   :  { %1355 = vst [vmem:[%s6584_s2 + $0x2a0] sm:$0xff] %v851_v63  ;;  %v854_v8 = vadd.f32 %v602_v6, %v98_v5  ;;  %v604_v11 = vld [vmem:[%s6582_s0 + $0x2c8] sm:$0xff]  ;;  %1356 = vst [vmem:[%s6584_s2 + $0x2a8] sm:$0xff] %v852_v3  ;;  %v855_v12 = vadd.f32 %v603_v9, %v99_v7  ;;  %v101_v14 = vld [vmem:[%s6583_s1 + $0x2d0] sm:$0xff] }
  0x47   :  { %1357 = vst [vmem:[%s6584_s2 + $0x2b0] sm:$0xff] %v853_v4  ;;  %v856_v13 = vadd.f32 %v604_v11, %v100_v10  ;;  %v605_v15 = vld [vmem:[%s6582_s0 + $0x2d0] sm:$0xff]  ;;  %v102_v16 = vld [vmem:[%s6583_s1 + $0x2d8] sm:$0xff]  ;;  %v103_v19 = vld [vmem:[%s6583_s1 + $0x2e0] sm:$0xff] }
  0x48   :  { %1358 = vst [vmem:[%s6584_s2 + $0x2b8] sm:$0xff] %v854_v8  ;;  %v857_v17 = vadd.f32 %v605_v15, %v101_v14  ;;  %v606_v18 = vld [vmem:[%s6582_s0 + $0x2d8] sm:$0xff]  ;;  %v607_v20 = vld [vmem:[%s6582_s0 + $0x2e0] sm:$0xff]  ;;  %1359 = vst [vmem:[%s6584_s2 + $0x2c0] sm:$0xff] %v855_v12 }
  0x49   :  { %1360 = vst [vmem:[%s6584_s2 + $0x2c8] sm:$0xff] %v856_v13  ;;  %v858_v21 = vadd.f32 %v606_v18, %v102_v16  ;;  %v859_v22 = vadd.f32 %v607_v20, %v103_v19  ;;  %v104_v23 = vld [vmem:[%s6583_s1 + $0x2e8] sm:$0xff]  ;;  %v105_v25 = vld [vmem:[%s6583_s1 + $0x2f0] sm:$0xff]  ;;  %v106_v28 = vld [vmem:[%s6583_s1 + $0x2f8] sm:$0xff] }
  0x4a   :  { %v608_v24 = vld [vmem:[%s6582_s0 + $0x2e8] sm:$0xff]  ;;  %1361 = vst [vmem:[%s6584_s2 + $0x2d0] sm:$0xff] %v857_v17  ;;  %v609_v27 = vld [vmem:[%s6582_s0 + $0x2f0] sm:$0xff]  ;;  %v610_v29 = vld [vmem:[%s6582_s0 + $0x2f8] sm:$0xff] }
  0x4b   :  { %v860_v26 = vadd.f32 %v608_v24, %v104_v23  ;;  %1362 = vst [vmem:[%s6584_s2 + $0x2d8] sm:$0xff] %v858_v21  ;;  %1363 = vst [vmem:[%s6584_s2 + $0x2e0] sm:$0xff] %v859_v22  ;;  %v861_v30 = vadd.f32 %v609_v27, %v105_v25  ;;  %v862_v31 = vadd.f32 %v610_v29, %v106_v28  ;;  %v107_v32 = vld [vmem:[%s6583_s1 + $0x300] sm:$0xff]  ;;  %v108_v34 = vld [vmem:[%s6583_s1 + $0x308] sm:$0xff] }
  0x4c   :  { %v611_v33 = vld [vmem:[%s6582_s0 + $0x300] sm:$0xff]  ;;  %v612_v36 = vld [vmem:[%s6582_s0 + $0x308] sm:$0xff]  ;;  %v109_v37 = vld [vmem:[%s6583_s1 + $0x310] sm:$0xff] }
  0x4d   :  { %1364 = vst [vmem:[%s6584_s2 + $0x2e8] sm:$0xff] %v860_v26  ;;  %v863_v35 = vadd.f32 %v611_v33, %v107_v32  ;;  %v613_v38 = vld [vmem:[%s6582_s0 + $0x310] sm:$0xff]  ;;  %1365 = vst [vmem:[%s6584_s2 + $0x2f0] sm:$0xff] %v861_v30  ;;  %v864_v39 = vadd.f32 %v612_v36, %v108_v34  ;;  %v110_v41 = vld [vmem:[%s6583_s1 + $0x318] sm:$0xff] }
  0x4e   :  { %1366 = vst [vmem:[%s6584_s2 + $0x2f8] sm:$0xff] %v862_v31  ;;  %v865_v40 = vadd.f32 %v613_v38, %v109_v37  ;;  %v614_v42 = vld [vmem:[%s6582_s0 + $0x318] sm:$0xff]  ;;  %v111_v43 = vld [vmem:[%s6583_s1 + $0x320] sm:$0xff]  ;;  %v112_v46 = vld [vmem:[%s6583_s1 + $0x328] sm:$0xff] }
  0x4f   :  { %1367 = vst [vmem:[%s6584_s2 + $0x300] sm:$0xff] %v863_v35  ;;  %v866_v44 = vadd.f32 %v614_v42, %v110_v41  ;;  %v615_v45 = vld [vmem:[%s6582_s0 + $0x320] sm:$0xff]  ;;  %v616_v47 = vld [vmem:[%s6582_s0 + $0x328] sm:$0xff]  ;;  %1368 = vst [vmem:[%s6584_s2 + $0x308] sm:$0xff] %v864_v39 }
  0x50   :  { %1369 = vst [vmem:[%s6584_s2 + $0x310] sm:$0xff] %v865_v40  ;;  %v867_v48 = vadd.f32 %v615_v45, %v111_v43  ;;  %v868_v49 = vadd.f32 %v616_v47, %v112_v46  ;;  %v113_v50 = vld [vmem:[%s6583_s1 + $0x330] sm:$0xff]  ;;  %v114_v52 = vld [vmem:[%s6583_s1 + $0x338] sm:$0xff]  ;;  %v115_v55 = vld [vmem:[%s6583_s1 + $0x340] sm:$0xff] }
  0x51   :  { %v617_v51 = vld [vmem:[%s6582_s0 + $0x330] sm:$0xff]  ;;  %1370 = vst [vmem:[%s6584_s2 + $0x318] sm:$0xff] %v866_v44  ;;  %v618_v54 = vld [vmem:[%s6582_s0 + $0x338] sm:$0xff]  ;;  %v619_v56 = vld [vmem:[%s6582_s0 + $0x340] sm:$0xff] }
  0x52   :  { %v869_v53 = vadd.f32 %v617_v51, %v113_v50  ;;  %1371 = vst [vmem:[%s6584_s2 + $0x320] sm:$0xff] %v867_v48  ;;  %1372 = vst [vmem:[%s6584_s2 + $0x328] sm:$0xff] %v868_v49  ;;  %v870_v57 = vadd.f32 %v618_v54, %v114_v52  ;;  %v871_v58 = vadd.f32 %v619_v56, %v115_v55  ;;  %v116_v59 = vld [vmem:[%s6583_s1 + $0x348] sm:$0xff]  ;;  %v117_v61 = vld [vmem:[%s6583_s1 + $0x350] sm:$0xff] }
  0x53   :  { %v620_v60 = vld [vmem:[%s6582_s0 + $0x348] sm:$0xff]  ;;  %v621_v63 = vld [vmem:[%s6582_s0 + $0x350] sm:$0xff]  ;;  %v118_v0 = vld [vmem:[%s6583_s1 + $0x358] sm:$0xff] }
  0x54   :  { %1373 = vst [vmem:[%s6584_s2 + $0x330] sm:$0xff] %v869_v53  ;;  %v872_v62 = vadd.f32 %v620_v60, %v116_v59  ;;  %v622_v1 = vld [vmem:[%s6582_s0 + $0x358] sm:$0xff]  ;;  %1374 = vst [vmem:[%s6584_s2 + $0x338] sm:$0xff] %v870_v57  ;;  %v873_v2 = vadd.f32 %v621_v63, %v117_v61  ;;  %v119_v4 = vld [vmem:[%s6583_s1 + $0x360] sm:$0xff] }
  0x55   :  { %1375 = vst [vmem:[%s6584_s2 + $0x340] sm:$0xff] %v871_v58  ;;  %v874_v3 = vadd.f32 %v622_v1, %v118_v0  ;;  %v623_v5 = vld [vmem:[%s6582_s0 + $0x360] sm:$0xff]  ;;  %v120_v6 = vld [vmem:[%s6583_s1 + $0x368] sm:$0xff]  ;;  %v121_v9 = vld [vmem:[%s6583_s1 + $0x370] sm:$0xff] }
  0x56   :  { %1376 = vst [vmem:[%s6584_s2 + $0x348] sm:$0xff] %v872_v62  ;;  %v875_v7 = vadd.f32 %v623_v5, %v119_v4  ;;  %v624_v8 = vld [vmem:[%s6582_s0 + $0x368] sm:$0xff]  ;;  %v625_v10 = vld [vmem:[%s6582_s0 + $0x370] sm:$0xff]  ;;  %1377 = vst [vmem:[%s6584_s2 + $0x350] sm:$0xff] %v873_v2 }
  0x57   :  { %1378 = vst [vmem:[%s6584_s2 + $0x358] sm:$0xff] %v874_v3  ;;  %v876_v11 = vadd.f32 %v624_v8, %v120_v6  ;;  %v877_v12 = vadd.f32 %v625_v10, %v121_v9  ;;  %v122_v13 = vld [vmem:[%s6583_s1 + $0x378] sm:$0xff]  ;;  %v123_v15 = vld [vmem:[%s6583_s1 + $0x380] sm:$0xff]  ;;  %v124_v18 = vld [vmem:[%s6583_s1 + $0x388] sm:$0xff] }
  0x58   :  { %v626_v14 = vld [vmem:[%s6582_s0 + $0x378] sm:$0xff]  ;;  %1379 = vst [vmem:[%s6584_s2 + $0x360] sm:$0xff] %v875_v7  ;;  %v627_v17 = vld [vmem:[%s6582_s0 + $0x380] sm:$0xff]  ;;  %v628_v19 = vld [vmem:[%s6582_s0 + $0x388] sm:$0xff] }
  0x59   :  { %v878_v16 = vadd.f32 %v626_v14, %v122_v13  ;;  %1380 = vst [vmem:[%s6584_s2 + $0x368] sm:$0xff] %v876_v11  ;;  %1381 = vst [vmem:[%s6584_s2 + $0x370] sm:$0xff] %v877_v12  ;;  %v879_v20 = vadd.f32 %v627_v17, %v123_v15  ;;  %v880_v21 = vadd.f32 %v628_v19, %v124_v18  ;;  %v125_v22 = vld [vmem:[%s6583_s1 + $0x390] sm:$0xff]  ;;  %v126_v24 = vld [vmem:[%s6583_s1 + $0x398] sm:$0xff] }
  0x5a   :  { %v629_v23 = vld [vmem:[%s6582_s0 + $0x390] sm:$0xff]  ;;  %v630_v26 = vld [vmem:[%s6582_s0 + $0x398] sm:$0xff]  ;;  %v127_v27 = vld [vmem:[%s6583_s1 + $0x3a0] sm:$0xff] }
  0x5b   :  { %1382 = vst [vmem:[%s6584_s2 + $0x378] sm:$0xff] %v878_v16  ;;  %v881_v25 = vadd.f32 %v629_v23, %v125_v22  ;;  %v631_v28 = vld [vmem:[%s6582_s0 + $0x3a0] sm:$0xff]  ;;  %1383 = vst [vmem:[%s6584_s2 + $0x380] sm:$0xff] %v879_v20  ;;  %v882_v29 = vadd.f32 %v630_v26, %v126_v24  ;;  %v128_v31 = vld [vmem:[%s6583_s1 + $0x3a8] sm:$0xff] }
  0x5c   :  { %1384 = vst [vmem:[%s6584_s2 + $0x388] sm:$0xff] %v880_v21  ;;  %v883_v30 = vadd.f32 %v631_v28, %v127_v27  ;;  %v632_v32 = vld [vmem:[%s6582_s0 + $0x3a8] sm:$0xff]  ;;  %v129_v33 = vld [vmem:[%s6583_s1 + $0x3b0] sm:$0xff]  ;;  %v130_v36 = vld [vmem:[%s6583_s1 + $0x3b8] sm:$0xff] }
  0x5d   :  { %1385 = vst [vmem:[%s6584_s2 + $0x390] sm:$0xff] %v881_v25  ;;  %v884_v34 = vadd.f32 %v632_v32, %v128_v31  ;;  %v633_v35 = vld [vmem:[%s6582_s0 + $0x3b0] sm:$0xff]  ;;  %v634_v37 = vld [vmem:[%s6582_s0 + $0x3b8] sm:$0xff]  ;;  %1386 = vst [vmem:[%s6584_s2 + $0x398] sm:$0xff] %v882_v29 }
  0x5e   :  { %1387 = vst [vmem:[%s6584_s2 + $0x3a0] sm:$0xff] %v883_v30  ;;  %v885_v38 = vadd.f32 %v633_v35, %v129_v33  ;;  %v886_v39 = vadd.f32 %v634_v37, %v130_v36  ;;  %v131_v40 = vld [vmem:[%s6583_s1 + $0x3c0] sm:$0xff]  ;;  %v132_v42 = vld [vmem:[%s6583_s1 + $0x3c8] sm:$0xff]  ;;  %v133_v45 = vld [vmem:[%s6583_s1 + $0x3d0] sm:$0xff] }
  0x5f   :  { %v635_v41 = vld [vmem:[%s6582_s0 + $0x3c0] sm:$0xff]  ;;  %1388 = vst [vmem:[%s6584_s2 + $0x3a8] sm:$0xff] %v884_v34  ;;  %v636_v44 = vld [vmem:[%s6582_s0 + $0x3c8] sm:$0xff]  ;;  %v637_v46 = vld [vmem:[%s6582_s0 + $0x3d0] sm:$0xff] }
  0x60   :  { %v887_v43 = vadd.f32 %v635_v41, %v131_v40  ;;  %1389 = vst [vmem:[%s6584_s2 + $0x3b0] sm:$0xff] %v885_v38  ;;  %1390 = vst [vmem:[%s6584_s2 + $0x3b8] sm:$0xff] %v886_v39  ;;  %v888_v47 = vadd.f32 %v636_v44, %v132_v42  ;;  %v889_v48 = vadd.f32 %v637_v46, %v133_v45  ;;  %v134_v49 = vld [vmem:[%s6583_s1 + $0x3d8] sm:$0xff]  ;;  %v135_v51 = vld [vmem:[%s6583_s1 + $0x3e0] sm:$0xff] }
  0x61   :  { %v638_v50 = vld [vmem:[%s6582_s0 + $0x3d8] sm:$0xff]  ;;  %v639_v53 = vld [vmem:[%s6582_s0 + $0x3e0] sm:$0xff]  ;;  %v136_v54 = vld [vmem:[%s6583_s1 + $0x3e8] sm:$0xff] }
  0x62   :  { %1391 = vst [vmem:[%s6584_s2 + $0x3c0] sm:$0xff] %v887_v43  ;;  %v890_v52 = vadd.f32 %v638_v50, %v134_v49  ;;  %v640_v55 = vld [vmem:[%s6582_s0 + $0x3e8] sm:$0xff]  ;;  %1392 = vst [vmem:[%s6584_s2 + $0x3c8] sm:$0xff] %v888_v47  ;;  %v891_v56 = vadd.f32 %v639_v53, %v135_v51  ;;  %v137_v58 = vld [vmem:[%s6583_s1 + $0x3f0] sm:$0xff] }
  0x63   :  { %1393 = vst [vmem:[%s6584_s2 + $0x3d0] sm:$0xff] %v889_v48  ;;  %v892_v57 = vadd.f32 %v640_v55, %v136_v54  ;;  %v641_v59 = vld [vmem:[%s6582_s0 + $0x3f0] sm:$0xff]  ;;  %v138_v60 = vld [vmem:[%s6583_s1 + $0x3f8] sm:$0xff]  ;;  %v139_v63 = vld [vmem:[%s6583_s1 + $0x400] sm:$0xff] }
  0x64   :  { %1394 = vst [vmem:[%s6584_s2 + $0x3d8] sm:$0xff] %v890_v52  ;;  %v893_v61 = vadd.f32 %v641_v59, %v137_v58  ;;  %v642_v62 = vld [vmem:[%s6582_s0 + $0x3f8] sm:$0xff]  ;;  %v643_v0 = vld [vmem:[%s6582_s0 + $0x400] sm:$0xff]  ;;  %1395 = vst [vmem:[%s6584_s2 + $0x3e0] sm:$0xff] %v891_v56 }
  0x65   :  { %1396 = vst [vmem:[%s6584_s2 + $0x3e8] sm:$0xff] %v892_v57  ;;  %v894_v1 = vadd.f32 %v642_v62, %v138_v60  ;;  %v895_v2 = vadd.f32 %v643_v0, %v139_v63  ;;  %v140_v3 = vld [vmem:[%s6583_s1 + $0x408] sm:$0xff]  ;;  %v141_v5 = vld [vmem:[%s6583_s1 + $0x410] sm:$0xff]  ;;  %v142_v8 = vld [vmem:[%s6583_s1 + $0x418] sm:$0xff] }
  0x66   :  { %v644_v4 = vld [vmem:[%s6582_s0 + $0x408] sm:$0xff]  ;;  %1397 = vst [vmem:[%s6584_s2 + $0x3f0] sm:$0xff] %v893_v61  ;;  %v645_v7 = vld [vmem:[%s6582_s0 + $0x410] sm:$0xff]  ;;  %v646_v9 = vld [vmem:[%s6582_s0 + $0x418] sm:$0xff] }
  0x67   :  { %v896_v6 = vadd.f32 %v644_v4, %v140_v3  ;;  %1398 = vst [vmem:[%s6584_s2 + $0x3f8] sm:$0xff] %v894_v1  ;;  %1399 = vst [vmem:[%s6584_s2 + $0x400] sm:$0xff] %v895_v2  ;;  %v897_v10 = vadd.f32 %v645_v7, %v141_v5  ;;  %v898_v11 = vadd.f32 %v646_v9, %v142_v8  ;;  %v143_v12 = vld [vmem:[%s6583_s1 + $0x420] sm:$0xff]  ;;  %v144_v14 = vld [vmem:[%s6583_s1 + $0x428] sm:$0xff] }
  0x68   :  { %v647_v13 = vld [vmem:[%s6582_s0 + $0x420] sm:$0xff]  ;;  %v648_v16 = vld [vmem:[%s6582_s0 + $0x428] sm:$0xff]  ;;  %v145_v17 = vld [vmem:[%s6583_s1 + $0x430] sm:$0xff] }
  0x69   :  { %1400 = vst [vmem:[%s6584_s2 + $0x408] sm:$0xff] %v896_v6  ;;  %v899_v15 = vadd.f32 %v647_v13, %v143_v12  ;;  %v649_v18 = vld [vmem:[%s6582_s0 + $0x430] sm:$0xff]  ;;  %1401 = vst [vmem:[%s6584_s2 + $0x410] sm:$0xff] %v897_v10  ;;  %v900_v19 = vadd.f32 %v648_v16, %v144_v14  ;;  %v146_v21 = vld [vmem:[%s6583_s1 + $0x438] sm:$0xff] }
  0x6a   :  { %1402 = vst [vmem:[%s6584_s2 + $0x418] sm:$0xff] %v898_v11  ;;  %v901_v20 = vadd.f32 %v649_v18, %v145_v17  ;;  %v650_v22 = vld [vmem:[%s6582_s0 + $0x438] sm:$0xff]  ;;  %v147_v23 = vld [vmem:[%s6583_s1 + $0x440] sm:$0xff]  ;;  %v148_v26 = vld [vmem:[%s6583_s1 + $0x448] sm:$0xff] }
  0x6b   :  { %1403 = vst [vmem:[%s6584_s2 + $0x420] sm:$0xff] %v899_v15  ;;  %v902_v24 = vadd.f32 %v650_v22, %v146_v21  ;;  %v651_v25 = vld [vmem:[%s6582_s0 + $0x440] sm:$0xff]  ;;  %v652_v27 = vld [vmem:[%s6582_s0 + $0x448] sm:$0xff]  ;;  %1404 = vst [vmem:[%s6584_s2 + $0x428] sm:$0xff] %v900_v19 }
  0x6c   :  { %1405 = vst [vmem:[%s6584_s2 + $0x430] sm:$0xff] %v901_v20  ;;  %v903_v28 = vadd.f32 %v651_v25, %v147_v23  ;;  %v904_v29 = vadd.f32 %v652_v27, %v148_v26  ;;  %v149_v30 = vld [vmem:[%s6583_s1 + $0x450] sm:$0xff]  ;;  %v150_v32 = vld [vmem:[%s6583_s1 + $0x458] sm:$0xff]  ;;  %v151_v35 = vld [vmem:[%s6583_s1 + $0x460] sm:$0xff] }
  0x6d   :  { %v653_v31 = vld [vmem:[%s6582_s0 + $0x450] sm:$0xff]  ;;  %1406 = vst [vmem:[%s6584_s2 + $0x438] sm:$0xff] %v902_v24  ;;  %v654_v34 = vld [vmem:[%s6582_s0 + $0x458] sm:$0xff]  ;;  %v655_v36 = vld [vmem:[%s6582_s0 + $0x460] sm:$0xff] }
  0x6e   :  { %v905_v33 = vadd.f32 %v653_v31, %v149_v30  ;;  %1407 = vst [vmem:[%s6584_s2 + $0x440] sm:$0xff] %v903_v28  ;;  %1408 = vst [vmem:[%s6584_s2 + $0x448] sm:$0xff] %v904_v29  ;;  %v906_v37 = vadd.f32 %v654_v34, %v150_v32  ;;  %v907_v38 = vadd.f32 %v655_v36, %v151_v35  ;;  %v152_v39 = vld [vmem:[%s6583_s1 + $0x468] sm:$0xff]  ;;  %v153_v41 = vld [vmem:[%s6583_s1 + $0x470] sm:$0xff] }
  0x6f   :  { %v656_v40 = vld [vmem:[%s6582_s0 + $0x468] sm:$0xff]  ;;  %v657_v43 = vld [vmem:[%s6582_s0 + $0x470] sm:$0xff]  ;;  %v154_v44 = vld [vmem:[%s6583_s1 + $0x478] sm:$0xff] }
  0x70   :  { %1409 = vst [vmem:[%s6584_s2 + $0x450] sm:$0xff] %v905_v33  ;;  %v908_v42 = vadd.f32 %v656_v40, %v152_v39  ;;  %v658_v45 = vld [vmem:[%s6582_s0 + $0x478] sm:$0xff]  ;;  %1410 = vst [vmem:[%s6584_s2 + $0x458] sm:$0xff] %v906_v37  ;;  %v909_v46 = vadd.f32 %v657_v43, %v153_v41  ;;  %v155_v48 = vld [vmem:[%s6583_s1 + $0x480] sm:$0xff] }
  0x71   :  { %1411 = vst [vmem:[%s6584_s2 + $0x460] sm:$0xff] %v907_v38  ;;  %v910_v47 = vadd.f32 %v658_v45, %v154_v44  ;;  %v659_v49 = vld [vmem:[%s6582_s0 + $0x480] sm:$0xff]  ;;  %v156_v50 = vld [vmem:[%s6583_s1 + $0x488] sm:$0xff]  ;;  %v157_v53 = vld [vmem:[%s6583_s1 + $0x490] sm:$0xff] }
  0x72   :  { %1412 = vst [vmem:[%s6584_s2 + $0x468] sm:$0xff] %v908_v42  ;;  %v911_v51 = vadd.f32 %v659_v49, %v155_v48  ;;  %v660_v52 = vld [vmem:[%s6582_s0 + $0x488] sm:$0xff]  ;;  %v661_v54 = vld [vmem:[%s6582_s0 + $0x490] sm:$0xff]  ;;  %1413 = vst [vmem:[%s6584_s2 + $0x470] sm:$0xff] %v909_v46 }
  0x73   :  { %1414 = vst [vmem:[%s6584_s2 + $0x478] sm:$0xff] %v910_v47  ;;  %v912_v55 = vadd.f32 %v660_v52, %v156_v50  ;;  %v913_v56 = vadd.f32 %v661_v54, %v157_v53  ;;  %v158_v57 = vld [vmem:[%s6583_s1 + $0x498] sm:$0xff]  ;;  %v159_v59 = vld [vmem:[%s6583_s1 + $0x4a0] sm:$0xff]  ;;  %v160_v62 = vld [vmem:[%s6583_s1 + $0x4a8] sm:$0xff] }
  0x74   :  { %v662_v58 = vld [vmem:[%s6582_s0 + $0x498] sm:$0xff]  ;;  %1415 = vst [vmem:[%s6584_s2 + $0x480] sm:$0xff] %v911_v51  ;;  %v663_v61 = vld [vmem:[%s6582_s0 + $0x4a0] sm:$0xff]  ;;  %v664_v63 = vld [vmem:[%s6582_s0 + $0x4a8] sm:$0xff] }
  0x75   :  { %v914_v60 = vadd.f32 %v662_v58, %v158_v57  ;;  %1416 = vst [vmem:[%s6584_s2 + $0x488] sm:$0xff] %v912_v55  ;;  %1417 = vst [vmem:[%s6584_s2 + $0x490] sm:$0xff] %v913_v56  ;;  %v915_v0 = vadd.f32 %v663_v61, %v159_v59  ;;  %v916_v1 = vadd.f32 %v664_v63, %v160_v62  ;;  %v161_v2 = vld [vmem:[%s6583_s1 + $0x4b0] sm:$0xff]  ;;  %v162_v4 = vld [vmem:[%s6583_s1 + $0x4b8] sm:$0xff] }
  0x76   :  { %v665_v3 = vld [vmem:[%s6582_s0 + $0x4b0] sm:$0xff]  ;;  %v666_v6 = vld [vmem:[%s6582_s0 + $0x4b8] sm:$0xff]  ;;  %v163_v7 = vld [vmem:[%s6583_s1 + $0x4c0] sm:$0xff] }
  0x77   :  { %1418 = vst [vmem:[%s6584_s2 + $0x498] sm:$0xff] %v914_v60  ;;  %v917_v5 = vadd.f32 %v665_v3, %v161_v2  ;;  %v667_v8 = vld [vmem:[%s6582_s0 + $0x4c0] sm:$0xff]  ;;  %1419 = vst [vmem:[%s6584_s2 + $0x4a0] sm:$0xff] %v915_v0  ;;  %v918_v9 = vadd.f32 %v666_v6, %v162_v4  ;;  %v164_v11 = vld [vmem:[%s6583_s1 + $0x4c8] sm:$0xff] }
  0x78   :  { %1420 = vst [vmem:[%s6584_s2 + $0x4a8] sm:$0xff] %v916_v1  ;;  %v919_v10 = vadd.f32 %v667_v8, %v163_v7  ;;  %v668_v12 = vld [vmem:[%s6582_s0 + $0x4c8] sm:$0xff]  ;;  %v165_v13 = vld [vmem:[%s6583_s1 + $0x4d0] sm:$0xff]  ;;  %v166_v16 = vld [vmem:[%s6583_s1 + $0x4d8] sm:$0xff] }
  0x79   :  { %1421 = vst [vmem:[%s6584_s2 + $0x4b0] sm:$0xff] %v917_v5  ;;  %v920_v14 = vadd.f32 %v668_v12, %v164_v11  ;;  %v669_v15 = vld [vmem:[%s6582_s0 + $0x4d0] sm:$0xff]  ;;  %v670_v17 = vld [vmem:[%s6582_s0 + $0x4d8] sm:$0xff]  ;;  %1422 = vst [vmem:[%s6584_s2 + $0x4b8] sm:$0xff] %v918_v9 }
  0x7a   :  { %1423 = vst [vmem:[%s6584_s2 + $0x4c0] sm:$0xff] %v919_v10  ;;  %v921_v18 = vadd.f32 %v669_v15, %v165_v13  ;;  %v922_v19 = vadd.f32 %v670_v17, %v166_v16  ;;  %v167_v20 = vld [vmem:[%s6583_s1 + $0x4e0] sm:$0xff]  ;;  %v168_v22 = vld [vmem:[%s6583_s1 + $0x4e8] sm:$0xff]  ;;  %v169_v25 = vld [vmem:[%s6583_s1 + $0x4f0] sm:$0xff] }
  0x7b   :  { %v671_v21 = vld [vmem:[%s6582_s0 + $0x4e0] sm:$0xff]  ;;  %1424 = vst [vmem:[%s6584_s2 + $0x4c8] sm:$0xff] %v920_v14  ;;  %v672_v24 = vld [vmem:[%s6582_s0 + $0x4e8] sm:$0xff]  ;;  %v673_v26 = vld [vmem:[%s6582_s0 + $0x4f0] sm:$0xff] }
  0x7c   :  { %v923_v23 = vadd.f32 %v671_v21, %v167_v20  ;;  %1425 = vst [vmem:[%s6584_s2 + $0x4d0] sm:$0xff] %v921_v18  ;;  %1426 = vst [vmem:[%s6584_s2 + $0x4d8] sm:$0xff] %v922_v19  ;;  %v924_v27 = vadd.f32 %v672_v24, %v168_v22  ;;  %v925_v28 = vadd.f32 %v673_v26, %v169_v25  ;;  %v170_v29 = vld [vmem:[%s6583_s1 + $0x4f8] sm:$0xff]  ;;  %v171_v31 = vld [vmem:[%s6583_s1 + $0x500] sm:$0xff] }
  0x7d   :  { %v674_v30 = vld [vmem:[%s6582_s0 + $0x4f8] sm:$0xff]  ;;  %v675_v33 = vld [vmem:[%s6582_s0 + $0x500] sm:$0xff]  ;;  %v172_v34 = vld [vmem:[%s6583_s1 + $0x508] sm:$0xff] }
  0x7e   :  { %1427 = vst [vmem:[%s6584_s2 + $0x4e0] sm:$0xff] %v923_v23  ;;  %v926_v32 = vadd.f32 %v674_v30, %v170_v29  ;;  %v676_v35 = vld [vmem:[%s6582_s0 + $0x508] sm:$0xff]  ;;  %1428 = vst [vmem:[%s6584_s2 + $0x4e8] sm:$0xff] %v924_v27  ;;  %v927_v36 = vadd.f32 %v675_v33, %v171_v31  ;;  %v173_v38 = vld [vmem:[%s6583_s1 + $0x510] sm:$0xff] }
  0x7f   :  { %1429 = vst [vmem:[%s6584_s2 + $0x4f0] sm:$0xff] %v925_v28  ;;  %v928_v37 = vadd.f32 %v676_v35, %v172_v34  ;;  %v677_v39 = vld [vmem:[%s6582_s0 + $0x510] sm:$0xff]  ;;  %v174_v40 = vld [vmem:[%s6583_s1 + $0x518] sm:$0xff]  ;;  %v175_v43 = vld [vmem:[%s6583_s1 + $0x520] sm:$0xff] }
  0x80   :  { %1430 = vst [vmem:[%s6584_s2 + $0x4f8] sm:$0xff] %v926_v32  ;;  %v929_v41 = vadd.f32 %v677_v39, %v173_v38  ;;  %v678_v42 = vld [vmem:[%s6582_s0 + $0x518] sm:$0xff]  ;;  %v679_v44 = vld [vmem:[%s6582_s0 + $0x520] sm:$0xff]  ;;  %1431 = vst [vmem:[%s6584_s2 + $0x500] sm:$0xff] %v927_v36 }
  0x81   :  { %1432 = vst [vmem:[%s6584_s2 + $0x508] sm:$0xff] %v928_v37  ;;  %v930_v45 = vadd.f32 %v678_v42, %v174_v40  ;;  %v931_v46 = vadd.f32 %v679_v44, %v175_v43  ;;  %v176_v47 = vld [vmem:[%s6583_s1 + $0x528] sm:$0xff]  ;;  %v177_v49 = vld [vmem:[%s6583_s1 + $0x530] sm:$0xff]  ;;  %v178_v52 = vld [vmem:[%s6583_s1 + $0x538] sm:$0xff] }
  0x82   :  { %v680_v48 = vld [vmem:[%s6582_s0 + $0x528] sm:$0xff]  ;;  %1433 = vst [vmem:[%s6584_s2 + $0x510] sm:$0xff] %v929_v41  ;;  %v681_v51 = vld [vmem:[%s6582_s0 + $0x530] sm:$0xff]  ;;  %v682_v53 = vld [vmem:[%s6582_s0 + $0x538] sm:$0xff] }
  0x83   :  { %v932_v50 = vadd.f32 %v680_v48, %v176_v47  ;;  %1434 = vst [vmem:[%s6584_s2 + $0x518] sm:$0xff] %v930_v45  ;;  %1435 = vst [vmem:[%s6584_s2 + $0x520] sm:$0xff] %v931_v46  ;;  %v933_v54 = vadd.f32 %v681_v51, %v177_v49  ;;  %v934_v55 = vadd.f32 %v682_v53, %v178_v52  ;;  %v179_v56 = vld [vmem:[%s6583_s1 + $0x540] sm:$0xff]  ;;  %v180_v58 = vld [vmem:[%s6583_s1 + $0x548] sm:$0xff] }
  0x84   :  { %v683_v57 = vld [vmem:[%s6582_s0 + $0x540] sm:$0xff]  ;;  %v684_v60 = vld [vmem:[%s6582_s0 + $0x548] sm:$0xff]  ;;  %v181_v61 = vld [vmem:[%s6583_s1 + $0x550] sm:$0xff] }
  0x85   :  { %1436 = vst [vmem:[%s6584_s2 + $0x528] sm:$0xff] %v932_v50  ;;  %v935_v59 = vadd.f32 %v683_v57, %v179_v56  ;;  %v685_v62 = vld [vmem:[%s6582_s0 + $0x550] sm:$0xff]  ;;  %1437 = vst [vmem:[%s6584_s2 + $0x530] sm:$0xff] %v933_v54  ;;  %v936_v63 = vadd.f32 %v684_v60, %v180_v58  ;;  %v182_v1 = vld [vmem:[%s6583_s1 + $0x558] sm:$0xff] }
  0x86   :  { %1438 = vst [vmem:[%s6584_s2 + $0x538] sm:$0xff] %v934_v55  ;;  %v937_v0 = vadd.f32 %v685_v62, %v181_v61  ;;  %v686_v2 = vld [vmem:[%s6582_s0 + $0x558] sm:$0xff]  ;;  %v183_v3 = vld [vmem:[%s6583_s1 + $0x560] sm:$0xff]  ;;  %v184_v6 = vld [vmem:[%s6583_s1 + $0x568] sm:$0xff] }
  0x87   :  { %1439 = vst [vmem:[%s6584_s2 + $0x540] sm:$0xff] %v935_v59  ;;  %v938_v4 = vadd.f32 %v686_v2, %v182_v1  ;;  %v687_v5 = vld [vmem:[%s6582_s0 + $0x560] sm:$0xff]  ;;  %v688_v7 = vld [vmem:[%s6582_s0 + $0x568] sm:$0xff]  ;;  %1440 = vst [vmem:[%s6584_s2 + $0x548] sm:$0xff] %v936_v63 }
  0x88   :  { %1441 = vst [vmem:[%s6584_s2 + $0x550] sm:$0xff] %v937_v0  ;;  %v939_v8 = vadd.f32 %v687_v5, %v183_v3  ;;  %v940_v9 = vadd.f32 %v688_v7, %v184_v6  ;;  %v185_v10 = vld [vmem:[%s6583_s1 + $0x570] sm:$0xff]  ;;  %v186_v12 = vld [vmem:[%s6583_s1 + $0x578] sm:$0xff]  ;;  %v187_v15 = vld [vmem:[%s6583_s1 + $0x580] sm:$0xff] }
  0x89   :  { %v689_v11 = vld [vmem:[%s6582_s0 + $0x570] sm:$0xff]  ;;  %1442 = vst [vmem:[%s6584_s2 + $0x558] sm:$0xff] %v938_v4  ;;  %v690_v14 = vld [vmem:[%s6582_s0 + $0x578] sm:$0xff]  ;;  %v691_v16 = vld [vmem:[%s6582_s0 + $0x580] sm:$0xff] }
  0x8a   :  { %v941_v13 = vadd.f32 %v689_v11, %v185_v10  ;;  %1443 = vst [vmem:[%s6584_s2 + $0x560] sm:$0xff] %v939_v8  ;;  %1444 = vst [vmem:[%s6584_s2 + $0x568] sm:$0xff] %v940_v9  ;;  %v942_v17 = vadd.f32 %v690_v14, %v186_v12  ;;  %v943_v18 = vadd.f32 %v691_v16, %v187_v15  ;;  %v188_v19 = vld [vmem:[%s6583_s1 + $0x588] sm:$0xff]  ;;  %v189_v21 = vld [vmem:[%s6583_s1 + $0x590] sm:$0xff] }
  0x8b   :  { %v692_v20 = vld [vmem:[%s6582_s0 + $0x588] sm:$0xff]  ;;  %v693_v23 = vld [vmem:[%s6582_s0 + $0x590] sm:$0xff]  ;;  %v190_v24 = vld [vmem:[%s6583_s1 + $0x598] sm:$0xff] }
  0x8c   :  { %1445 = vst [vmem:[%s6584_s2 + $0x570] sm:$0xff] %v941_v13  ;;  %v944_v22 = vadd.f32 %v692_v20, %v188_v19  ;;  %v694_v25 = vld [vmem:[%s6582_s0 + $0x598] sm:$0xff]  ;;  %1446 = vst [vmem:[%s6584_s2 + $0x578] sm:$0xff] %v942_v17  ;;  %v945_v26 = vadd.f32 %v693_v23, %v189_v21  ;;  %v191_v28 = vld [vmem:[%s6583_s1 + $0x5a0] sm:$0xff] }
  0x8d   :  { %1447 = vst [vmem:[%s6584_s2 + $0x580] sm:$0xff] %v943_v18  ;;  %v946_v27 = vadd.f32 %v694_v25, %v190_v24  ;;  %v695_v29 = vld [vmem:[%s6582_s0 + $0x5a0] sm:$0xff]  ;;  %v192_v30 = vld [vmem:[%s6583_s1 + $0x5a8] sm:$0xff]  ;;  %v193_v33 = vld [vmem:[%s6583_s1 + $0x5b0] sm:$0xff] }
  0x8e   :  { %1448 = vst [vmem:[%s6584_s2 + $0x588] sm:$0xff] %v944_v22  ;;  %v947_v31 = vadd.f32 %v695_v29, %v191_v28  ;;  %v696_v32 = vld [vmem:[%s6582_s0 + $0x5a8] sm:$0xff]  ;;  %v697_v34 = vld [vmem:[%s6582_s0 + $0x5b0] sm:$0xff]  ;;  %1449 = vst [vmem:[%s6584_s2 + $0x590] sm:$0xff] %v945_v26 }
  0x8f   :  { %1450 = vst [vmem:[%s6584_s2 + $0x598] sm:$0xff] %v946_v27  ;;  %v948_v35 = vadd.f32 %v696_v32, %v192_v30  ;;  %v949_v36 = vadd.f32 %v697_v34, %v193_v33  ;;  %v194_v37 = vld [vmem:[%s6583_s1 + $0x5b8] sm:$0xff]  ;;  %v195_v39 = vld [vmem:[%s6583_s1 + $0x5c0] sm:$0xff]  ;;  %v196_v42 = vld [vmem:[%s6583_s1 + $0x5c8] sm:$0xff] }
  0x90   :  { %v698_v38 = vld [vmem:[%s6582_s0 + $0x5b8] sm:$0xff]  ;;  %1451 = vst [vmem:[%s6584_s2 + $0x5a0] sm:$0xff] %v947_v31  ;;  %v699_v41 = vld [vmem:[%s6582_s0 + $0x5c0] sm:$0xff]  ;;  %v700_v43 = vld [vmem:[%s6582_s0 + $0x5c8] sm:$0xff] }
  0x91   :  { %v950_v40 = vadd.f32 %v698_v38, %v194_v37  ;;  %1452 = vst [vmem:[%s6584_s2 + $0x5a8] sm:$0xff] %v948_v35  ;;  %1453 = vst [vmem:[%s6584_s2 + $0x5b0] sm:$0xff] %v949_v36  ;;  %v951_v44 = vadd.f32 %v699_v41, %v195_v39  ;;  %v952_v45 = vadd.f32 %v700_v43, %v196_v42  ;;  %v197_v46 = vld [vmem:[%s6583_s1 + $0x5d0] sm:$0xff]  ;;  %v198_v48 = vld [vmem:[%s6583_s1 + $0x5d8] sm:$0xff] }
  0x92   :  { %v701_v47 = vld [vmem:[%s6582_s0 + $0x5d0] sm:$0xff]  ;;  %v702_v50 = vld [vmem:[%s6582_s0 + $0x5d8] sm:$0xff]  ;;  %v199_v51 = vld [vmem:[%s6583_s1 + $0x5e0] sm:$0xff] }
  0x93   :  { %1454 = vst [vmem:[%s6584_s2 + $0x5b8] sm:$0xff] %v950_v40  ;;  %v953_v49 = vadd.f32 %v701_v47, %v197_v46  ;;  %v703_v52 = vld [vmem:[%s6582_s0 + $0x5e0] sm:$0xff]  ;;  %1455 = vst [vmem:[%s6584_s2 + $0x5c0] sm:$0xff] %v951_v44  ;;  %v954_v53 = vadd.f32 %v702_v50, %v198_v48  ;;  %v200_v55 = vld [vmem:[%s6583_s1 + $0x5e8] sm:$0xff] }
  0x94   :  { %1456 = vst [vmem:[%s6584_s2 + $0x5c8] sm:$0xff] %v952_v45  ;;  %v955_v54 = vadd.f32 %v703_v52, %v199_v51  ;;  %v704_v56 = vld [vmem:[%s6582_s0 + $0x5e8] sm:$0xff]  ;;  %v201_v57 = vld [vmem:[%s6583_s1 + $0x5f0] sm:$0xff]  ;;  %v202_v60 = vld [vmem:[%s6583_s1 + $0x5f8] sm:$0xff] }
  0x95   :  { %1457 = vst [vmem:[%s6584_s2 + $0x5d0] sm:$0xff] %v953_v49  ;;  %v956_v58 = vadd.f32 %v704_v56, %v200_v55  ;;  %v705_v59 = vld [vmem:[%s6582_s0 + $0x5f0] sm:$0xff]  ;;  %v706_v61 = vld [vmem:[%s6582_s0 + $0x5f8] sm:$0xff]  ;;  %1458 = vst [vmem:[%s6584_s2 + $0x5d8] sm:$0xff] %v954_v53 }
  0x96   :  { %1459 = vst [vmem:[%s6584_s2 + $0x5e0] sm:$0xff] %v955_v54  ;;  %v957_v62 = vadd.f32 %v705_v59, %v201_v57  ;;  %v958_v63 = vadd.f32 %v706_v61, %v202_v60  ;;  %v203_v0 = vld [vmem:[%s6583_s1 + $0x600] sm:$0xff]  ;;  %v204_v2 = vld [vmem:[%s6583_s1 + $0x608] sm:$0xff]  ;;  %v205_v5 = vld [vmem:[%s6583_s1 + $0x610] sm:$0xff] }
  0x97   :  { %v707_v1 = vld [vmem:[%s6582_s0 + $0x600] sm:$0xff]  ;;  %1460 = vst [vmem:[%s6584_s2 + $0x5e8] sm:$0xff] %v956_v58  ;;  %v708_v4 = vld [vmem:[%s6582_s0 + $0x608] sm:$0xff]  ;;  %v709_v6 = vld [vmem:[%s6582_s0 + $0x610] sm:$0xff] }
  0x98   :  { %v959_v3 = vadd.f32 %v707_v1, %v203_v0  ;;  %1461 = vst [vmem:[%s6584_s2 + $0x5f0] sm:$0xff] %v957_v62  ;;  %1462 = vst [vmem:[%s6584_s2 + $0x5f8] sm:$0xff] %v958_v63  ;;  %v960_v7 = vadd.f32 %v708_v4, %v204_v2  ;;  %v961_v8 = vadd.f32 %v709_v6, %v205_v5  ;;  %v206_v9 = vld [vmem:[%s6583_s1 + $0x618] sm:$0xff]  ;;  %v207_v11 = vld [vmem:[%s6583_s1 + $0x620] sm:$0xff] }
  0x99   :  { %v710_v10 = vld [vmem:[%s6582_s0 + $0x618] sm:$0xff]  ;;  %v711_v13 = vld [vmem:[%s6582_s0 + $0x620] sm:$0xff]  ;;  %v208_v14 = vld [vmem:[%s6583_s1 + $0x628] sm:$0xff] }
  0x9a   :  { %1463 = vst [vmem:[%s6584_s2 + $0x600] sm:$0xff] %v959_v3  ;;  %v962_v12 = vadd.f32 %v710_v10, %v206_v9  ;;  %v712_v15 = vld [vmem:[%s6582_s0 + $0x628] sm:$0xff]  ;;  %1464 = vst [vmem:[%s6584_s2 + $0x608] sm:$0xff] %v960_v7  ;;  %v963_v16 = vadd.f32 %v711_v13, %v207_v11  ;;  %v209_v18 = vld [vmem:[%s6583_s1 + $0x630] sm:$0xff] }
  0x9b   :  { %1465 = vst [vmem:[%s6584_s2 + $0x610] sm:$0xff] %v961_v8  ;;  %v964_v17 = vadd.f32 %v712_v15, %v208_v14  ;;  %v713_v19 = vld [vmem:[%s6582_s0 + $0x630] sm:$0xff]  ;;  %v210_v20 = vld [vmem:[%s6583_s1 + $0x638] sm:$0xff]  ;;  %v211_v23 = vld [vmem:[%s6583_s1 + $0x640] sm:$0xff] }
  0x9c   :  { %1466 = vst [vmem:[%s6584_s2 + $0x618] sm:$0xff] %v962_v12  ;;  %v965_v21 = vadd.f32 %v713_v19, %v209_v18  ;;  %v714_v22 = vld [vmem:[%s6582_s0 + $0x638] sm:$0xff]  ;;  %v715_v24 = vld [vmem:[%s6582_s0 + $0x640] sm:$0xff]  ;;  %1467 = vst [vmem:[%s6584_s2 + $0x620] sm:$0xff] %v963_v16 }
  0x9d   :  { %1468 = vst [vmem:[%s6584_s2 + $0x628] sm:$0xff] %v964_v17  ;;  %v966_v25 = vadd.f32 %v714_v22, %v210_v20  ;;  %v967_v26 = vadd.f32 %v715_v24, %v211_v23  ;;  %v212_v27 = vld [vmem:[%s6583_s1 + $0x648] sm:$0xff]  ;;  %v213_v29 = vld [vmem:[%s6583_s1 + $0x650] sm:$0xff]  ;;  %v214_v32 = vld [vmem:[%s6583_s1 + $0x658] sm:$0xff] }
  0x9e   :  { %v716_v28 = vld [vmem:[%s6582_s0 + $0x648] sm:$0xff]  ;;  %1469 = vst [vmem:[%s6584_s2 + $0x630] sm:$0xff] %v965_v21  ;;  %v717_v31 = vld [vmem:[%s6582_s0 + $0x650] sm:$0xff]  ;;  %v718_v33 = vld [vmem:[%s6582_s0 + $0x658] sm:$0xff] }
  0x9f   :  { %v968_v30 = vadd.f32 %v716_v28, %v212_v27  ;;  %1470 = vst [vmem:[%s6584_s2 + $0x638] sm:$0xff] %v966_v25  ;;  %1471 = vst [vmem:[%s6584_s2 + $0x640] sm:$0xff] %v967_v26  ;;  %v969_v34 = vadd.f32 %v717_v31, %v213_v29  ;;  %v970_v35 = vadd.f32 %v718_v33, %v214_v32  ;;  %v215_v36 = vld [vmem:[%s6583_s1 + $0x660] sm:$0xff]  ;;  %v216_v38 = vld [vmem:[%s6583_s1 + $0x668] sm:$0xff] }
  0xa0   :  { %v719_v37 = vld [vmem:[%s6582_s0 + $0x660] sm:$0xff]  ;;  %v720_v40 = vld [vmem:[%s6582_s0 + $0x668] sm:$0xff]  ;;  %v217_v41 = vld [vmem:[%s6583_s1 + $0x670] sm:$0xff] }
  0xa1   :  { %1472 = vst [vmem:[%s6584_s2 + $0x648] sm:$0xff] %v968_v30  ;;  %v971_v39 = vadd.f32 %v719_v37, %v215_v36  ;;  %v721_v42 = vld [vmem:[%s6582_s0 + $0x670] sm:$0xff]  ;;  %1473 = vst [vmem:[%s6584_s2 + $0x650] sm:$0xff] %v969_v34  ;;  %v972_v43 = vadd.f32 %v720_v40, %v216_v38  ;;  %v218_v45 = vld [vmem:[%s6583_s1 + $0x678] sm:$0xff] }
  0xa2   :  { %1474 = vst [vmem:[%s6584_s2 + $0x658] sm:$0xff] %v970_v35  ;;  %v973_v44 = vadd.f32 %v721_v42, %v217_v41  ;;  %v722_v46 = vld [vmem:[%s6582_s0 + $0x678] sm:$0xff]  ;;  %v219_v47 = vld [vmem:[%s6583_s1 + $0x680] sm:$0xff]  ;;  %v220_v50 = vld [vmem:[%s6583_s1 + $0x688] sm:$0xff] }
  0xa3   :  { %1475 = vst [vmem:[%s6584_s2 + $0x660] sm:$0xff] %v971_v39  ;;  %v974_v48 = vadd.f32 %v722_v46, %v218_v45  ;;  %v723_v49 = vld [vmem:[%s6582_s0 + $0x680] sm:$0xff]  ;;  %v724_v51 = vld [vmem:[%s6582_s0 + $0x688] sm:$0xff]  ;;  %1476 = vst [vmem:[%s6584_s2 + $0x668] sm:$0xff] %v972_v43 }
  0xa4   :  { %1477 = vst [vmem:[%s6584_s2 + $0x670] sm:$0xff] %v973_v44  ;;  %v975_v52 = vadd.f32 %v723_v49, %v219_v47  ;;  %v976_v53 = vadd.f32 %v724_v51, %v220_v50  ;;  %v221_v54 = vld [vmem:[%s6583_s1 + $0x690] sm:$0xff]  ;;  %v222_v56 = vld [vmem:[%s6583_s1 + $0x698] sm:$0xff]  ;;  %v223_v59 = vld [vmem:[%s6583_s1 + $0x6a0] sm:$0xff] }
  0xa5   :  { %v725_v55 = vld [vmem:[%s6582_s0 + $0x690] sm:$0xff]  ;;  %1478 = vst [vmem:[%s6584_s2 + $0x678] sm:$0xff] %v974_v48  ;;  %v726_v58 = vld [vmem:[%s6582_s0 + $0x698] sm:$0xff]  ;;  %v727_v60 = vld [vmem:[%s6582_s0 + $0x6a0] sm:$0xff] }
  0xa6   :  { %v977_v57 = vadd.f32 %v725_v55, %v221_v54  ;;  %1479 = vst [vmem:[%s6584_s2 + $0x680] sm:$0xff] %v975_v52  ;;  %1480 = vst [vmem:[%s6584_s2 + $0x688] sm:$0xff] %v976_v53  ;;  %v978_v61 = vadd.f32 %v726_v58, %v222_v56  ;;  %v979_v62 = vadd.f32 %v727_v60, %v223_v59  ;;  %v224_v63 = vld [vmem:[%s6583_s1 + $0x6a8] sm:$0xff]  ;;  %v225_v1 = vld [vmem:[%s6583_s1 + $0x6b0] sm:$0xff] }
  0xa7   :  { %v728_v0 = vld [vmem:[%s6582_s0 + $0x6a8] sm:$0xff]  ;;  %v729_v3 = vld [vmem:[%s6582_s0 + $0x6b0] sm:$0xff]  ;;  %v226_v4 = vld [vmem:[%s6583_s1 + $0x6b8] sm:$0xff] }
  0xa8   :  { %1481 = vst [vmem:[%s6584_s2 + $0x690] sm:$0xff] %v977_v57  ;;  %v980_v2 = vadd.f32 %v728_v0, %v224_v63  ;;  %v730_v5 = vld [vmem:[%s6582_s0 + $0x6b8] sm:$0xff]  ;;  %1482 = vst [vmem:[%s6584_s2 + $0x698] sm:$0xff] %v978_v61  ;;  %v981_v6 = vadd.f32 %v729_v3, %v225_v1  ;;  %v227_v8 = vld [vmem:[%s6583_s1 + $0x6c0] sm:$0xff] }
  0xa9   :  { %1483 = vst [vmem:[%s6584_s2 + $0x6a0] sm:$0xff] %v979_v62  ;;  %v982_v7 = vadd.f32 %v730_v5, %v226_v4  ;;  %v731_v9 = vld [vmem:[%s6582_s0 + $0x6c0] sm:$0xff]  ;;  %v228_v10 = vld [vmem:[%s6583_s1 + $0x6c8] sm:$0xff]  ;;  %v229_v13 = vld [vmem:[%s6583_s1 + $0x6d0] sm:$0xff] }
  0xaa   :  { %1484 = vst [vmem:[%s6584_s2 + $0x6a8] sm:$0xff] %v980_v2  ;;  %v983_v11 = vadd.f32 %v731_v9, %v227_v8  ;;  %v732_v12 = vld [vmem:[%s6582_s0 + $0x6c8] sm:$0xff]  ;;  %v733_v14 = vld [vmem:[%s6582_s0 + $0x6d0] sm:$0xff]  ;;  %1485 = vst [vmem:[%s6584_s2 + $0x6b0] sm:$0xff] %v981_v6 }
  0xab   :  { %1486 = vst [vmem:[%s6584_s2 + $0x6b8] sm:$0xff] %v982_v7  ;;  %v984_v15 = vadd.f32 %v732_v12, %v228_v10  ;;  %v985_v16 = vadd.f32 %v733_v14, %v229_v13  ;;  %v230_v17 = vld [vmem:[%s6583_s1 + $0x6d8] sm:$0xff]  ;;  %v231_v19 = vld [vmem:[%s6583_s1 + $0x6e0] sm:$0xff]  ;;  %v232_v22 = vld [vmem:[%s6583_s1 + $0x6e8] sm:$0xff] }
  0xac   :  { %v734_v18 = vld [vmem:[%s6582_s0 + $0x6d8] sm:$0xff]  ;;  %1487 = vst [vmem:[%s6584_s2 + $0x6c0] sm:$0xff] %v983_v11  ;;  %v735_v21 = vld [vmem:[%s6582_s0 + $0x6e0] sm:$0xff]  ;;  %v736_v23 = vld [vmem:[%s6582_s0 + $0x6e8] sm:$0xff] }
  0xad   :  { %v986_v20 = vadd.f32 %v734_v18, %v230_v17  ;;  %1488 = vst [vmem:[%s6584_s2 + $0x6c8] sm:$0xff] %v984_v15  ;;  %1489 = vst [vmem:[%s6584_s2 + $0x6d0] sm:$0xff] %v985_v16  ;;  %v987_v24 = vadd.f32 %v735_v21, %v231_v19  ;;  %v988_v25 = vadd.f32 %v736_v23, %v232_v22  ;;  %v233_v26 = vld [vmem:[%s6583_s1 + $0x6f0] sm:$0xff]  ;;  %v234_v28 = vld [vmem:[%s6583_s1 + $0x6f8] sm:$0xff] }
  0xae   :  { %v737_v27 = vld [vmem:[%s6582_s0 + $0x6f0] sm:$0xff]  ;;  %v738_v30 = vld [vmem:[%s6582_s0 + $0x6f8] sm:$0xff]  ;;  %v235_v31 = vld [vmem:[%s6583_s1 + $0x700] sm:$0xff] }
  0xaf   :  { %1490 = vst [vmem:[%s6584_s2 + $0x6d8] sm:$0xff] %v986_v20  ;;  %v989_v29 = vadd.f32 %v737_v27, %v233_v26  ;;  %v739_v32 = vld [vmem:[%s6582_s0 + $0x700] sm:$0xff]  ;;  %1491 = vst [vmem:[%s6584_s2 + $0x6e0] sm:$0xff] %v987_v24  ;;  %v990_v33 = vadd.f32 %v738_v30, %v234_v28  ;;  %v236_v35 = vld [vmem:[%s6583_s1 + $0x708] sm:$0xff] }
  0xb0   :  { %1492 = vst [vmem:[%s6584_s2 + $0x6e8] sm:$0xff] %v988_v25  ;;  %v991_v34 = vadd.f32 %v739_v32, %v235_v31  ;;  %v740_v36 = vld [vmem:[%s6582_s0 + $0x708] sm:$0xff]  ;;  %v237_v37 = vld [vmem:[%s6583_s1 + $0x710] sm:$0xff]  ;;  %v238_v40 = vld [vmem:[%s6583_s1 + $0x718] sm:$0xff] }
  0xb1   :  { %1493 = vst [vmem:[%s6584_s2 + $0x6f0] sm:$0xff] %v989_v29  ;;  %v992_v38 = vadd.f32 %v740_v36, %v236_v35  ;;  %v741_v39 = vld [vmem:[%s6582_s0 + $0x710] sm:$0xff]  ;;  %v742_v41 = vld [vmem:[%s6582_s0 + $0x718] sm:$0xff]  ;;  %1494 = vst [vmem:[%s6584_s2 + $0x6f8] sm:$0xff] %v990_v33 }
  0xb2   :  { %1495 = vst [vmem:[%s6584_s2 + $0x700] sm:$0xff] %v991_v34  ;;  %v993_v42 = vadd.f32 %v741_v39, %v237_v37  ;;  %v994_v43 = vadd.f32 %v742_v41, %v238_v40  ;;  %v239_v44 = vld [vmem:[%s6583_s1 + $0x720] sm:$0xff]  ;;  %v240_v46 = vld [vmem:[%s6583_s1 + $0x728] sm:$0xff]  ;;  %v241_v49 = vld [vmem:[%s6583_s1 + $0x730] sm:$0xff] }
  0xb3   :  { %v743_v45 = vld [vmem:[%s6582_s0 + $0x720] sm:$0xff]  ;;  %1496 = vst [vmem:[%s6584_s2 + $0x708] sm:$0xff] %v992_v38  ;;  %v744_v48 = vld [vmem:[%s6582_s0 + $0x728] sm:$0xff]  ;;  %v745_v50 = vld [vmem:[%s6582_s0 + $0x730] sm:$0xff] }
  0xb4   :  { %v995_v47 = vadd.f32 %v743_v45, %v239_v44  ;;  %1497 = vst [vmem:[%s6584_s2 + $0x710] sm:$0xff] %v993_v42  ;;  %1498 = vst [vmem:[%s6584_s2 + $0x718] sm:$0xff] %v994_v43  ;;  %v996_v51 = vadd.f32 %v744_v48, %v240_v46  ;;  %v997_v52 = vadd.f32 %v745_v50, %v241_v49  ;;  %v242_v53 = vld [vmem:[%s6583_s1 + $0x738] sm:$0xff]  ;;  %v243_v55 = vld [vmem:[%s6583_s1 + $0x740] sm:$0xff] }
  0xb5   :  { %v746_v54 = vld [vmem:[%s6582_s0 + $0x738] sm:$0xff]  ;;  %v747_v57 = vld [vmem:[%s6582_s0 + $0x740] sm:$0xff]  ;;  %v244_v58 = vld [vmem:[%s6583_s1 + $0x748] sm:$0xff] }
  0xb6   :  { %1499 = vst [vmem:[%s6584_s2 + $0x720] sm:$0xff] %v995_v47  ;;  %v998_v56 = vadd.f32 %v746_v54, %v242_v53  ;;  %v748_v59 = vld [vmem:[%s6582_s0 + $0x748] sm:$0xff]  ;;  %1500 = vst [vmem:[%s6584_s2 + $0x728] sm:$0xff] %v996_v51  ;;  %v999_v60 = vadd.f32 %v747_v57, %v243_v55  ;;  %v245_v62 = vld [vmem:[%s6583_s1 + $0x750] sm:$0xff] }
  0xb7   :  { %1501 = vst [vmem:[%s6584_s2 + $0x730] sm:$0xff] %v997_v52  ;;  %v1000_v61 = vadd.f32 %v748_v59, %v244_v58  ;;  %v749_v63 = vld [vmem:[%s6582_s0 + $0x750] sm:$0xff]  ;;  %v246_v0 = vld [vmem:[%s6583_s1 + $0x758] sm:$0xff]  ;;  %v247_v3 = vld [vmem:[%s6583_s1 + $0x760] sm:$0xff] }
  0xb8   :  { %1502 = vst [vmem:[%s6584_s2 + $0x738] sm:$0xff] %v998_v56  ;;  %v1001_v1 = vadd.f32 %v749_v63, %v245_v62  ;;  %v750_v2 = vld [vmem:[%s6582_s0 + $0x758] sm:$0xff]  ;;  %v751_v4 = vld [vmem:[%s6582_s0 + $0x760] sm:$0xff]  ;;  %1503 = vst [vmem:[%s6584_s2 + $0x740] sm:$0xff] %v999_v60 }
  0xb9   :  { %1504 = vst [vmem:[%s6584_s2 + $0x748] sm:$0xff] %v1000_v61  ;;  %v1002_v5 = vadd.f32 %v750_v2, %v246_v0  ;;  %v1003_v6 = vadd.f32 %v751_v4, %v247_v3  ;;  %v248_v7 = vld [vmem:[%s6583_s1 + $0x768] sm:$0xff]  ;;  %v249_v9 = vld [vmem:[%s6583_s1 + $0x770] sm:$0xff]  ;;  %v250_v12 = vld [vmem:[%s6583_s1 + $0x778] sm:$0xff] }
  0xba   :  { %v752_v8 = vld [vmem:[%s6582_s0 + $0x768] sm:$0xff]  ;;  %1505 = vst [vmem:[%s6584_s2 + $0x750] sm:$0xff] %v1001_v1  ;;  %v753_v11 = vld [vmem:[%s6582_s0 + $0x770] sm:$0xff]  ;;  %v754_v13 = vld [vmem:[%s6582_s0 + $0x778] sm:$0xff] }
  0xbb   :  { %v1004_v10 = vadd.f32 %v752_v8, %v248_v7  ;;  %1506 = vst [vmem:[%s6584_s2 + $0x758] sm:$0xff] %v1002_v5  ;;  %1507 = vst [vmem:[%s6584_s2 + $0x760] sm:$0xff] %v1003_v6  ;;  %v1005_v14 = vadd.f32 %v753_v11, %v249_v9  ;;  %v1006_v15 = vadd.f32 %v754_v13, %v250_v12  ;;  %v251_v16 = vld [vmem:[%s6583_s1 + $0x780] sm:$0xff]  ;;  %v252_v18 = vld [vmem:[%s6583_s1 + $0x788] sm:$0xff] }
  0xbc   :  { %v755_v17 = vld [vmem:[%s6582_s0 + $0x780] sm:$0xff]  ;;  %v756_v20 = vld [vmem:[%s6582_s0 + $0x788] sm:$0xff]  ;;  %v253_v21 = vld [vmem:[%s6583_s1 + $0x790] sm:$0xff] }
  0xbd   :  { %1508 = vst [vmem:[%s6584_s2 + $0x768] sm:$0xff] %v1004_v10  ;;  %v1007_v19 = vadd.f32 %v755_v17, %v251_v16  ;;  %v757_v22 = vld [vmem:[%s6582_s0 + $0x790] sm:$0xff]  ;;  %1509 = vst [vmem:[%s6584_s2 + $0x770] sm:$0xff] %v1005_v14  ;;  %v1008_v23 = vadd.f32 %v756_v20, %v252_v18  ;;  %v254_v25 = vld [vmem:[%s6583_s1 + $0x798] sm:$0xff] }
  0xbe   :  { %1510 = vst [vmem:[%s6584_s2 + $0x778] sm:$0xff] %v1006_v15  ;;  %v1009_v24 = vadd.f32 %v757_v22, %v253_v21  ;;  %v758_v26 = vld [vmem:[%s6582_s0 + $0x798] sm:$0xff]  ;;  %v255_v27 = vld [vmem:[%s6583_s1 + $0x7a0] sm:$0xff]  ;;  %v256_v30 = vld [vmem:[%s6583_s1 + $0x7a8] sm:$0xff] }
  0xbf   :  { %1511 = vst [vmem:[%s6584_s2 + $0x780] sm:$0xff] %v1007_v19  ;;  %v1010_v28 = vadd.f32 %v758_v26, %v254_v25  ;;  %v759_v29 = vld [vmem:[%s6582_s0 + $0x7a0] sm:$0xff]  ;;  %v760_v31 = vld [vmem:[%s6582_s0 + $0x7a8] sm:$0xff]  ;;  %1512 = vst [vmem:[%s6584_s2 + $0x788] sm:$0xff] %v1008_v23 }
  0xc0   :  { %1513 = vst [vmem:[%s6584_s2 + $0x790] sm:$0xff] %v1009_v24  ;;  %v1011_v32 = vadd.f32 %v759_v29, %v255_v27  ;;  %v1012_v33 = vadd.f32 %v760_v31, %v256_v30  ;;  %v257_v34 = vld [vmem:[%s6583_s1 + $0x7b0] sm:$0xff]  ;;  %v258_v36 = vld [vmem:[%s6583_s1 + $0x7b8] sm:$0xff]  ;;  %v259_v39 = vld [vmem:[%s6583_s1 + $0x7c0] sm:$0xff] }
  0xc1   :  { %v761_v35 = vld [vmem:[%s6582_s0 + $0x7b0] sm:$0xff]  ;;  %1514 = vst [vmem:[%s6584_s2 + $0x798] sm:$0xff] %v1010_v28  ;;  %v762_v38 = vld [vmem:[%s6582_s0 + $0x7b8] sm:$0xff]  ;;  %v763_v40 = vld [vmem:[%s6582_s0 + $0x7c0] sm:$0xff] }
  0xc2   :  { %v1013_v37 = vadd.f32 %v761_v35, %v257_v34  ;;  %1515 = vst [vmem:[%s6584_s2 + $0x7a0] sm:$0xff] %v1011_v32  ;;  %1516 = vst [vmem:[%s6584_s2 + $0x7a8] sm:$0xff] %v1012_v33  ;;  %v1014_v41 = vadd.f32 %v762_v38, %v258_v36  ;;  %v1015_v42 = vadd.f32 %v763_v40, %v259_v39  ;;  %v260_v43 = vld [vmem:[%s6583_s1 + $0x7c8] sm:$0xff]  ;;  %v261_v45 = vld [vmem:[%s6583_s1 + $0x7d0] sm:$0x1] }
  0xc3   :  { %v764_v44 = vld [vmem:[%s6582_s0 + $0x7c8] sm:$0xff]  ;;  %v765_v47 = vld [vmem:[%s6582_s0 + $0x7d0] sm:$0x1]  ;;  %v262_v48 = vld [vmem:[%s6583_s1 + $0x7d8] sm:$0x1] }
  0xc4   :  { %1517 = vst [vmem:[%s6584_s2 + $0x7b0] sm:$0xff] %v1013_v37  ;;  %v1016_v46 = vadd.f32 %v764_v44, %v260_v43  ;;  %v766_v49 = vld [vmem:[%s6582_s0 + $0x7d8] sm:$0x1]  ;;  %1518 = vst [vmem:[%s6584_s2 + $0x7b8] sm:$0xff] %v1014_v41  ;;  %v1017_v50 = vadd.f32 %v765_v47, %v261_v45  ;;  %v263_v52 = vld [vmem:[%s6583_s1 + $0x7e0] sm:$0xff] }
  0xc5   :  { %1519 = vst [vmem:[%s6584_s2 + $0x7c0] sm:$0xff] %v1015_v42  ;;  %v1018_v51 = vadd.f32 %v766_v49, %v262_v48  ;;  %v264_v53 = vld [vmem:[%s6583_s1 + $0x7e8] sm:$0xff]  ;;  %v265_v54 = vld [vmem:[%s6583_s1 + $0x7f0] sm:$0xff]  ;;  %v1779_v55 = vld [vmem:[%s6582_s0] sm:$0xff] }
  0xc6   :  { %1520 = vst [vmem:[%s6584_s2 + $0x7c8] sm:$0xff] %v1016_v46  ;;  %v1019_v56 = vadd.f32 %v1779_v55, %v263_v52  ;;  %v1780_v57 = vld [vmem:[%s6582_s0 + $0x8] sm:$0xff]  ;;  %v1781_v59 = vld [vmem:[%s6582_s0 + $0x10] sm:$0xff]  ;;  %v266_v61 = vld [vmem:[%s6583_s1 + $0x7f8] sm:$0xff] }
  0xc7   :  { %v1020_v58 = vadd.f32 %v1780_v57, %v264_v53  ;;  %v1021_v60 = vadd.f32 %v1781_v59, %v265_v54  ;;  %v267_v62 = vld [vmem:[%s6583_s1 + $0x800] sm:$0xff]  ;;  %v268_v63 = vld [vmem:[%s6583_s1 + $0x808] sm:$0xff]  ;;  %1521 = vst [vmem:[%s6584_s2 + $0x7d0] sm:$0x1] %v1017_v50  ;;  %1522 = vst [vmem:[%s6584_s2 + $0x7d8] sm:$0x1] %v1018_v51 }
  0xc8   :  { %v1782_v0 = vld [vmem:[%s6582_s0 + $0x18] sm:$0xff]  ;;  %v1783_v2 = vld [vmem:[%s6582_s0 + $0x20] sm:$0xff]  ;;  %v1784_v4 = vld [vmem:[%s6582_s0 + $0x28] sm:$0xff]  ;;  %1523 = vst [vmem:[%s6584_s2 + $0x7e0] sm:$0xff] %v1019_v56 }
  0xc9   :  { %v1022_v1 = vadd.f32 %v1782_v0, %v266_v61  ;;  %v1023_v3 = vadd.f32 %v1783_v2, %v267_v62  ;;  %v1024_v5 = vadd.f32 %v1784_v4, %v268_v63  ;;  %v269_v6 = vld [vmem:[%s6583_s1 + $0x810] sm:$0xff]  ;;  %v270_v7 = vld [vmem:[%s6583_s1 + $0x818] sm:$0xff]  ;;  %v271_v8 = vld [vmem:[%s6583_s1 + $0x820] sm:$0xff]  ;;  %1524 = vst [vmem:[%s6584_s2 + $0x7e8] sm:$0xff] %v1020_v58 }
  0xca   :  { %1525 = vst [vmem:[%s6584_s2 + $0x7f0] sm:$0xff] %v1021_v60  ;;  %v1785_v9 = vld [vmem:[%s6582_s0 + $0x30] sm:$0xff]  ;;  %v1786_v11 = vld [vmem:[%s6582_s0 + $0x38] sm:$0xff]  ;;  %v1787_v13 = vld [vmem:[%s6582_s0 + $0x40] sm:$0xff] }
  0xcb   :  { %v1025_v10 = vadd.f32 %v1785_v9, %v269_v6  ;;  %v1026_v12 = vadd.f32 %v1786_v11, %v270_v7  ;;  %v1027_v14 = vadd.f32 %v1787_v13, %v271_v8  ;;  %v272_v15 = vld [vmem:[%s6583_s1 + $0x828] sm:$0xff]  ;;  %v273_v16 = vld [vmem:[%s6583_s1 + $0x830] sm:$0xff]  ;;  %v274_v17 = vld [vmem:[%s6583_s1 + $0x838] sm:$0xff]  ;;  %1526 = vst [vmem:[%s6584_s2 + $0x7f8] sm:$0xff] %v1022_v1 }
  0xcc   :  { %1527 = vst [vmem:[%s6584_s2 + $0x800] sm:$0xff] %v1023_v3  ;;  %1528 = vst [vmem:[%s6584_s2 + $0x808] sm:$0xff] %v1024_v5  ;;  %v1788_v18 = vld [vmem:[%s6582_s0 + $0x48] sm:$0xff]  ;;  %v1789_v20 = vld [vmem:[%s6582_s0 + $0x50] sm:$0xff] }
  0xcd   :  { %v1028_v19 = vadd.f32 %v1788_v18, %v272_v15  ;;  %v1029_v21 = vadd.f32 %v1789_v20, %v273_v16  ;;  %v1790_v22 = vld [vmem:[%s6582_s0 + $0x58] sm:$0xff]  ;;  %v275_v24 = vld [vmem:[%s6583_s1 + $0x840] sm:$0xff]  ;;  %v276_v25 = vld [vmem:[%s6583_s1 + $0x848] sm:$0xff]  ;;  %1529 = vst [vmem:[%s6584_s2 + $0x810] sm:$0xff] %v1025_v10 }
  0xce   :  { %v1030_v23 = vadd.f32 %v1790_v22, %v274_v17  ;;  %v277_v26 = vld [vmem:[%s6583_s1 + $0x850] sm:$0xff]  ;;  %1530 = vst [vmem:[%s6584_s2 + $0x818] sm:$0xff] %v1026_v12  ;;  %1531 = vst [vmem:[%s6584_s2 + $0x820] sm:$0xff] %v1027_v14  ;;  %v1791_v27 = vld [vmem:[%s6582_s0 + $0x60] sm:$0xff] }
  0xcf   :  { %v1031_v28 = vadd.f32 %v1791_v27, %v275_v24  ;;  %v1792_v29 = vld [vmem:[%s6582_s0 + $0x68] sm:$0xff]  ;;  %v1793_v31 = vld [vmem:[%s6582_s0 + $0x70] sm:$0xff]  ;;  %v278_v33 = vld [vmem:[%s6583_s1 + $0x858] sm:$0xff]  ;;  %1532 = vst [vmem:[%s6584_s2 + $0x828] sm:$0xff] %v1028_v19 }
  0xd0   :  { %v1032_v30 = vadd.f32 %v1792_v29, %v276_v25  ;;  %v1033_v32 = vadd.f32 %v1793_v31, %v277_v26  ;;  %v279_v34 = vld [vmem:[%s6583_s1 + $0x860] sm:$0xff]  ;;  %v280_v35 = vld [vmem:[%s6583_s1 + $0x868] sm:$0xff]  ;;  %1533 = vst [vmem:[%s6584_s2 + $0x830] sm:$0xff] %v1029_v21  ;;  %1534 = vst [vmem:[%s6584_s2 + $0x838] sm:$0xff] %v1030_v23 }
  0xd1   :  { %v1794_v36 = vld [vmem:[%s6582_s0 + $0x78] sm:$0xff]  ;;  %v1795_v38 = vld [vmem:[%s6582_s0 + $0x80] sm:$0xff]  ;;  %v1796_v40 = vld [vmem:[%s6582_s0 + $0x88] sm:$0xff]  ;;  %1535 = vst [vmem:[%s6584_s2 + $0x840] sm:$0xff] %v1031_v28 }
  0xd2   :  { %v1034_v37 = vadd.f32 %v1794_v36, %v278_v33  ;;  %v1035_v39 = vadd.f32 %v1795_v38, %v279_v34  ;;  %v1036_v41 = vadd.f32 %v1796_v40, %v280_v35  ;;  %v281_v42 = vld [vmem:[%s6583_s1 + $0x870] sm:$0xff]  ;;  %v282_v43 = vld [vmem:[%s6583_s1 + $0x878] sm:$0xff]  ;;  %v283_v44 = vld [vmem:[%s6583_s1 + $0x880] sm:$0xff]  ;;  %1536 = vst [vmem:[%s6584_s2 + $0x848] sm:$0xff] %v1032_v30 }
  0xd3   :  { %1537 = vst [vmem:[%s6584_s2 + $0x850] sm:$0xff] %v1033_v32  ;;  %v1797_v45 = vld [vmem:[%s6582_s0 + $0x90] sm:$0xff]  ;;  %v1798_v47 = vld [vmem:[%s6582_s0 + $0x98] sm:$0xff]  ;;  %v1799_v49 = vld [vmem:[%s6582_s0 + $0xa0] sm:$0xff] }
  0xd4   :  { %v1037_v46 = vadd.f32 %v1797_v45, %v281_v42  ;;  %v1038_v48 = vadd.f32 %v1798_v47, %v282_v43  ;;  %v1039_v50 = vadd.f32 %v1799_v49, %v283_v44  ;;  %v284_v51 = vld [vmem:[%s6583_s1 + $0x888] sm:$0xff]  ;;  %v285_v52 = vld [vmem:[%s6583_s1 + $0x890] sm:$0xff]  ;;  %v286_v53 = vld [vmem:[%s6583_s1 + $0x898] sm:$0xff]  ;;  %1538 = vst [vmem:[%s6584_s2 + $0x858] sm:$0xff] %v1034_v37 }
  0xd5   :  { %1539 = vst [vmem:[%s6584_s2 + $0x860] sm:$0xff] %v1035_v39  ;;  %1540 = vst [vmem:[%s6584_s2 + $0x868] sm:$0xff] %v1036_v41  ;;  %v1800_v54 = vld [vmem:[%s6582_s0 + $0xa8] sm:$0xff]  ;;  %v1801_v56 = vld [vmem:[%s6582_s0 + $0xb0] sm:$0xff] }
  0xd6   :  { %v1040_v55 = vadd.f32 %v1800_v54, %v284_v51  ;;  %v1041_v57 = vadd.f32 %v1801_v56, %v285_v52  ;;  %v1802_v58 = vld [vmem:[%s6582_s0 + $0xb8] sm:$0xff]  ;;  %v287_v60 = vld [vmem:[%s6583_s1 + $0x8a0] sm:$0xff]  ;;  %v288_v61 = vld [vmem:[%s6583_s1 + $0x8a8] sm:$0xff]  ;;  %1541 = vst [vmem:[%s6584_s2 + $0x870] sm:$0xff] %v1037_v46 }
  0xd7   :  { %v1042_v59 = vadd.f32 %v1802_v58, %v286_v53  ;;  %v289_v62 = vld [vmem:[%s6583_s1 + $0x8b0] sm:$0xff]  ;;  %1542 = vst [vmem:[%s6584_s2 + $0x878] sm:$0xff] %v1038_v48  ;;  %1543 = vst [vmem:[%s6584_s2 + $0x880] sm:$0xff] %v1039_v50  ;;  %v1803_v63 = vld [vmem:[%s6582_s0 + $0xc0] sm:$0xff] }
  0xd8   :  { %v1043_v0 = vadd.f32 %v1803_v63, %v287_v60  ;;  %v1804_v1 = vld [vmem:[%s6582_s0 + $0xc8] sm:$0xff]  ;;  %v1805_v3 = vld [vmem:[%s6582_s0 + $0xd0] sm:$0xff]  ;;  %v290_v5 = vld [vmem:[%s6583_s1 + $0x8b8] sm:$0xff]  ;;  %1544 = vst [vmem:[%s6584_s2 + $0x888] sm:$0xff] %v1040_v55 }
  0xd9   :  { %v1044_v2 = vadd.f32 %v1804_v1, %v288_v61  ;;  %v1045_v4 = vadd.f32 %v1805_v3, %v289_v62  ;;  %v291_v6 = vld [vmem:[%s6583_s1 + $0x8c0] sm:$0xff]  ;;  %v292_v7 = vld [vmem:[%s6583_s1 + $0x8c8] sm:$0xff]  ;;  %1545 = vst [vmem:[%s6584_s2 + $0x890] sm:$0xff] %v1041_v57  ;;  %1546 = vst [vmem:[%s6584_s2 + $0x898] sm:$0xff] %v1042_v59 }
  0xda   :  { %v1806_v8 = vld [vmem:[%s6582_s0 + $0xd8] sm:$0xff]  ;;  %v1807_v10 = vld [vmem:[%s6582_s0 + $0xe0] sm:$0xff]  ;;  %v1808_v12 = vld [vmem:[%s6582_s0 + $0xe8] sm:$0xff]  ;;  %1547 = vst [vmem:[%s6584_s2 + $0x8a0] sm:$0xff] %v1043_v0 }
  0xdb   :  { %v1046_v9 = vadd.f32 %v1806_v8, %v290_v5  ;;  %v1047_v11 = vadd.f32 %v1807_v10, %v291_v6  ;;  %v1048_v13 = vadd.f32 %v1808_v12, %v292_v7  ;;  %v293_v14 = vld [vmem:[%s6583_s1 + $0x8d0] sm:$0xff]  ;;  %v294_v15 = vld [vmem:[%s6583_s1 + $0x8d8] sm:$0xff]  ;;  %v295_v16 = vld [vmem:[%s6583_s1 + $0x8e0] sm:$0xff]  ;;  %1548 = vst [vmem:[%s6584_s2 + $0x8a8] sm:$0xff] %v1044_v2 }
  0xdc   :  { %1549 = vst [vmem:[%s6584_s2 + $0x8b0] sm:$0xff] %v1045_v4  ;;  %v1809_v17 = vld [vmem:[%s6582_s0 + $0xf0] sm:$0xff]  ;;  %v1810_v19 = vld [vmem:[%s6582_s0 + $0xf8] sm:$0xff]  ;;  %v1811_v21 = vld [vmem:[%s6582_s0 + $0x100] sm:$0xff] }
  0xdd   :  { %v1049_v18 = vadd.f32 %v1809_v17, %v293_v14  ;;  %v1050_v20 = vadd.f32 %v1810_v19, %v294_v15  ;;  %v1051_v22 = vadd.f32 %v1811_v21, %v295_v16  ;;  %v296_v23 = vld [vmem:[%s6583_s1 + $0x8e8] sm:$0xff]  ;;  %v297_v24 = vld [vmem:[%s6583_s1 + $0x8f0] sm:$0xff]  ;;  %v298_v25 = vld [vmem:[%s6583_s1 + $0x8f8] sm:$0xff]  ;;  %1550 = vst [vmem:[%s6584_s2 + $0x8b8] sm:$0xff] %v1046_v9 }
  0xde   :  { %1551 = vst [vmem:[%s6584_s2 + $0x8c0] sm:$0xff] %v1047_v11  ;;  %1552 = vst [vmem:[%s6584_s2 + $0x8c8] sm:$0xff] %v1048_v13  ;;  %v1812_v26 = vld [vmem:[%s6582_s0 + $0x108] sm:$0xff]  ;;  %v1813_v28 = vld [vmem:[%s6582_s0 + $0x110] sm:$0xff] }
  0xdf   :  { %v1052_v27 = vadd.f32 %v1812_v26, %v296_v23  ;;  %v1053_v29 = vadd.f32 %v1813_v28, %v297_v24  ;;  %v1814_v30 = vld [vmem:[%s6582_s0 + $0x118] sm:$0xff]  ;;  %v299_v32 = vld [vmem:[%s6583_s1 + $0x900] sm:$0xff]  ;;  %v300_v33 = vld [vmem:[%s6583_s1 + $0x908] sm:$0xff]  ;;  %1553 = vst [vmem:[%s6584_s2 + $0x8d0] sm:$0xff] %v1049_v18 }
  0xe0   :  { %v1054_v31 = vadd.f32 %v1814_v30, %v298_v25  ;;  %v301_v34 = vld [vmem:[%s6583_s1 + $0x910] sm:$0xff]  ;;  %1554 = vst [vmem:[%s6584_s2 + $0x8d8] sm:$0xff] %v1050_v20  ;;  %1555 = vst [vmem:[%s6584_s2 + $0x8e0] sm:$0xff] %v1051_v22  ;;  %v1815_v35 = vld [vmem:[%s6582_s0 + $0x120] sm:$0xff] }
  0xe1   :  { %v1055_v36 = vadd.f32 %v1815_v35, %v299_v32  ;;  %v1816_v37 = vld [vmem:[%s6582_s0 + $0x128] sm:$0xff]  ;;  %v1817_v39 = vld [vmem:[%s6582_s0 + $0x130] sm:$0xff]  ;;  %v302_v41 = vld [vmem:[%s6583_s1 + $0x918] sm:$0xff]  ;;  %1556 = vst [vmem:[%s6584_s2 + $0x8e8] sm:$0xff] %v1052_v27 }
  0xe2   :  { %v1056_v38 = vadd.f32 %v1816_v37, %v300_v33  ;;  %v1057_v40 = vadd.f32 %v1817_v39, %v301_v34  ;;  %v303_v42 = vld [vmem:[%s6583_s1 + $0x920] sm:$0xff]  ;;  %v304_v43 = vld [vmem:[%s6583_s1 + $0x928] sm:$0xff]  ;;  %1557 = vst [vmem:[%s6584_s2 + $0x8f0] sm:$0xff] %v1053_v29  ;;  %1558 = vst [vmem:[%s6584_s2 + $0x8f8] sm:$0xff] %v1054_v31 }
  0xe3   :  { %v1818_v44 = vld [vmem:[%s6582_s0 + $0x138] sm:$0xff]  ;;  %v1819_v46 = vld [vmem:[%s6582_s0 + $0x140] sm:$0xff]  ;;  %v1820_v48 = vld [vmem:[%s6582_s0 + $0x148] sm:$0xff]  ;;  %1559 = vst [vmem:[%s6584_s2 + $0x900] sm:$0xff] %v1055_v36 }
  0xe4   :  { %v1058_v45 = vadd.f32 %v1818_v44, %v302_v41  ;;  %v1059_v47 = vadd.f32 %v1819_v46, %v303_v42  ;;  %v1060_v49 = vadd.f32 %v1820_v48, %v304_v43  ;;  %v305_v50 = vld [vmem:[%s6583_s1 + $0x930] sm:$0xff]  ;;  %v306_v51 = vld [vmem:[%s6583_s1 + $0x938] sm:$0xff]  ;;  %v307_v52 = vld [vmem:[%s6583_s1 + $0x940] sm:$0xff]  ;;  %1560 = vst [vmem:[%s6584_s2 + $0x908] sm:$0xff] %v1056_v38 }
  0xe5   :  { %1561 = vst [vmem:[%s6584_s2 + $0x910] sm:$0xff] %v1057_v40  ;;  %v1821_v53 = vld [vmem:[%s6582_s0 + $0x150] sm:$0xff]  ;;  %v1822_v55 = vld [vmem:[%s6582_s0 + $0x158] sm:$0xff]  ;;  %v1823_v57 = vld [vmem:[%s6582_s0 + $0x160] sm:$0xff] }
  0xe6   :  { %v1061_v54 = vadd.f32 %v1821_v53, %v305_v50  ;;  %v1062_v56 = vadd.f32 %v1822_v55, %v306_v51  ;;  %v1063_v58 = vadd.f32 %v1823_v57, %v307_v52  ;;  %v308_v59 = vld [vmem:[%s6583_s1 + $0x948] sm:$0xff]  ;;  %v309_v60 = vld [vmem:[%s6583_s1 + $0x950] sm:$0xff]  ;;  %v310_v61 = vld [vmem:[%s6583_s1 + $0x958] sm:$0xff]  ;;  %1562 = vst [vmem:[%s6584_s2 + $0x918] sm:$0xff] %v1058_v45 }
  0xe7   :  { %1563 = vst [vmem:[%s6584_s2 + $0x920] sm:$0xff] %v1059_v47  ;;  %1564 = vst [vmem:[%s6584_s2 + $0x928] sm:$0xff] %v1060_v49  ;;  %v1824_v62 = vld [vmem:[%s6582_s0 + $0x168] sm:$0xff]  ;;  %v1825_v0 = vld [vmem:[%s6582_s0 + $0x170] sm:$0xff] }
  0xe8   :  { %v1064_v63 = vadd.f32 %v1824_v62, %v308_v59  ;;  %v1065_v1 = vadd.f32 %v1825_v0, %v309_v60  ;;  %v1826_v2 = vld [vmem:[%s6582_s0 + $0x178] sm:$0xff]  ;;  %v311_v4 = vld [vmem:[%s6583_s1 + $0x960] sm:$0xff]  ;;  %v312_v5 = vld [vmem:[%s6583_s1 + $0x968] sm:$0xff]  ;;  %1565 = vst [vmem:[%s6584_s2 + $0x930] sm:$0xff] %v1061_v54 }
  0xe9   :  { %v1066_v3 = vadd.f32 %v1826_v2, %v310_v61  ;;  %v313_v6 = vld [vmem:[%s6583_s1 + $0x970] sm:$0xff]  ;;  %1566 = vst [vmem:[%s6584_s2 + $0x938] sm:$0xff] %v1062_v56  ;;  %1567 = vst [vmem:[%s6584_s2 + $0x940] sm:$0xff] %v1063_v58  ;;  %v1827_v7 = vld [vmem:[%s6582_s0 + $0x180] sm:$0xff] }
  0xea   :  { %v1067_v8 = vadd.f32 %v1827_v7, %v311_v4  ;;  %v1828_v9 = vld [vmem:[%s6582_s0 + $0x188] sm:$0xff]  ;;  %v1829_v11 = vld [vmem:[%s6582_s0 + $0x190] sm:$0xff]  ;;  %v314_v13 = vld [vmem:[%s6583_s1 + $0x978] sm:$0xff]  ;;  %1568 = vst [vmem:[%s6584_s2 + $0x948] sm:$0xff] %v1064_v63 }
  0xeb   :  { %v1068_v10 = vadd.f32 %v1828_v9, %v312_v5  ;;  %v1069_v12 = vadd.f32 %v1829_v11, %v313_v6  ;;  %v315_v14 = vld [vmem:[%s6583_s1 + $0x980] sm:$0xff]  ;;  %v316_v15 = vld [vmem:[%s6583_s1 + $0x988] sm:$0xff]  ;;  %1569 = vst [vmem:[%s6584_s2 + $0x950] sm:$0xff] %v1065_v1  ;;  %1570 = vst [vmem:[%s6584_s2 + $0x958] sm:$0xff] %v1066_v3 }
  0xec   :  { %v1830_v16 = vld [vmem:[%s6582_s0 + $0x198] sm:$0xff]  ;;  %v1831_v18 = vld [vmem:[%s6582_s0 + $0x1a0] sm:$0xff]  ;;  %v1832_v20 = vld [vmem:[%s6582_s0 + $0x1a8] sm:$0xff]  ;;  %1571 = vst [vmem:[%s6584_s2 + $0x960] sm:$0xff] %v1067_v8 }
  0xed   :  { %v1070_v17 = vadd.f32 %v1830_v16, %v314_v13  ;;  %v1071_v19 = vadd.f32 %v1831_v18, %v315_v14  ;;  %v1072_v21 = vadd.f32 %v1832_v20, %v316_v15  ;;  %v317_v22 = vld [vmem:[%s6583_s1 + $0x990] sm:$0xff]  ;;  %v318_v23 = vld [vmem:[%s6583_s1 + $0x998] sm:$0xff]  ;;  %v319_v24 = vld [vmem:[%s6583_s1 + $0x9a0] sm:$0xff]  ;;  %1572 = vst [vmem:[%s6584_s2 + $0x968] sm:$0xff] %v1068_v10 }
  0xee   :  { %1573 = vst [vmem:[%s6584_s2 + $0x970] sm:$0xff] %v1069_v12  ;;  %v1833_v25 = vld [vmem:[%s6582_s0 + $0x1b0] sm:$0xff]  ;;  %v1834_v27 = vld [vmem:[%s6582_s0 + $0x1b8] sm:$0xff]  ;;  %v1835_v29 = vld [vmem:[%s6582_s0 + $0x1c0] sm:$0xff] }
  0xef   :  { %v1073_v26 = vadd.f32 %v1833_v25, %v317_v22  ;;  %v1074_v28 = vadd.f32 %v1834_v27, %v318_v23  ;;  %v1075_v30 = vadd.f32 %v1835_v29, %v319_v24  ;;  %v320_v31 = vld [vmem:[%s6583_s1 + $0x9a8] sm:$0xff]  ;;  %v321_v32 = vld [vmem:[%s6583_s1 + $0x9b0] sm:$0xff]  ;;  %v322_v33 = vld [vmem:[%s6583_s1 + $0x9b8] sm:$0xff]  ;;  %1574 = vst [vmem:[%s6584_s2 + $0x978] sm:$0xff] %v1070_v17 }
  0xf0   :  { %1575 = vst [vmem:[%s6584_s2 + $0x980] sm:$0xff] %v1071_v19  ;;  %1576 = vst [vmem:[%s6584_s2 + $0x988] sm:$0xff] %v1072_v21  ;;  %v1836_v34 = vld [vmem:[%s6582_s0 + $0x1c8] sm:$0xff]  ;;  %v1837_v36 = vld [vmem:[%s6582_s0 + $0x1d0] sm:$0xff] }
  0xf1   :  { %v1076_v35 = vadd.f32 %v1836_v34, %v320_v31  ;;  %v1077_v37 = vadd.f32 %v1837_v36, %v321_v32  ;;  %v1838_v38 = vld [vmem:[%s6582_s0 + $0x1d8] sm:$0xff]  ;;  %v323_v40 = vld [vmem:[%s6583_s1 + $0x9c0] sm:$0xff]  ;;  %v324_v41 = vld [vmem:[%s6583_s1 + $0x9c8] sm:$0xff]  ;;  %1577 = vst [vmem:[%s6584_s2 + $0x990] sm:$0xff] %v1073_v26 }
  0xf2   :  { %v1078_v39 = vadd.f32 %v1838_v38, %v322_v33  ;;  %v325_v42 = vld [vmem:[%s6583_s1 + $0x9d0] sm:$0xff]  ;;  %1578 = vst [vmem:[%s6584_s2 + $0x998] sm:$0xff] %v1074_v28  ;;  %1579 = vst [vmem:[%s6584_s2 + $0x9a0] sm:$0xff] %v1075_v30  ;;  %v1839_v43 = vld [vmem:[%s6582_s0 + $0x1e0] sm:$0xff] }
  0xf3   :  { %v1079_v44 = vadd.f32 %v1839_v43, %v323_v40  ;;  %v1840_v45 = vld [vmem:[%s6582_s0 + $0x1e8] sm:$0xff]  ;;  %v1841_v47 = vld [vmem:[%s6582_s0 + $0x1f0] sm:$0xff]  ;;  %v326_v49 = vld [vmem:[%s6583_s1 + $0x9d8] sm:$0xff]  ;;  %1580 = vst [vmem:[%s6584_s2 + $0x9a8] sm:$0xff] %v1076_v35 }
  0xf4   :  { %v1080_v46 = vadd.f32 %v1840_v45, %v324_v41  ;;  %v1081_v48 = vadd.f32 %v1841_v47, %v325_v42  ;;  %v327_v50 = vld [vmem:[%s6583_s1 + $0x9e0] sm:$0xff]  ;;  %v328_v51 = vld [vmem:[%s6583_s1 + $0x9e8] sm:$0xff]  ;;  %1581 = vst [vmem:[%s6584_s2 + $0x9b0] sm:$0xff] %v1077_v37  ;;  %1582 = vst [vmem:[%s6584_s2 + $0x9b8] sm:$0xff] %v1078_v39 }
  0xf5   :  { %v1842_v52 = vld [vmem:[%s6582_s0 + $0x1f8] sm:$0xff]  ;;  %v1843_v54 = vld [vmem:[%s6582_s0 + $0x200] sm:$0xff]  ;;  %v1844_v56 = vld [vmem:[%s6582_s0 + $0x208] sm:$0xff]  ;;  %1583 = vst [vmem:[%s6584_s2 + $0x9c0] sm:$0xff] %v1079_v44 }
  0xf6   :  { %v1082_v53 = vadd.f32 %v1842_v52, %v326_v49  ;;  %v1083_v55 = vadd.f32 %v1843_v54, %v327_v50  ;;  %v1084_v57 = vadd.f32 %v1844_v56, %v328_v51  ;;  %v329_v58 = vld [vmem:[%s6583_s1 + $0x9f0] sm:$0xff]  ;;  %v330_v59 = vld [vmem:[%s6583_s1 + $0x9f8] sm:$0xff]  ;;  %v331_v60 = vld [vmem:[%s6583_s1 + $0xa00] sm:$0xff]  ;;  %1584 = vst [vmem:[%s6584_s2 + $0x9c8] sm:$0xff] %v1080_v46 }
  0xf7   :  { %1585 = vst [vmem:[%s6584_s2 + $0x9d0] sm:$0xff] %v1081_v48  ;;  %v1845_v61 = vld [vmem:[%s6582_s0 + $0x210] sm:$0xff]  ;;  %v1846_v63 = vld [vmem:[%s6582_s0 + $0x218] sm:$0xff]  ;;  %v1847_v1 = vld [vmem:[%s6582_s0 + $0x220] sm:$0xff] }
  0xf8   :  { %v1085_v62 = vadd.f32 %v1845_v61, %v329_v58  ;;  %v1086_v0 = vadd.f32 %v1846_v63, %v330_v59  ;;  %v1087_v2 = vadd.f32 %v1847_v1, %v331_v60  ;;  %v332_v3 = vld [vmem:[%s6583_s1 + $0xa08] sm:$0xff]  ;;  %v333_v4 = vld [vmem:[%s6583_s1 + $0xa10] sm:$0xff]  ;;  %v334_v5 = vld [vmem:[%s6583_s1 + $0xa18] sm:$0xff]  ;;  %1586 = vst [vmem:[%s6584_s2 + $0x9d8] sm:$0xff] %v1082_v53 }
  0xf9   :  { %1587 = vst [vmem:[%s6584_s2 + $0x9e0] sm:$0xff] %v1083_v55  ;;  %1588 = vst [vmem:[%s6584_s2 + $0x9e8] sm:$0xff] %v1084_v57  ;;  %v1848_v6 = vld [vmem:[%s6582_s0 + $0x228] sm:$0xff]  ;;  %v1849_v8 = vld [vmem:[%s6582_s0 + $0x230] sm:$0xff] }
  0xfa   :  { %v1088_v7 = vadd.f32 %v1848_v6, %v332_v3  ;;  %v1089_v9 = vadd.f32 %v1849_v8, %v333_v4  ;;  %v1850_v10 = vld [vmem:[%s6582_s0 + $0x238] sm:$0xff]  ;;  %v335_v12 = vld [vmem:[%s6583_s1 + $0xa20] sm:$0xff]  ;;  %v336_v13 = vld [vmem:[%s6583_s1 + $0xa28] sm:$0xff]  ;;  %1589 = vst [vmem:[%s6584_s2 + $0x9f0] sm:$0xff] %v1085_v62 }
  0xfb   :  { %v1090_v11 = vadd.f32 %v1850_v10, %v334_v5  ;;  %v337_v14 = vld [vmem:[%s6583_s1 + $0xa30] sm:$0xff]  ;;  %1590 = vst [vmem:[%s6584_s2 + $0x9f8] sm:$0xff] %v1086_v0  ;;  %1591 = vst [vmem:[%s6584_s2 + $0xa00] sm:$0xff] %v1087_v2  ;;  %v1851_v15 = vld [vmem:[%s6582_s0 + $0x240] sm:$0xff] }
  0xfc   :  { %v1091_v16 = vadd.f32 %v1851_v15, %v335_v12  ;;  %v1852_v17 = vld [vmem:[%s6582_s0 + $0x248] sm:$0xff]  ;;  %v1853_v19 = vld [vmem:[%s6582_s0 + $0x250] sm:$0xff]  ;;  %v338_v21 = vld [vmem:[%s6583_s1 + $0xa38] sm:$0xff]  ;;  %1592 = vst [vmem:[%s6584_s2 + $0xa08] sm:$0xff] %v1088_v7 }
  0xfd   :  { %v1092_v18 = vadd.f32 %v1852_v17, %v336_v13  ;;  %v1093_v20 = vadd.f32 %v1853_v19, %v337_v14  ;;  %v339_v22 = vld [vmem:[%s6583_s1 + $0xa40] sm:$0xff]  ;;  %v340_v23 = vld [vmem:[%s6583_s1 + $0xa48] sm:$0xff]  ;;  %1593 = vst [vmem:[%s6584_s2 + $0xa10] sm:$0xff] %v1089_v9  ;;  %1594 = vst [vmem:[%s6584_s2 + $0xa18] sm:$0xff] %v1090_v11 }
  0xfe   :  { %v1854_v24 = vld [vmem:[%s6582_s0 + $0x258] sm:$0xff]  ;;  %v1855_v26 = vld [vmem:[%s6582_s0 + $0x260] sm:$0xff]  ;;  %v1856_v28 = vld [vmem:[%s6582_s0 + $0x268] sm:$0xff]  ;;  %1595 = vst [vmem:[%s6584_s2 + $0xa20] sm:$0xff] %v1091_v16 }
  0xff   :  { %v1094_v25 = vadd.f32 %v1854_v24, %v338_v21  ;;  %v1095_v27 = vadd.f32 %v1855_v26, %v339_v22  ;;  %v1096_v29 = vadd.f32 %v1856_v28, %v340_v23  ;;  %v341_v30 = vld [vmem:[%s6583_s1 + $0xa50] sm:$0xff]  ;;  %v342_v31 = vld [vmem:[%s6583_s1 + $0xa58] sm:$0xff]  ;;  %v343_v32 = vld [vmem:[%s6583_s1 + $0xa60] sm:$0xff]  ;;  %1596 = vst [vmem:[%s6584_s2 + $0xa28] sm:$0xff] %v1092_v18 }
 0x100   :  { %1597 = vst [vmem:[%s6584_s2 + $0xa30] sm:$0xff] %v1093_v20  ;;  %v1857_v33 = vld [vmem:[%s6582_s0 + $0x270] sm:$0xff]  ;;  %v1858_v35 = vld [vmem:[%s6582_s0 + $0x278] sm:$0xff]  ;;  %v1859_v37 = vld [vmem:[%s6582_s0 + $0x280] sm:$0xff] }
 0x101   :  { %v1097_v34 = vadd.f32 %v1857_v33, %v341_v30  ;;  %v1098_v36 = vadd.f32 %v1858_v35, %v342_v31  ;;  %v1099_v38 = vadd.f32 %v1859_v37, %v343_v32  ;;  %v344_v39 = vld [vmem:[%s6583_s1 + $0xa68] sm:$0xff]  ;;  %v345_v40 = vld [vmem:[%s6583_s1 + $0xa70] sm:$0xff]  ;;  %v346_v41 = vld [vmem:[%s6583_s1 + $0xa78] sm:$0xff]  ;;  %1598 = vst [vmem:[%s6584_s2 + $0xa38] sm:$0xff] %v1094_v25 }
 0x102   :  { %1599 = vst [vmem:[%s6584_s2 + $0xa40] sm:$0xff] %v1095_v27  ;;  %1600 = vst [vmem:[%s6584_s2 + $0xa48] sm:$0xff] %v1096_v29  ;;  %v1860_v42 = vld [vmem:[%s6582_s0 + $0x288] sm:$0xff]  ;;  %v1861_v44 = vld [vmem:[%s6582_s0 + $0x290] sm:$0xff] }
 0x103   :  { %v1100_v43 = vadd.f32 %v1860_v42, %v344_v39  ;;  %v1101_v45 = vadd.f32 %v1861_v44, %v345_v40  ;;  %v1862_v46 = vld [vmem:[%s6582_s0 + $0x298] sm:$0xff]  ;;  %v347_v48 = vld [vmem:[%s6583_s1 + $0xa80] sm:$0xff]  ;;  %v348_v49 = vld [vmem:[%s6583_s1 + $0xa88] sm:$0xff]  ;;  %1601 = vst [vmem:[%s6584_s2 + $0xa50] sm:$0xff] %v1097_v34 }
 0x104   :  { %v1102_v47 = vadd.f32 %v1862_v46, %v346_v41  ;;  %v349_v50 = vld [vmem:[%s6583_s1 + $0xa90] sm:$0xff]  ;;  %1602 = vst [vmem:[%s6584_s2 + $0xa58] sm:$0xff] %v1098_v36  ;;  %1603 = vst [vmem:[%s6584_s2 + $0xa60] sm:$0xff] %v1099_v38  ;;  %v1863_v51 = vld [vmem:[%s6582_s0 + $0x2a0] sm:$0xff] }
 0x105   :  { %v1103_v52 = vadd.f32 %v1863_v51, %v347_v48  ;;  %v1864_v53 = vld [vmem:[%s6582_s0 + $0x2a8] sm:$0xff]  ;;  %v1865_v55 = vld [vmem:[%s6582_s0 + $0x2b0] sm:$0xff]  ;;  %v350_v57 = vld [vmem:[%s6583_s1 + $0xa98] sm:$0xff]  ;;  %1604 = vst [vmem:[%s6584_s2 + $0xa68] sm:$0xff] %v1100_v43 }
 0x106   :  { %v1104_v54 = vadd.f32 %v1864_v53, %v348_v49  ;;  %v1105_v56 = vadd.f32 %v1865_v55, %v349_v50  ;;  %v351_v58 = vld [vmem:[%s6583_s1 + $0xaa0] sm:$0xff]  ;;  %v352_v59 = vld [vmem:[%s6583_s1 + $0xaa8] sm:$0xff]  ;;  %1605 = vst [vmem:[%s6584_s2 + $0xa70] sm:$0xff] %v1101_v45  ;;  %1606 = vst [vmem:[%s6584_s2 + $0xa78] sm:$0xff] %v1102_v47 }
 0x107   :  { %v1866_v60 = vld [vmem:[%s6582_s0 + $0x2b8] sm:$0xff]  ;;  %v1867_v62 = vld [vmem:[%s6582_s0 + $0x2c0] sm:$0xff]  ;;  %v1868_v0 = vld [vmem:[%s6582_s0 + $0x2c8] sm:$0xff]  ;;  %1607 = vst [vmem:[%s6584_s2 + $0xa80] sm:$0xff] %v1103_v52 }
 0x108   :  { %v1106_v61 = vadd.f32 %v1866_v60, %v350_v57  ;;  %v1107_v63 = vadd.f32 %v1867_v62, %v351_v58  ;;  %v1108_v1 = vadd.f32 %v1868_v0, %v352_v59  ;;  %v353_v2 = vld [vmem:[%s6583_s1 + $0xab0] sm:$0xff]  ;;  %v354_v3 = vld [vmem:[%s6583_s1 + $0xab8] sm:$0xff]  ;;  %v355_v4 = vld [vmem:[%s6583_s1 + $0xac0] sm:$0xff]  ;;  %1608 = vst [vmem:[%s6584_s2 + $0xa88] sm:$0xff] %v1104_v54 }
 0x109   :  { %1609 = vst [vmem:[%s6584_s2 + $0xa90] sm:$0xff] %v1105_v56  ;;  %v1869_v5 = vld [vmem:[%s6582_s0 + $0x2d0] sm:$0xff]  ;;  %v1870_v7 = vld [vmem:[%s6582_s0 + $0x2d8] sm:$0xff]  ;;  %v1871_v9 = vld [vmem:[%s6582_s0 + $0x2e0] sm:$0xff] }
 0x10a   :  { %v1109_v6 = vadd.f32 %v1869_v5, %v353_v2  ;;  %v1110_v8 = vadd.f32 %v1870_v7, %v354_v3  ;;  %v1111_v10 = vadd.f32 %v1871_v9, %v355_v4  ;;  %v356_v11 = vld [vmem:[%s6583_s1 + $0xac8] sm:$0xff]  ;;  %v357_v12 = vld [vmem:[%s6583_s1 + $0xad0] sm:$0xff]  ;;  %v358_v13 = vld [vmem:[%s6583_s1 + $0xad8] sm:$0xff]  ;;  %1610 = vst [vmem:[%s6584_s2 + $0xa98] sm:$0xff] %v1106_v61 }
 0x10b   :  { %1611 = vst [vmem:[%s6584_s2 + $0xaa0] sm:$0xff] %v1107_v63  ;;  %1612 = vst [vmem:[%s6584_s2 + $0xaa8] sm:$0xff] %v1108_v1  ;;  %v1872_v14 = vld [vmem:[%s6582_s0 + $0x2e8] sm:$0xff]  ;;  %v1873_v16 = vld [vmem:[%s6582_s0 + $0x2f0] sm:$0xff] }
 0x10c   :  { %v1112_v15 = vadd.f32 %v1872_v14, %v356_v11  ;;  %v1113_v17 = vadd.f32 %v1873_v16, %v357_v12  ;;  %v1874_v18 = vld [vmem:[%s6582_s0 + $0x2f8] sm:$0xff]  ;;  %v359_v20 = vld [vmem:[%s6583_s1 + $0xae0] sm:$0xff]  ;;  %v360_v21 = vld [vmem:[%s6583_s1 + $0xae8] sm:$0xff]  ;;  %1613 = vst [vmem:[%s6584_s2 + $0xab0] sm:$0xff] %v1109_v6 }
 0x10d   :  { %v1114_v19 = vadd.f32 %v1874_v18, %v358_v13  ;;  %v361_v22 = vld [vmem:[%s6583_s1 + $0xaf0] sm:$0xff]  ;;  %1614 = vst [vmem:[%s6584_s2 + $0xab8] sm:$0xff] %v1110_v8  ;;  %1615 = vst [vmem:[%s6584_s2 + $0xac0] sm:$0xff] %v1111_v10  ;;  %v1875_v23 = vld [vmem:[%s6582_s0 + $0x300] sm:$0xff] }
 0x10e   :  { %v1115_v24 = vadd.f32 %v1875_v23, %v359_v20  ;;  %v1876_v25 = vld [vmem:[%s6582_s0 + $0x308] sm:$0xff]  ;;  %v1877_v27 = vld [vmem:[%s6582_s0 + $0x310] sm:$0xff]  ;;  %v362_v29 = vld [vmem:[%s6583_s1 + $0xaf8] sm:$0xff]  ;;  %1616 = vst [vmem:[%s6584_s2 + $0xac8] sm:$0xff] %v1112_v15 }
 0x10f   :  { %v1116_v26 = vadd.f32 %v1876_v25, %v360_v21  ;;  %v1117_v28 = vadd.f32 %v1877_v27, %v361_v22  ;;  %v363_v30 = vld [vmem:[%s6583_s1 + $0xb00] sm:$0xff]  ;;  %v364_v31 = vld [vmem:[%s6583_s1 + $0xb08] sm:$0xff]  ;;  %1617 = vst [vmem:[%s6584_s2 + $0xad0] sm:$0xff] %v1113_v17  ;;  %1618 = vst [vmem:[%s6584_s2 + $0xad8] sm:$0xff] %v1114_v19 }
 0x110   :  { %v1878_v32 = vld [vmem:[%s6582_s0 + $0x318] sm:$0xff]  ;;  %v1879_v34 = vld [vmem:[%s6582_s0 + $0x320] sm:$0xff]  ;;  %v1880_v36 = vld [vmem:[%s6582_s0 + $0x328] sm:$0xff]  ;;  %1619 = vst [vmem:[%s6584_s2 + $0xae0] sm:$0xff] %v1115_v24 }
 0x111   :  { %v1118_v33 = vadd.f32 %v1878_v32, %v362_v29  ;;  %v1119_v35 = vadd.f32 %v1879_v34, %v363_v30  ;;  %v1120_v37 = vadd.f32 %v1880_v36, %v364_v31  ;;  %v365_v38 = vld [vmem:[%s6583_s1 + $0xb10] sm:$0xff]  ;;  %v366_v39 = vld [vmem:[%s6583_s1 + $0xb18] sm:$0xff]  ;;  %v367_v40 = vld [vmem:[%s6583_s1 + $0xb20] sm:$0xff]  ;;  %1620 = vst [vmem:[%s6584_s2 + $0xae8] sm:$0xff] %v1116_v26 }
 0x112   :  { %1621 = vst [vmem:[%s6584_s2 + $0xaf0] sm:$0xff] %v1117_v28  ;;  %v1881_v41 = vld [vmem:[%s6582_s0 + $0x330] sm:$0xff]  ;;  %v1882_v43 = vld [vmem:[%s6582_s0 + $0x338] sm:$0xff]  ;;  %v1883_v45 = vld [vmem:[%s6582_s0 + $0x340] sm:$0xff] }
 0x113   :  { %v1121_v42 = vadd.f32 %v1881_v41, %v365_v38  ;;  %v1122_v44 = vadd.f32 %v1882_v43, %v366_v39  ;;  %v1123_v46 = vadd.f32 %v1883_v45, %v367_v40  ;;  %v368_v47 = vld [vmem:[%s6583_s1 + $0xb28] sm:$0xff]  ;;  %v369_v48 = vld [vmem:[%s6583_s1 + $0xb30] sm:$0xff]  ;;  %v370_v49 = vld [vmem:[%s6583_s1 + $0xb38] sm:$0xff]  ;;  %1622 = vst [vmem:[%s6584_s2 + $0xaf8] sm:$0xff] %v1118_v33 }
 0x114   :  { %1623 = vst [vmem:[%s6584_s2 + $0xb00] sm:$0xff] %v1119_v35  ;;  %1624 = vst [vmem:[%s6584_s2 + $0xb08] sm:$0xff] %v1120_v37  ;;  %v1884_v50 = vld [vmem:[%s6582_s0 + $0x348] sm:$0xff]  ;;  %v1885_v52 = vld [vmem:[%s6582_s0 + $0x350] sm:$0xff] }
 0x115   :  { %v1124_v51 = vadd.f32 %v1884_v50, %v368_v47  ;;  %v1125_v53 = vadd.f32 %v1885_v52, %v369_v48  ;;  %v1886_v54 = vld [vmem:[%s6582_s0 + $0x358] sm:$0xff]  ;;  %v371_v56 = vld [vmem:[%s6583_s1 + $0xb40] sm:$0xff]  ;;  %v372_v57 = vld [vmem:[%s6583_s1 + $0xb48] sm:$0xff]  ;;  %1625 = vst [vmem:[%s6584_s2 + $0xb10] sm:$0xff] %v1121_v42 }
 0x116   :  { %v1126_v55 = vadd.f32 %v1886_v54, %v370_v49  ;;  %v373_v58 = vld [vmem:[%s6583_s1 + $0xb50] sm:$0xff]  ;;  %1626 = vst [vmem:[%s6584_s2 + $0xb18] sm:$0xff] %v1122_v44  ;;  %1627 = vst [vmem:[%s6584_s2 + $0xb20] sm:$0xff] %v1123_v46  ;;  %v1887_v59 = vld [vmem:[%s6582_s0 + $0x360] sm:$0xff] }
 0x117   :  { %v1127_v60 = vadd.f32 %v1887_v59, %v371_v56  ;;  %v1888_v61 = vld [vmem:[%s6582_s0 + $0x368] sm:$0xff]  ;;  %v1889_v63 = vld [vmem:[%s6582_s0 + $0x370] sm:$0xff]  ;;  %v374_v1 = vld [vmem:[%s6583_s1 + $0xb58] sm:$0xff]  ;;  %1628 = vst [vmem:[%s6584_s2 + $0xb28] sm:$0xff] %v1124_v51 }
 0x118   :  { %v1128_v62 = vadd.f32 %v1888_v61, %v372_v57  ;;  %v1129_v0 = vadd.f32 %v1889_v63, %v373_v58  ;;  %v375_v2 = vld [vmem:[%s6583_s1 + $0xb60] sm:$0xff]  ;;  %v376_v3 = vld [vmem:[%s6583_s1 + $0xb68] sm:$0xff]  ;;  %1629 = vst [vmem:[%s6584_s2 + $0xb30] sm:$0xff] %v1125_v53  ;;  %1630 = vst [vmem:[%s6584_s2 + $0xb38] sm:$0xff] %v1126_v55 }
 0x119   :  { %v1890_v4 = vld [vmem:[%s6582_s0 + $0x378] sm:$0xff]  ;;  %v1891_v6 = vld [vmem:[%s6582_s0 + $0x380] sm:$0xff]  ;;  %v1892_v8 = vld [vmem:[%s6582_s0 + $0x388] sm:$0xff]  ;;  %1631 = vst [vmem:[%s6584_s2 + $0xb40] sm:$0xff] %v1127_v60 }
 0x11a   :  { %v1130_v5 = vadd.f32 %v1890_v4, %v374_v1  ;;  %v1131_v7 = vadd.f32 %v1891_v6, %v375_v2  ;;  %v1132_v9 = vadd.f32 %v1892_v8, %v376_v3  ;;  %v377_v10 = vld [vmem:[%s6583_s1 + $0xb70] sm:$0xff]  ;;  %v378_v11 = vld [vmem:[%s6583_s1 + $0xb78] sm:$0xff]  ;;  %v379_v12 = vld [vmem:[%s6583_s1 + $0xb80] sm:$0xff]  ;;  %1632 = vst [vmem:[%s6584_s2 + $0xb48] sm:$0xff] %v1128_v62 }
 0x11b   :  { %1633 = vst [vmem:[%s6584_s2 + $0xb50] sm:$0xff] %v1129_v0  ;;  %v1893_v13 = vld [vmem:[%s6582_s0 + $0x390] sm:$0xff]  ;;  %v1894_v15 = vld [vmem:[%s6582_s0 + $0x398] sm:$0xff]  ;;  %v1895_v17 = vld [vmem:[%s6582_s0 + $0x3a0] sm:$0xff] }
 0x11c   :  { %v1133_v14 = vadd.f32 %v1893_v13, %v377_v10  ;;  %v1134_v16 = vadd.f32 %v1894_v15, %v378_v11  ;;  %v1135_v18 = vadd.f32 %v1895_v17, %v379_v12  ;;  %v380_v19 = vld [vmem:[%s6583_s1 + $0xb88] sm:$0xff]  ;;  %v381_v20 = vld [vmem:[%s6583_s1 + $0xb90] sm:$0xff]  ;;  %v382_v21 = vld [vmem:[%s6583_s1 + $0xb98] sm:$0xff]  ;;  %1634 = vst [vmem:[%s6584_s2 + $0xb58] sm:$0xff] %v1130_v5 }
 0x11d   :  { %1635 = vst [vmem:[%s6584_s2 + $0xb60] sm:$0xff] %v1131_v7  ;;  %1636 = vst [vmem:[%s6584_s2 + $0xb68] sm:$0xff] %v1132_v9  ;;  %v1896_v22 = vld [vmem:[%s6582_s0 + $0x3a8] sm:$0xff]  ;;  %v1897_v24 = vld [vmem:[%s6582_s0 + $0x3b0] sm:$0xff] }
 0x11e   :  { %v1136_v23 = vadd.f32 %v1896_v22, %v380_v19  ;;  %v1137_v25 = vadd.f32 %v1897_v24, %v381_v20  ;;  %v1898_v26 = vld [vmem:[%s6582_s0 + $0x3b8] sm:$0xff]  ;;  %v383_v28 = vld [vmem:[%s6583_s1 + $0xba0] sm:$0xff]  ;;  %v384_v29 = vld [vmem:[%s6583_s1 + $0xba8] sm:$0xff]  ;;  %1637 = vst [vmem:[%s6584_s2 + $0xb70] sm:$0xff] %v1133_v14 }
 0x11f   :  { %v1138_v27 = vadd.f32 %v1898_v26, %v382_v21  ;;  %v385_v30 = vld [vmem:[%s6583_s1 + $0xbb0] sm:$0xff]  ;;  %1638 = vst [vmem:[%s6584_s2 + $0xb78] sm:$0xff] %v1134_v16  ;;  %1639 = vst [vmem:[%s6584_s2 + $0xb80] sm:$0xff] %v1135_v18  ;;  %v1899_v31 = vld [vmem:[%s6582_s0 + $0x3c0] sm:$0xff] }
 0x120   :  { %v1139_v32 = vadd.f32 %v1899_v31, %v383_v28  ;;  %v1900_v33 = vld [vmem:[%s6582_s0 + $0x3c8] sm:$0xff]  ;;  %v1901_v35 = vld [vmem:[%s6582_s0 + $0x3d0] sm:$0xff]  ;;  %v386_v37 = vld [vmem:[%s6583_s1 + $0xbb8] sm:$0xff]  ;;  %1640 = vst [vmem:[%s6584_s2 + $0xb88] sm:$0xff] %v1136_v23 }
 0x121   :  { %v1140_v34 = vadd.f32 %v1900_v33, %v384_v29  ;;  %v1141_v36 = vadd.f32 %v1901_v35, %v385_v30  ;;  %v387_v38 = vld [vmem:[%s6583_s1 + $0xbc0] sm:$0xff]  ;;  %v388_v39 = vld [vmem:[%s6583_s1 + $0xbc8] sm:$0xff]  ;;  %1641 = vst [vmem:[%s6584_s2 + $0xb90] sm:$0xff] %v1137_v25  ;;  %1642 = vst [vmem:[%s6584_s2 + $0xb98] sm:$0xff] %v1138_v27 }
 0x122   :  { %v1902_v40 = vld [vmem:[%s6582_s0 + $0x3d8] sm:$0xff]  ;;  %v1903_v42 = vld [vmem:[%s6582_s0 + $0x3e0] sm:$0xff]  ;;  %v1904_v44 = vld [vmem:[%s6582_s0 + $0x3e8] sm:$0xff]  ;;  %1643 = vst [vmem:[%s6584_s2 + $0xba0] sm:$0xff] %v1139_v32 }
 0x123   :  { %v1142_v41 = vadd.f32 %v1902_v40, %v386_v37  ;;  %v1143_v43 = vadd.f32 %v1903_v42, %v387_v38  ;;  %v1144_v45 = vadd.f32 %v1904_v44, %v388_v39  ;;  %v389_v46 = vld [vmem:[%s6583_s1 + $0xbd0] sm:$0xff]  ;;  %v390_v47 = vld [vmem:[%s6583_s1 + $0xbd8] sm:$0xff]  ;;  %v391_v48 = vld [vmem:[%s6583_s1 + $0xbe0] sm:$0xff]  ;;  %1644 = vst [vmem:[%s6584_s2 + $0xba8] sm:$0xff] %v1140_v34 }
 0x124   :  { %1645 = vst [vmem:[%s6584_s2 + $0xbb0] sm:$0xff] %v1141_v36  ;;  %v1905_v49 = vld [vmem:[%s6582_s0 + $0x3f0] sm:$0xff]  ;;  %v1906_v51 = vld [vmem:[%s6582_s0 + $0x3f8] sm:$0xff]  ;;  %v1907_v53 = vld [vmem:[%s6582_s0 + $0x400] sm:$0xff] }
 0x125   :  { %v1145_v50 = vadd.f32 %v1905_v49, %v389_v46  ;;  %v1146_v52 = vadd.f32 %v1906_v51, %v390_v47  ;;  %v1147_v54 = vadd.f32 %v1907_v53, %v391_v48  ;;  %v392_v55 = vld [vmem:[%s6583_s1 + $0xbe8] sm:$0xff]  ;;  %v393_v56 = vld [vmem:[%s6583_s1 + $0xbf0] sm:$0xff]  ;;  %v394_v57 = vld [vmem:[%s6583_s1 + $0xbf8] sm:$0xff]  ;;  %1646 = vst [vmem:[%s6584_s2 + $0xbb8] sm:$0xff] %v1142_v41 }
 0x126   :  { %1647 = vst [vmem:[%s6584_s2 + $0xbc0] sm:$0xff] %v1143_v43  ;;  %1648 = vst [vmem:[%s6584_s2 + $0xbc8] sm:$0xff] %v1144_v45  ;;  %v1908_v58 = vld [vmem:[%s6582_s0 + $0x408] sm:$0xff]  ;;  %v1909_v60 = vld [vmem:[%s6582_s0 + $0x410] sm:$0xff] }
 0x127   :  { %v1148_v59 = vadd.f32 %v1908_v58, %v392_v55  ;;  %v1149_v61 = vadd.f32 %v1909_v60, %v393_v56  ;;  %v1910_v62 = vld [vmem:[%s6582_s0 + $0x418] sm:$0xff]  ;;  %v395_v0 = vld [vmem:[%s6583_s1 + $0xc00] sm:$0xff]  ;;  %v396_v1 = vld [vmem:[%s6583_s1 + $0xc08] sm:$0xff]  ;;  %1649 = vst [vmem:[%s6584_s2 + $0xbd0] sm:$0xff] %v1145_v50 }
 0x128   :  { %v1150_v63 = vadd.f32 %v1910_v62, %v394_v57  ;;  %v397_v2 = vld [vmem:[%s6583_s1 + $0xc10] sm:$0xff]  ;;  %1650 = vst [vmem:[%s6584_s2 + $0xbd8] sm:$0xff] %v1146_v52  ;;  %1651 = vst [vmem:[%s6584_s2 + $0xbe0] sm:$0xff] %v1147_v54  ;;  %v1911_v3 = vld [vmem:[%s6582_s0 + $0x420] sm:$0xff] }
 0x129   :  { %v1151_v4 = vadd.f32 %v1911_v3, %v395_v0  ;;  %v1912_v5 = vld [vmem:[%s6582_s0 + $0x428] sm:$0xff]  ;;  %v1913_v7 = vld [vmem:[%s6582_s0 + $0x430] sm:$0xff]  ;;  %v398_v9 = vld [vmem:[%s6583_s1 + $0xc18] sm:$0xff]  ;;  %1652 = vst [vmem:[%s6584_s2 + $0xbe8] sm:$0xff] %v1148_v59 }
 0x12a   :  { %v1152_v6 = vadd.f32 %v1912_v5, %v396_v1  ;;  %v1153_v8 = vadd.f32 %v1913_v7, %v397_v2  ;;  %v399_v10 = vld [vmem:[%s6583_s1 + $0xc20] sm:$0xff]  ;;  %v400_v11 = vld [vmem:[%s6583_s1 + $0xc28] sm:$0xff]  ;;  %1653 = vst [vmem:[%s6584_s2 + $0xbf0] sm:$0xff] %v1149_v61  ;;  %1654 = vst [vmem:[%s6584_s2 + $0xbf8] sm:$0xff] %v1150_v63 }
 0x12b   :  { %v1914_v12 = vld [vmem:[%s6582_s0 + $0x438] sm:$0xff]  ;;  %v1915_v14 = vld [vmem:[%s6582_s0 + $0x440] sm:$0xff]  ;;  %v1916_v16 = vld [vmem:[%s6582_s0 + $0x448] sm:$0xff]  ;;  %1655 = vst [vmem:[%s6584_s2 + $0xc00] sm:$0xff] %v1151_v4 }
 0x12c   :  { %v1154_v13 = vadd.f32 %v1914_v12, %v398_v9  ;;  %v1155_v15 = vadd.f32 %v1915_v14, %v399_v10  ;;  %v1156_v17 = vadd.f32 %v1916_v16, %v400_v11  ;;  %v401_v18 = vld [vmem:[%s6583_s1 + $0xc30] sm:$0xff]  ;;  %v402_v19 = vld [vmem:[%s6583_s1 + $0xc38] sm:$0xff]  ;;  %v403_v20 = vld [vmem:[%s6583_s1 + $0xc40] sm:$0xff]  ;;  %1656 = vst [vmem:[%s6584_s2 + $0xc08] sm:$0xff] %v1152_v6 }
 0x12d   :  { %1657 = vst [vmem:[%s6584_s2 + $0xc10] sm:$0xff] %v1153_v8  ;;  %v1917_v21 = vld [vmem:[%s6582_s0 + $0x450] sm:$0xff]  ;;  %v1918_v23 = vld [vmem:[%s6582_s0 + $0x458] sm:$0xff]  ;;  %v1919_v25 = vld [vmem:[%s6582_s0 + $0x460] sm:$0xff] }
 0x12e   :  { %v1157_v22 = vadd.f32 %v1917_v21, %v401_v18  ;;  %v1158_v24 = vadd.f32 %v1918_v23, %v402_v19  ;;  %v1159_v26 = vadd.f32 %v1919_v25, %v403_v20  ;;  %v404_v27 = vld [vmem:[%s6583_s1 + $0xc48] sm:$0xff]  ;;  %v405_v28 = vld [vmem:[%s6583_s1 + $0xc50] sm:$0xff]  ;;  %v406_v29 = vld [vmem:[%s6583_s1 + $0xc58] sm:$0xff]  ;;  %1658 = vst [vmem:[%s6584_s2 + $0xc18] sm:$0xff] %v1154_v13 }
 0x12f   :  { %1659 = vst [vmem:[%s6584_s2 + $0xc20] sm:$0xff] %v1155_v15  ;;  %1660 = vst [vmem:[%s6584_s2 + $0xc28] sm:$0xff] %v1156_v17  ;;  %v1920_v30 = vld [vmem:[%s6582_s0 + $0x468] sm:$0xff]  ;;  %v1921_v32 = vld [vmem:[%s6582_s0 + $0x470] sm:$0xff] }
 0x130   :  { %v1160_v31 = vadd.f32 %v1920_v30, %v404_v27  ;;  %v1161_v33 = vadd.f32 %v1921_v32, %v405_v28  ;;  %v1922_v34 = vld [vmem:[%s6582_s0 + $0x478] sm:$0xff]  ;;  %v407_v36 = vld [vmem:[%s6583_s1 + $0xc60] sm:$0xff]  ;;  %v408_v37 = vld [vmem:[%s6583_s1 + $0xc68] sm:$0xff]  ;;  %1661 = vst [vmem:[%s6584_s2 + $0xc30] sm:$0xff] %v1157_v22 }
 0x131   :  { %v1162_v35 = vadd.f32 %v1922_v34, %v406_v29  ;;  %v409_v38 = vld [vmem:[%s6583_s1 + $0xc70] sm:$0xff]  ;;  %1662 = vst [vmem:[%s6584_s2 + $0xc38] sm:$0xff] %v1158_v24  ;;  %1663 = vst [vmem:[%s6584_s2 + $0xc40] sm:$0xff] %v1159_v26  ;;  %v1923_v39 = vld [vmem:[%s6582_s0 + $0x480] sm:$0xff] }
 0x132   :  { %v1163_v40 = vadd.f32 %v1923_v39, %v407_v36  ;;  %v1924_v41 = vld [vmem:[%s6582_s0 + $0x488] sm:$0xff]  ;;  %v1925_v43 = vld [vmem:[%s6582_s0 + $0x490] sm:$0xff]  ;;  %v410_v45 = vld [vmem:[%s6583_s1 + $0xc78] sm:$0xff]  ;;  %1664 = vst [vmem:[%s6584_s2 + $0xc48] sm:$0xff] %v1160_v31 }
 0x133   :  { %v1164_v42 = vadd.f32 %v1924_v41, %v408_v37  ;;  %v1165_v44 = vadd.f32 %v1925_v43, %v409_v38  ;;  %v411_v46 = vld [vmem:[%s6583_s1 + $0xc80] sm:$0xff]  ;;  %v412_v47 = vld [vmem:[%s6583_s1 + $0xc88] sm:$0xff]  ;;  %1665 = vst [vmem:[%s6584_s2 + $0xc50] sm:$0xff] %v1161_v33  ;;  %1666 = vst [vmem:[%s6584_s2 + $0xc58] sm:$0xff] %v1162_v35 }
 0x134   :  { %v1926_v48 = vld [vmem:[%s6582_s0 + $0x498] sm:$0xff]  ;;  %v1927_v50 = vld [vmem:[%s6582_s0 + $0x4a0] sm:$0xff]  ;;  %v1928_v52 = vld [vmem:[%s6582_s0 + $0x4a8] sm:$0xff]  ;;  %1667 = vst [vmem:[%s6584_s2 + $0xc60] sm:$0xff] %v1163_v40 }
 0x135   :  { %v1166_v49 = vadd.f32 %v1926_v48, %v410_v45  ;;  %v1167_v51 = vadd.f32 %v1927_v50, %v411_v46  ;;  %v1168_v53 = vadd.f32 %v1928_v52, %v412_v47  ;;  %v413_v54 = vld [vmem:[%s6583_s1 + $0xc90] sm:$0xff]  ;;  %v414_v55 = vld [vmem:[%s6583_s1 + $0xc98] sm:$0xff]  ;;  %v415_v56 = vld [vmem:[%s6583_s1 + $0xca0] sm:$0xff]  ;;  %1668 = vst [vmem:[%s6584_s2 + $0xc68] sm:$0xff] %v1164_v42 }
 0x136   :  { %1669 = vst [vmem:[%s6584_s2 + $0xc70] sm:$0xff] %v1165_v44  ;;  %v1929_v57 = vld [vmem:[%s6582_s0 + $0x4b0] sm:$0xff]  ;;  %v1930_v59 = vld [vmem:[%s6582_s0 + $0x4b8] sm:$0xff]  ;;  %v1931_v61 = vld [vmem:[%s6582_s0 + $0x4c0] sm:$0xff] }
 0x137   :  { %v1169_v58 = vadd.f32 %v1929_v57, %v413_v54  ;;  %v1170_v60 = vadd.f32 %v1930_v59, %v414_v55  ;;  %v1171_v62 = vadd.f32 %v1931_v61, %v415_v56  ;;  %v416_v63 = vld [vmem:[%s6583_s1 + $0xca8] sm:$0xff]  ;;  %v417_v0 = vld [vmem:[%s6583_s1 + $0xcb0] sm:$0xff]  ;;  %v418_v1 = vld [vmem:[%s6583_s1 + $0xcb8] sm:$0xff]  ;;  %1670 = vst [vmem:[%s6584_s2 + $0xc78] sm:$0xff] %v1166_v49 }
 0x138   :  { %1671 = vst [vmem:[%s6584_s2 + $0xc80] sm:$0xff] %v1167_v51  ;;  %1672 = vst [vmem:[%s6584_s2 + $0xc88] sm:$0xff] %v1168_v53  ;;  %v1932_v2 = vld [vmem:[%s6582_s0 + $0x4c8] sm:$0xff]  ;;  %v1933_v4 = vld [vmem:[%s6582_s0 + $0x4d0] sm:$0xff] }
 0x139   :  { %v1172_v3 = vadd.f32 %v1932_v2, %v416_v63  ;;  %v1173_v5 = vadd.f32 %v1933_v4, %v417_v0  ;;  %v1934_v6 = vld [vmem:[%s6582_s0 + $0x4d8] sm:$0xff]  ;;  %v419_v8 = vld [vmem:[%s6583_s1 + $0xcc0] sm:$0xff]  ;;  %v420_v9 = vld [vmem:[%s6583_s1 + $0xcc8] sm:$0xff]  ;;  %1673 = vst [vmem:[%s6584_s2 + $0xc90] sm:$0xff] %v1169_v58 }
 0x13a   :  { %v1174_v7 = vadd.f32 %v1934_v6, %v418_v1  ;;  %v421_v10 = vld [vmem:[%s6583_s1 + $0xcd0] sm:$0xff]  ;;  %1674 = vst [vmem:[%s6584_s2 + $0xc98] sm:$0xff] %v1170_v60  ;;  %1675 = vst [vmem:[%s6584_s2 + $0xca0] sm:$0xff] %v1171_v62  ;;  %v1935_v11 = vld [vmem:[%s6582_s0 + $0x4e0] sm:$0xff] }
 0x13b   :  { %v1175_v12 = vadd.f32 %v1935_v11, %v419_v8  ;;  %v1936_v13 = vld [vmem:[%s6582_s0 + $0x4e8] sm:$0xff]  ;;  %v1937_v15 = vld [vmem:[%s6582_s0 + $0x4f0] sm:$0xff]  ;;  %v422_v17 = vld [vmem:[%s6583_s1 + $0xcd8] sm:$0xff]  ;;  %1676 = vst [vmem:[%s6584_s2 + $0xca8] sm:$0xff] %v1172_v3 }
 0x13c   :  { %v1176_v14 = vadd.f32 %v1936_v13, %v420_v9  ;;  %v1177_v16 = vadd.f32 %v1937_v15, %v421_v10  ;;  %v423_v18 = vld [vmem:[%s6583_s1 + $0xce0] sm:$0xff]  ;;  %v424_v19 = vld [vmem:[%s6583_s1 + $0xce8] sm:$0xff]  ;;  %1677 = vst [vmem:[%s6584_s2 + $0xcb0] sm:$0xff] %v1173_v5  ;;  %1678 = vst [vmem:[%s6584_s2 + $0xcb8] sm:$0xff] %v1174_v7 }
 0x13d   :  { %v1938_v20 = vld [vmem:[%s6582_s0 + $0x4f8] sm:$0xff]  ;;  %v1939_v22 = vld [vmem:[%s6582_s0 + $0x500] sm:$0xff]  ;;  %v1940_v24 = vld [vmem:[%s6582_s0 + $0x508] sm:$0xff]  ;;  %1679 = vst [vmem:[%s6584_s2 + $0xcc0] sm:$0xff] %v1175_v12 }
 0x13e   :  { %v1178_v21 = vadd.f32 %v1938_v20, %v422_v17  ;;  %v1179_v23 = vadd.f32 %v1939_v22, %v423_v18  ;;  %v1180_v25 = vadd.f32 %v1940_v24, %v424_v19  ;;  %v425_v26 = vld [vmem:[%s6583_s1 + $0xcf0] sm:$0xff]  ;;  %v426_v27 = vld [vmem:[%s6583_s1 + $0xcf8] sm:$0xff]  ;;  %v427_v28 = vld [vmem:[%s6583_s1 + $0xd00] sm:$0xff]  ;;  %1680 = vst [vmem:[%s6584_s2 + $0xcc8] sm:$0xff] %v1176_v14 }
 0x13f   :  { %1681 = vst [vmem:[%s6584_s2 + $0xcd0] sm:$0xff] %v1177_v16  ;;  %v1941_v29 = vld [vmem:[%s6582_s0 + $0x510] sm:$0xff]  ;;  %v1942_v31 = vld [vmem:[%s6582_s0 + $0x518] sm:$0xff]  ;;  %v1943_v33 = vld [vmem:[%s6582_s0 + $0x520] sm:$0xff] }
 0x140   :  { %v1181_v30 = vadd.f32 %v1941_v29, %v425_v26  ;;  %v1182_v32 = vadd.f32 %v1942_v31, %v426_v27  ;;  %v1183_v34 = vadd.f32 %v1943_v33, %v427_v28  ;;  %v428_v35 = vld [vmem:[%s6583_s1 + $0xd08] sm:$0xff]  ;;  %v429_v36 = vld [vmem:[%s6583_s1 + $0xd10] sm:$0xff]  ;;  %v430_v37 = vld [vmem:[%s6583_s1 + $0xd18] sm:$0xff]  ;;  %1682 = vst [vmem:[%s6584_s2 + $0xcd8] sm:$0xff] %v1178_v21 }
 0x141   :  { %1683 = vst [vmem:[%s6584_s2 + $0xce0] sm:$0xff] %v1179_v23  ;;  %1684 = vst [vmem:[%s6584_s2 + $0xce8] sm:$0xff] %v1180_v25  ;;  %v1944_v38 = vld [vmem:[%s6582_s0 + $0x528] sm:$0xff]  ;;  %v1945_v40 = vld [vmem:[%s6582_s0 + $0x530] sm:$0xff] }
 0x142   :  { %v1184_v39 = vadd.f32 %v1944_v38, %v428_v35  ;;  %v1185_v41 = vadd.f32 %v1945_v40, %v429_v36  ;;  %v1946_v42 = vld [vmem:[%s6582_s0 + $0x538] sm:$0xff]  ;;  %v431_v44 = vld [vmem:[%s6583_s1 + $0xd20] sm:$0xff]  ;;  %v432_v45 = vld [vmem:[%s6583_s1 + $0xd28] sm:$0xff]  ;;  %1685 = vst [vmem:[%s6584_s2 + $0xcf0] sm:$0xff] %v1181_v30 }
 0x143   :  { %v1186_v43 = vadd.f32 %v1946_v42, %v430_v37  ;;  %v433_v46 = vld [vmem:[%s6583_s1 + $0xd30] sm:$0xff]  ;;  %1686 = vst [vmem:[%s6584_s2 + $0xcf8] sm:$0xff] %v1182_v32  ;;  %1687 = vst [vmem:[%s6584_s2 + $0xd00] sm:$0xff] %v1183_v34  ;;  %v1947_v47 = vld [vmem:[%s6582_s0 + $0x540] sm:$0xff] }
 0x144   :  { %v1187_v48 = vadd.f32 %v1947_v47, %v431_v44  ;;  %v1948_v49 = vld [vmem:[%s6582_s0 + $0x548] sm:$0xff]  ;;  %v1949_v51 = vld [vmem:[%s6582_s0 + $0x550] sm:$0xff]  ;;  %v434_v53 = vld [vmem:[%s6583_s1 + $0xd38] sm:$0xff]  ;;  %1688 = vst [vmem:[%s6584_s2 + $0xd08] sm:$0xff] %v1184_v39 }
 0x145   :  { %v1188_v50 = vadd.f32 %v1948_v49, %v432_v45  ;;  %v1189_v52 = vadd.f32 %v1949_v51, %v433_v46  ;;  %v435_v54 = vld [vmem:[%s6583_s1 + $0xd40] sm:$0xff]  ;;  %v436_v55 = vld [vmem:[%s6583_s1 + $0xd48] sm:$0xff]  ;;  %1689 = vst [vmem:[%s6584_s2 + $0xd10] sm:$0xff] %v1185_v41  ;;  %1690 = vst [vmem:[%s6584_s2 + $0xd18] sm:$0xff] %v1186_v43 }
 0x146   :  { %v1950_v56 = vld [vmem:[%s6582_s0 + $0x558] sm:$0xff]  ;;  %v1951_v58 = vld [vmem:[%s6582_s0 + $0x560] sm:$0xff]  ;;  %v1952_v60 = vld [vmem:[%s6582_s0 + $0x568] sm:$0xff]  ;;  %1691 = vst [vmem:[%s6584_s2 + $0xd20] sm:$0xff] %v1187_v48 }
 0x147   :  { %v1190_v57 = vadd.f32 %v1950_v56, %v434_v53  ;;  %v1191_v59 = vadd.f32 %v1951_v58, %v435_v54  ;;  %v1192_v61 = vadd.f32 %v1952_v60, %v436_v55  ;;  %v437_v62 = vld [vmem:[%s6583_s1 + $0xd50] sm:$0xff]  ;;  %v438_v63 = vld [vmem:[%s6583_s1 + $0xd58] sm:$0xff]  ;;  %v439_v0 = vld [vmem:[%s6583_s1 + $0xd60] sm:$0xff]  ;;  %1692 = vst [vmem:[%s6584_s2 + $0xd28] sm:$0xff] %v1188_v50 }
 0x148   :  { %1693 = vst [vmem:[%s6584_s2 + $0xd30] sm:$0xff] %v1189_v52  ;;  %v1953_v1 = vld [vmem:[%s6582_s0 + $0x570] sm:$0xff]  ;;  %v1954_v3 = vld [vmem:[%s6582_s0 + $0x578] sm:$0xff]  ;;  %v1955_v5 = vld [vmem:[%s6582_s0 + $0x580] sm:$0xff] }
 0x149   :  { %v1193_v2 = vadd.f32 %v1953_v1, %v437_v62  ;;  %v1194_v4 = vadd.f32 %v1954_v3, %v438_v63  ;;  %v1195_v6 = vadd.f32 %v1955_v5, %v439_v0  ;;  %v440_v7 = vld [vmem:[%s6583_s1 + $0xd68] sm:$0xff]  ;;  %v441_v8 = vld [vmem:[%s6583_s1 + $0xd70] sm:$0xff]  ;;  %v442_v9 = vld [vmem:[%s6583_s1 + $0xd78] sm:$0xff]  ;;  %1694 = vst [vmem:[%s6584_s2 + $0xd38] sm:$0xff] %v1190_v57 }
 0x14a   :  { %1695 = vst [vmem:[%s6584_s2 + $0xd40] sm:$0xff] %v1191_v59  ;;  %1696 = vst [vmem:[%s6584_s2 + $0xd48] sm:$0xff] %v1192_v61  ;;  %v1956_v10 = vld [vmem:[%s6582_s0 + $0x588] sm:$0xff]  ;;  %v1957_v12 = vld [vmem:[%s6582_s0 + $0x590] sm:$0xff] }
 0x14b   :  { %v1196_v11 = vadd.f32 %v1956_v10, %v440_v7  ;;  %v1197_v13 = vadd.f32 %v1957_v12, %v441_v8  ;;  %v1958_v14 = vld [vmem:[%s6582_s0 + $0x598] sm:$0xff]  ;;  %v443_v16 = vld [vmem:[%s6583_s1 + $0xd80] sm:$0xff]  ;;  %v444_v17 = vld [vmem:[%s6583_s1 + $0xd88] sm:$0xff]  ;;  %1697 = vst [vmem:[%s6584_s2 + $0xd50] sm:$0xff] %v1193_v2 }
 0x14c   :  { %v1198_v15 = vadd.f32 %v1958_v14, %v442_v9  ;;  %v445_v18 = vld [vmem:[%s6583_s1 + $0xd90] sm:$0xff]  ;;  %1698 = vst [vmem:[%s6584_s2 + $0xd58] sm:$0xff] %v1194_v4  ;;  %1699 = vst [vmem:[%s6584_s2 + $0xd60] sm:$0xff] %v1195_v6  ;;  %v1959_v19 = vld [vmem:[%s6582_s0 + $0x5a0] sm:$0xff] }
 0x14d   :  { %v1199_v20 = vadd.f32 %v1959_v19, %v443_v16  ;;  %v1960_v21 = vld [vmem:[%s6582_s0 + $0x5a8] sm:$0xff]  ;;  %v1961_v23 = vld [vmem:[%s6582_s0 + $0x5b0] sm:$0xff]  ;;  %v446_v25 = vld [vmem:[%s6583_s1 + $0xd98] sm:$0xff]  ;;  %1700 = vst [vmem:[%s6584_s2 + $0xd68] sm:$0xff] %v1196_v11 }
 0x14e   :  { %v1200_v22 = vadd.f32 %v1960_v21, %v444_v17  ;;  %v1201_v24 = vadd.f32 %v1961_v23, %v445_v18  ;;  %v447_v26 = vld [vmem:[%s6583_s1 + $0xda0] sm:$0xff]  ;;  %v448_v27 = vld [vmem:[%s6583_s1 + $0xda8] sm:$0xff]  ;;  %1701 = vst [vmem:[%s6584_s2 + $0xd70] sm:$0xff] %v1197_v13  ;;  %1702 = vst [vmem:[%s6584_s2 + $0xd78] sm:$0xff] %v1198_v15 }
 0x14f   :  { %v1962_v28 = vld [vmem:[%s6582_s0 + $0x5b8] sm:$0xff]  ;;  %v1963_v30 = vld [vmem:[%s6582_s0 + $0x5c0] sm:$0xff]  ;;  %v1964_v32 = vld [vmem:[%s6582_s0 + $0x5c8] sm:$0xff]  ;;  %1703 = vst [vmem:[%s6584_s2 + $0xd80] sm:$0xff] %v1199_v20 }
 0x150   :  { %v1202_v29 = vadd.f32 %v1962_v28, %v446_v25  ;;  %v1203_v31 = vadd.f32 %v1963_v30, %v447_v26  ;;  %v1204_v33 = vadd.f32 %v1964_v32, %v448_v27  ;;  %v449_v34 = vld [vmem:[%s6583_s1 + $0xdb0] sm:$0xff]  ;;  %v450_v35 = vld [vmem:[%s6583_s1 + $0xdb8] sm:$0xff]  ;;  %v451_v36 = vld [vmem:[%s6583_s1 + $0xdc0] sm:$0xff]  ;;  %1704 = vst [vmem:[%s6584_s2 + $0xd88] sm:$0xff] %v1200_v22 }
 0x151   :  { %1705 = vst [vmem:[%s6584_s2 + $0xd90] sm:$0xff] %v1201_v24  ;;  %v1965_v37 = vld [vmem:[%s6582_s0 + $0x5d0] sm:$0xff]  ;;  %v1966_v39 = vld [vmem:[%s6582_s0 + $0x5d8] sm:$0xff]  ;;  %v1967_v41 = vld [vmem:[%s6582_s0 + $0x5e0] sm:$0xff] }
 0x152   :  { %v1205_v38 = vadd.f32 %v1965_v37, %v449_v34  ;;  %v1206_v40 = vadd.f32 %v1966_v39, %v450_v35  ;;  %v1207_v42 = vadd.f32 %v1967_v41, %v451_v36  ;;  %v452_v43 = vld [vmem:[%s6583_s1 + $0xdc8] sm:$0xff]  ;;  %v453_v44 = vld [vmem:[%s6583_s1 + $0xdd0] sm:$0xff]  ;;  %v454_v45 = vld [vmem:[%s6583_s1 + $0xdd8] sm:$0xff]  ;;  %1706 = vst [vmem:[%s6584_s2 + $0xd98] sm:$0xff] %v1202_v29 }
 0x153   :  { %1707 = vst [vmem:[%s6584_s2 + $0xda0] sm:$0xff] %v1203_v31  ;;  %1708 = vst [vmem:[%s6584_s2 + $0xda8] sm:$0xff] %v1204_v33  ;;  %v1968_v46 = vld [vmem:[%s6582_s0 + $0x5e8] sm:$0xff]  ;;  %v1969_v48 = vld [vmem:[%s6582_s0 + $0x5f0] sm:$0xff] }
 0x154   :  { %v1208_v47 = vadd.f32 %v1968_v46, %v452_v43  ;;  %v1209_v49 = vadd.f32 %v1969_v48, %v453_v44  ;;  %v1970_v50 = vld [vmem:[%s6582_s0 + $0x5f8] sm:$0xff]  ;;  %v455_v52 = vld [vmem:[%s6583_s1 + $0xde0] sm:$0xff]  ;;  %v456_v53 = vld [vmem:[%s6583_s1 + $0xde8] sm:$0xff]  ;;  %1709 = vst [vmem:[%s6584_s2 + $0xdb0] sm:$0xff] %v1205_v38 }
 0x155   :  { %v1210_v51 = vadd.f32 %v1970_v50, %v454_v45  ;;  %v457_v54 = vld [vmem:[%s6583_s1 + $0xdf0] sm:$0xff]  ;;  %1710 = vst [vmem:[%s6584_s2 + $0xdb8] sm:$0xff] %v1206_v40  ;;  %1711 = vst [vmem:[%s6584_s2 + $0xdc0] sm:$0xff] %v1207_v42  ;;  %v1971_v55 = vld [vmem:[%s6582_s0 + $0x600] sm:$0xff] }
 0x156   :  { %v1211_v56 = vadd.f32 %v1971_v55, %v455_v52  ;;  %v1972_v57 = vld [vmem:[%s6582_s0 + $0x608] sm:$0xff]  ;;  %v1973_v59 = vld [vmem:[%s6582_s0 + $0x610] sm:$0xff]  ;;  %v458_v61 = vld [vmem:[%s6583_s1 + $0xdf8] sm:$0xff]  ;;  %1712 = vst [vmem:[%s6584_s2 + $0xdc8] sm:$0xff] %v1208_v47 }
 0x157   :  { %v1212_v58 = vadd.f32 %v1972_v57, %v456_v53  ;;  %v1213_v60 = vadd.f32 %v1973_v59, %v457_v54  ;;  %v459_v62 = vld [vmem:[%s6583_s1 + $0xe00] sm:$0xff]  ;;  %v460_v63 = vld [vmem:[%s6583_s1 + $0xe08] sm:$0xff]  ;;  %1713 = vst [vmem:[%s6584_s2 + $0xdd0] sm:$0xff] %v1209_v49  ;;  %1714 = vst [vmem:[%s6584_s2 + $0xdd8] sm:$0xff] %v1210_v51 }
 0x158   :  { %v1974_v0 = vld [vmem:[%s6582_s0 + $0x618] sm:$0xff]  ;;  %v1975_v2 = vld [vmem:[%s6582_s0 + $0x620] sm:$0xff]  ;;  %v1976_v4 = vld [vmem:[%s6582_s0 + $0x628] sm:$0xff]  ;;  %1715 = vst [vmem:[%s6584_s2 + $0xde0] sm:$0xff] %v1211_v56 }
 0x159   :  { %v1214_v1 = vadd.f32 %v1974_v0, %v458_v61  ;;  %v1215_v3 = vadd.f32 %v1975_v2, %v459_v62  ;;  %v1216_v5 = vadd.f32 %v1976_v4, %v460_v63  ;;  %v461_v6 = vld [vmem:[%s6583_s1 + $0xe10] sm:$0xff]  ;;  %v462_v7 = vld [vmem:[%s6583_s1 + $0xe18] sm:$0xff]  ;;  %v463_v8 = vld [vmem:[%s6583_s1 + $0xe20] sm:$0xff]  ;;  %1716 = vst [vmem:[%s6584_s2 + $0xde8] sm:$0xff] %v1212_v58 }
 0x15a   :  { %1717 = vst [vmem:[%s6584_s2 + $0xdf0] sm:$0xff] %v1213_v60  ;;  %v1977_v9 = vld [vmem:[%s6582_s0 + $0x630] sm:$0xff]  ;;  %v1978_v11 = vld [vmem:[%s6582_s0 + $0x638] sm:$0xff]  ;;  %v1979_v13 = vld [vmem:[%s6582_s0 + $0x640] sm:$0xff] }
 0x15b   :  { %v1217_v10 = vadd.f32 %v1977_v9, %v461_v6  ;;  %v1218_v12 = vadd.f32 %v1978_v11, %v462_v7  ;;  %v1219_v14 = vadd.f32 %v1979_v13, %v463_v8  ;;  %v464_v15 = vld [vmem:[%s6583_s1 + $0xe28] sm:$0xff]  ;;  %v465_v16 = vld [vmem:[%s6583_s1 + $0xe30] sm:$0xff]  ;;  %v466_v17 = vld [vmem:[%s6583_s1 + $0xe38] sm:$0xff]  ;;  %1718 = vst [vmem:[%s6584_s2 + $0xdf8] sm:$0xff] %v1214_v1 }
 0x15c   :  { %1719 = vst [vmem:[%s6584_s2 + $0xe00] sm:$0xff] %v1215_v3  ;;  %1720 = vst [vmem:[%s6584_s2 + $0xe08] sm:$0xff] %v1216_v5  ;;  %v1980_v18 = vld [vmem:[%s6582_s0 + $0x648] sm:$0xff]  ;;  %v1981_v20 = vld [vmem:[%s6582_s0 + $0x650] sm:$0xff] }
 0x15d   :  { %v1220_v19 = vadd.f32 %v1980_v18, %v464_v15  ;;  %v1221_v21 = vadd.f32 %v1981_v20, %v465_v16  ;;  %v1982_v22 = vld [vmem:[%s6582_s0 + $0x658] sm:$0xff]  ;;  %v467_v24 = vld [vmem:[%s6583_s1 + $0xe40] sm:$0xff]  ;;  %v468_v25 = vld [vmem:[%s6583_s1 + $0xe48] sm:$0xff]  ;;  %1721 = vst [vmem:[%s6584_s2 + $0xe10] sm:$0xff] %v1217_v10 }
 0x15e   :  { %v1222_v23 = vadd.f32 %v1982_v22, %v466_v17  ;;  %v469_v26 = vld [vmem:[%s6583_s1 + $0xe50] sm:$0xff]  ;;  %1722 = vst [vmem:[%s6584_s2 + $0xe18] sm:$0xff] %v1218_v12  ;;  %1723 = vst [vmem:[%s6584_s2 + $0xe20] sm:$0xff] %v1219_v14  ;;  %v1983_v27 = vld [vmem:[%s6582_s0 + $0x660] sm:$0xff] }
 0x15f   :  { %v1223_v28 = vadd.f32 %v1983_v27, %v467_v24  ;;  %v1984_v29 = vld [vmem:[%s6582_s0 + $0x668] sm:$0xff]  ;;  %v1985_v31 = vld [vmem:[%s6582_s0 + $0x670] sm:$0xff]  ;;  %v470_v33 = vld [vmem:[%s6583_s1 + $0xe58] sm:$0xff]  ;;  %1724 = vst [vmem:[%s6584_s2 + $0xe28] sm:$0xff] %v1220_v19 }
 0x160   :  { %v1224_v30 = vadd.f32 %v1984_v29, %v468_v25  ;;  %v1225_v32 = vadd.f32 %v1985_v31, %v469_v26  ;;  %v471_v34 = vld [vmem:[%s6583_s1 + $0xe60] sm:$0xff]  ;;  %v472_v35 = vld [vmem:[%s6583_s1 + $0xe68] sm:$0xff]  ;;  %1725 = vst [vmem:[%s6584_s2 + $0xe30] sm:$0xff] %v1221_v21  ;;  %1726 = vst [vmem:[%s6584_s2 + $0xe38] sm:$0xff] %v1222_v23 }
 0x161   :  { %v1986_v36 = vld [vmem:[%s6582_s0 + $0x678] sm:$0xff]  ;;  %v1987_v38 = vld [vmem:[%s6582_s0 + $0x680] sm:$0xff]  ;;  %v1988_v40 = vld [vmem:[%s6582_s0 + $0x688] sm:$0xff]  ;;  %1727 = vst [vmem:[%s6584_s2 + $0xe40] sm:$0xff] %v1223_v28 }
 0x162   :  { %v1226_v37 = vadd.f32 %v1986_v36, %v470_v33  ;;  %v1227_v39 = vadd.f32 %v1987_v38, %v471_v34  ;;  %v1228_v41 = vadd.f32 %v1988_v40, %v472_v35  ;;  %v473_v42 = vld [vmem:[%s6583_s1 + $0xe70] sm:$0xff]  ;;  %v474_v43 = vld [vmem:[%s6583_s1 + $0xe78] sm:$0xff]  ;;  %v475_v44 = vld [vmem:[%s6583_s1 + $0xe80] sm:$0xff]  ;;  %1728 = vst [vmem:[%s6584_s2 + $0xe48] sm:$0xff] %v1224_v30 }
 0x163   :  { %1729 = vst [vmem:[%s6584_s2 + $0xe50] sm:$0xff] %v1225_v32  ;;  %v1989_v45 = vld [vmem:[%s6582_s0 + $0x690] sm:$0xff]  ;;  %v1990_v47 = vld [vmem:[%s6582_s0 + $0x698] sm:$0xff]  ;;  %v1991_v49 = vld [vmem:[%s6582_s0 + $0x6a0] sm:$0xff] }
 0x164   :  { %v1229_v46 = vadd.f32 %v1989_v45, %v473_v42  ;;  %v1230_v48 = vadd.f32 %v1990_v47, %v474_v43  ;;  %v1231_v50 = vadd.f32 %v1991_v49, %v475_v44  ;;  %v476_v51 = vld [vmem:[%s6583_s1 + $0xe88] sm:$0xff]  ;;  %v477_v52 = vld [vmem:[%s6583_s1 + $0xe90] sm:$0xff]  ;;  %v478_v53 = vld [vmem:[%s6583_s1 + $0xe98] sm:$0xff]  ;;  %1730 = vst [vmem:[%s6584_s2 + $0xe58] sm:$0xff] %v1226_v37 }
 0x165   :  { %1731 = vst [vmem:[%s6584_s2 + $0xe60] sm:$0xff] %v1227_v39  ;;  %1732 = vst [vmem:[%s6584_s2 + $0xe68] sm:$0xff] %v1228_v41  ;;  %v1992_v54 = vld [vmem:[%s6582_s0 + $0x6a8] sm:$0xff]  ;;  %v1993_v56 = vld [vmem:[%s6582_s0 + $0x6b0] sm:$0xff] }
 0x166   :  { %v1232_v55 = vadd.f32 %v1992_v54, %v476_v51  ;;  %v1233_v57 = vadd.f32 %v1993_v56, %v477_v52  ;;  %v1994_v58 = vld [vmem:[%s6582_s0 + $0x6b8] sm:$0xff]  ;;  %v479_v60 = vld [vmem:[%s6583_s1 + $0xea0] sm:$0xff]  ;;  %v480_v61 = vld [vmem:[%s6583_s1 + $0xea8] sm:$0xff]  ;;  %1733 = vst [vmem:[%s6584_s2 + $0xe70] sm:$0xff] %v1229_v46 }
 0x167   :  { %v1234_v59 = vadd.f32 %v1994_v58, %v478_v53  ;;  %v481_v62 = vld [vmem:[%s6583_s1 + $0xeb0] sm:$0xff]  ;;  %1734 = vst [vmem:[%s6584_s2 + $0xe78] sm:$0xff] %v1230_v48  ;;  %1735 = vst [vmem:[%s6584_s2 + $0xe80] sm:$0xff] %v1231_v50  ;;  %v1995_v63 = vld [vmem:[%s6582_s0 + $0x6c0] sm:$0xff] }
 0x168   :  { %v1235_v0 = vadd.f32 %v1995_v63, %v479_v60  ;;  %v1996_v1 = vld [vmem:[%s6582_s0 + $0x6c8] sm:$0xff]  ;;  %v1997_v3 = vld [vmem:[%s6582_s0 + $0x6d0] sm:$0xff]  ;;  %v482_v5 = vld [vmem:[%s6583_s1 + $0xeb8] sm:$0xff]  ;;  %1736 = vst [vmem:[%s6584_s2 + $0xe88] sm:$0xff] %v1232_v55 }
 0x169   :  { %v1236_v2 = vadd.f32 %v1996_v1, %v480_v61  ;;  %v1237_v4 = vadd.f32 %v1997_v3, %v481_v62  ;;  %v483_v6 = vld [vmem:[%s6583_s1 + $0xec0] sm:$0xff]  ;;  %v484_v7 = vld [vmem:[%s6583_s1 + $0xec8] sm:$0xff]  ;;  %1737 = vst [vmem:[%s6584_s2 + $0xe90] sm:$0xff] %v1233_v57  ;;  %1738 = vst [vmem:[%s6584_s2 + $0xe98] sm:$0xff] %v1234_v59 }
 0x16a   :  { %v1998_v8 = vld [vmem:[%s6582_s0 + $0x6d8] sm:$0xff]  ;;  %v1999_v10 = vld [vmem:[%s6582_s0 + $0x6e0] sm:$0xff]  ;;  %v2000_v12 = vld [vmem:[%s6582_s0 + $0x6e8] sm:$0xff]  ;;  %1739 = vst [vmem:[%s6584_s2 + $0xea0] sm:$0xff] %v1235_v0 }
 0x16b   :  { %v1238_v9 = vadd.f32 %v1998_v8, %v482_v5  ;;  %v1239_v11 = vadd.f32 %v1999_v10, %v483_v6  ;;  %v1240_v13 = vadd.f32 %v2000_v12, %v484_v7  ;;  %v485_v14 = vld [vmem:[%s6583_s1 + $0xed0] sm:$0xff]  ;;  %v486_v15 = vld [vmem:[%s6583_s1 + $0xed8] sm:$0xff]  ;;  %v487_v16 = vld [vmem:[%s6583_s1 + $0xee0] sm:$0xff]  ;;  %1740 = vst [vmem:[%s6584_s2 + $0xea8] sm:$0xff] %v1236_v2 }
 0x16c   :  { %1741 = vst [vmem:[%s6584_s2 + $0xeb0] sm:$0xff] %v1237_v4  ;;  %v2001_v17 = vld [vmem:[%s6582_s0 + $0x6f0] sm:$0xff]  ;;  %v2002_v19 = vld [vmem:[%s6582_s0 + $0x6f8] sm:$0xff]  ;;  %v2003_v21 = vld [vmem:[%s6582_s0 + $0x700] sm:$0xff] }
 0x16d   :  { %v1241_v18 = vadd.f32 %v2001_v17, %v485_v14  ;;  %v1242_v20 = vadd.f32 %v2002_v19, %v486_v15  ;;  %v1243_v22 = vadd.f32 %v2003_v21, %v487_v16  ;;  %v488_v23 = vld [vmem:[%s6583_s1 + $0xee8] sm:$0xff]  ;;  %v489_v24 = vld [vmem:[%s6583_s1 + $0xef0] sm:$0xff]  ;;  %v490_v25 = vld [vmem:[%s6583_s1 + $0xef8] sm:$0xff]  ;;  %1742 = vst [vmem:[%s6584_s2 + $0xeb8] sm:$0xff] %v1238_v9 }
 0x16e   :  { %1743 = vst [vmem:[%s6584_s2 + $0xec0] sm:$0xff] %v1239_v11  ;;  %1744 = vst [vmem:[%s6584_s2 + $0xec8] sm:$0xff] %v1240_v13  ;;  %v2004_v26 = vld [vmem:[%s6582_s0 + $0x708] sm:$0xff]  ;;  %v2005_v28 = vld [vmem:[%s6582_s0 + $0x710] sm:$0xff] }
 0x16f   :  { %v1244_v27 = vadd.f32 %v2004_v26, %v488_v23  ;;  %v1245_v29 = vadd.f32 %v2005_v28, %v489_v24  ;;  %v2006_v30 = vld [vmem:[%s6582_s0 + $0x718] sm:$0xff]  ;;  %v491_v32 = vld [vmem:[%s6583_s1 + $0xf00] sm:$0xff]  ;;  %v492_v33 = vld [vmem:[%s6583_s1 + $0xf08] sm:$0xff]  ;;  %1745 = vst [vmem:[%s6584_s2 + $0xed0] sm:$0xff] %v1241_v18 }
 0x170   :  { %v1246_v31 = vadd.f32 %v2006_v30, %v490_v25  ;;  %v493_v34 = vld [vmem:[%s6583_s1 + $0xf10] sm:$0xff]  ;;  %1746 = vst [vmem:[%s6584_s2 + $0xed8] sm:$0xff] %v1242_v20  ;;  %1747 = vst [vmem:[%s6584_s2 + $0xee0] sm:$0xff] %v1243_v22  ;;  %v2007_v35 = vld [vmem:[%s6582_s0 + $0x720] sm:$0xff] }
 0x171   :  { %v1247_v36 = vadd.f32 %v2007_v35, %v491_v32  ;;  %v2008_v37 = vld [vmem:[%s6582_s0 + $0x728] sm:$0xff]  ;;  %v2009_v39 = vld [vmem:[%s6582_s0 + $0x730] sm:$0xff]  ;;  %v494_v41 = vld [vmem:[%s6583_s1 + $0xf18] sm:$0xff]  ;;  %1748 = vst [vmem:[%s6584_s2 + $0xee8] sm:$0xff] %v1244_v27 }
 0x172   :  { %v1248_v38 = vadd.f32 %v2008_v37, %v492_v33  ;;  %v1249_v40 = vadd.f32 %v2009_v39, %v493_v34  ;;  %v495_v42 = vld [vmem:[%s6583_s1 + $0xf20] sm:$0xff]  ;;  %v496_v43 = vld [vmem:[%s6583_s1 + $0xf28] sm:$0xff]  ;;  %1749 = vst [vmem:[%s6584_s2 + $0xef0] sm:$0xff] %v1245_v29  ;;  %1750 = vst [vmem:[%s6584_s2 + $0xef8] sm:$0xff] %v1246_v31 }
 0x173   :  { %v2010_v44 = vld [vmem:[%s6582_s0 + $0x738] sm:$0xff]  ;;  %v2011_v46 = vld [vmem:[%s6582_s0 + $0x740] sm:$0xff]  ;;  %v2012_v48 = vld [vmem:[%s6582_s0 + $0x748] sm:$0xff]  ;;  %1751 = vst [vmem:[%s6584_s2 + $0xf00] sm:$0xff] %v1247_v36 }
 0x174   :  { %v1250_v45 = vadd.f32 %v2010_v44, %v494_v41  ;;  %v1251_v47 = vadd.f32 %v2011_v46, %v495_v42  ;;  %v1252_v49 = vadd.f32 %v2012_v48, %v496_v43  ;;  %v497_v50 = vld [vmem:[%s6583_s1 + $0xf30] sm:$0xff]  ;;  %v498_v51 = vld [vmem:[%s6583_s1 + $0xf38] sm:$0xff]  ;;  %v499_v52 = vld [vmem:[%s6583_s1 + $0xf40] sm:$0xff]  ;;  %1752 = vst [vmem:[%s6584_s2 + $0xf08] sm:$0xff] %v1248_v38 }
 0x175   :  { %1753 = vst [vmem:[%s6584_s2 + $0xf10] sm:$0xff] %v1249_v40  ;;  %v2013_v53 = vld [vmem:[%s6582_s0 + $0x750] sm:$0xff]  ;;  %v2014_v55 = vld [vmem:[%s6582_s0 + $0x758] sm:$0xff]  ;;  %v2015_v57 = vld [vmem:[%s6582_s0 + $0x760] sm:$0xff] }
 0x176   :  { %v1253_v54 = vadd.f32 %v2013_v53, %v497_v50  ;;  %v1254_v56 = vadd.f32 %v2014_v55, %v498_v51  ;;  %v1255_v58 = vadd.f32 %v2015_v57, %v499_v52  ;;  %v500_v59 = vld [vmem:[%s6583_s1 + $0xf48] sm:$0xff]  ;;  %v501_v60 = vld [vmem:[%s6583_s1 + $0xf50] sm:$0xff]  ;;  %v502_v61 = vld [vmem:[%s6583_s1 + $0xf58] sm:$0xff]  ;;  %1754 = vst [vmem:[%s6584_s2 + $0xf18] sm:$0xff] %v1250_v45 }
 0x177   :  { %1755 = vst [vmem:[%s6584_s2 + $0xf20] sm:$0xff] %v1251_v47  ;;  %1756 = vst [vmem:[%s6584_s2 + $0xf28] sm:$0xff] %v1252_v49  ;;  %v2016_v62 = vld [vmem:[%s6582_s0 + $0x768] sm:$0xff]  ;;  %v2017_v0 = vld [vmem:[%s6582_s0 + $0x770] sm:$0xff] }
 0x178   :  { %v1256_v63 = vadd.f32 %v2016_v62, %v500_v59  ;;  %v1257_v1 = vadd.f32 %v2017_v0, %v501_v60  ;;  %v2018_v2 = vld [vmem:[%s6582_s0 + $0x778] sm:$0xff]  ;;  %v503_v4 = vld [vmem:[%s6583_s1 + $0xf60] sm:$0xff]  ;;  %v504_v5 = vld [vmem:[%s6583_s1 + $0xf68] sm:$0xff]  ;;  %1757 = vst [vmem:[%s6584_s2 + $0xf30] sm:$0xff] %v1253_v54 }
 0x179   :  { %v1258_v3 = vadd.f32 %v2018_v2, %v502_v61  ;;  %v505_v6 = vld [vmem:[%s6583_s1 + $0xf70] sm:$0xff]  ;;  %1758 = vst [vmem:[%s6584_s2 + $0xf38] sm:$0xff] %v1254_v56  ;;  %1759 = vst [vmem:[%s6584_s2 + $0xf40] sm:$0xff] %v1255_v58  ;;  %v2019_v7 = vld [vmem:[%s6582_s0 + $0x780] sm:$0xff] }
 0x17a   :  { %v1259_v8 = vadd.f32 %v2019_v7, %v503_v4  ;;  %v2020_v9 = vld [vmem:[%s6582_s0 + $0x788] sm:$0xff]  ;;  %v2021_v11 = vld [vmem:[%s6582_s0 + $0x790] sm:$0xff]  ;;  %v506_v13 = vld [vmem:[%s6583_s1 + $0xf78] sm:$0xff]  ;;  %1760 = vst [vmem:[%s6584_s2 + $0xf48] sm:$0xff] %v1256_v63 }
 0x17b   :  { %v1260_v10 = vadd.f32 %v2020_v9, %v504_v5  ;;  %v1261_v12 = vadd.f32 %v2021_v11, %v505_v6  ;;  %v507_v14 = vld [vmem:[%s6583_s1 + $0xf80] sm:$0xff]  ;;  %v508_v15 = vld [vmem:[%s6583_s1 + $0xf88] sm:$0xff]  ;;  %1761 = vst [vmem:[%s6584_s2 + $0xf50] sm:$0xff] %v1257_v1  ;;  %1762 = vst [vmem:[%s6584_s2 + $0xf58] sm:$0xff] %v1258_v3 }
 0x17c   :  { %v2022_v16 = vld [vmem:[%s6582_s0 + $0x798] sm:$0xff]  ;;  %v2023_v18 = vld [vmem:[%s6582_s0 + $0x7a0] sm:$0xff]  ;;  %v2024_v20 = vld [vmem:[%s6582_s0 + $0x7a8] sm:$0xff]  ;;  %1763 = vst [vmem:[%s6584_s2 + $0xf60] sm:$0xff] %v1259_v8 }
 0x17d   :  { %v1262_v17 = vadd.f32 %v2022_v16, %v506_v13  ;;  %v1263_v19 = vadd.f32 %v2023_v18, %v507_v14  ;;  %v1264_v21 = vadd.f32 %v2024_v20, %v508_v15  ;;  %v509_v22 = vld [vmem:[%s6583_s1 + $0xf90] sm:$0xff]  ;;  %v510_v23 = vld [vmem:[%s6583_s1 + $0xf98] sm:$0xff]  ;;  %v511_v24 = vld [vmem:[%s6583_s1 + $0xfa0] sm:$0xff]  ;;  %1764 = vst [vmem:[%s6584_s2 + $0xf68] sm:$0xff] %v1260_v10 }
 0x17e   :  { %1765 = vst [vmem:[%s6584_s2 + $0xf70] sm:$0xff] %v1261_v12  ;;  %v2025_v25 = vld [vmem:[%s6582_s0 + $0x7b0] sm:$0xff]  ;;  %v2026_v27 = vld [vmem:[%s6582_s0 + $0x7b8] sm:$0xff]  ;;  %v2027_v29 = vld [vmem:[%s6582_s0 + $0x7c0] sm:$0xff] }
 0x17f   :  { %v1265_v26 = vadd.f32 %v2025_v25, %v509_v22  ;;  %v1266_v28 = vadd.f32 %v2026_v27, %v510_v23  ;;  %v1267_v30 = vadd.f32 %v2027_v29, %v511_v24  ;;  %v512_v31 = vld [vmem:[%s6583_s1 + $0xfa8] sm:$0xff]  ;;  %v513_v32 = vld [vmem:[%s6583_s1 + $0xfb0] sm:$0x1]  ;;  %v514_v33 = vld [vmem:[%s6583_s1 + $0xfb8] sm:$0x1]  ;;  %1766 = vst [vmem:[%s6584_s2 + $0xf78] sm:$0xff] %v1262_v17 }
 0x180   :  { %1767 = vst [vmem:[%s6584_s2 + $0xf80] sm:$0xff] %v1263_v19  ;;  %1768 = vst [vmem:[%s6584_s2 + $0xf88] sm:$0xff] %v1264_v21  ;;  %v2028_v34 = vld [vmem:[%s6582_s0 + $0x7c8] sm:$0xff]  ;;  %v2029_v36 = vld [vmem:[%s6582_s0 + $0x7d0] sm:$0x1] }
 0x181   :  { %v1268_v35 = vadd.f32 %v2028_v34, %v512_v31  ;;  %v1269_v37 = vadd.f32 %v2029_v36, %v513_v32  ;;  %v2030_v38 = vld [vmem:[%s6582_s0 + $0x7d8] sm:$0x1]  ;;  %1769 = vst [vmem:[%s6584_s2 + $0xf90] sm:$0xff] %v1265_v26  ;;  %1770 = vst [vmem:[%s6584_s2 + $0xf98] sm:$0xff] %v1266_v28 }
 0x182   :  { %v1270_v39 = vadd.f32 %v2030_v38, %v514_v33  ;;  %1771 = vst [vmem:[%s6584_s2 + $0xfa0] sm:$0xff] %v1267_v30 }
 0x183   :  { %1772 = vst [vmem:[%s6584_s2 + $0xfa8] sm:$0xff] %v1268_v35  ;;  %1773 = vst [vmem:[%s6584_s2 + $0xfb0] sm:$0x1] %v1269_v37 }
 0x184   :  { %1774 = vst [vmem:[%s6584_s2 + $0xfb8] sm:$0x1] %v1270_v39 }

</bundles_post_ra>
